<compile_context>
chip_gen: v7x
topology: tpu7x:2x2x1
jax: 0.10.0
libtpu: 0.0.40
codegen_flags: <defaults>
</compile_context>

<pallas_src>
import jax
import jax.numpy as jnp
from jax import lax
from jax.experimental import pallas as pl
from jax.experimental.pallas import tpu as pltpu


LANE = 128      # channel padding target (lane width)
ALIGN = 16      # bf16 sublane-aligned interior start inside the y1 scratch


def _round_up(x, m):
    return ((x + m - 1) // m) * m


# ----------------------------- Pallas kernel -------------------------------

def _double_conv_kernel(x2m_ref, x2h_ref, x1m_ref, x1h_ref,
                        w1a_ref, w1b_ref, b1_ref, w2_ref, b2_ref,
                        o_ref, y1_ref):
    """Fused double_conv for one (image n, H-tile t) grid step.

    x2m_ref : (1, TH, W+2, C2)   bf16  main rows of pre-padded x2
    x2h_ref : (1, 4,  W+2, C2)   bf16  4 halo rows below the tile
    x1m_ref : (1, TH, W+2, C1)   bf16  main rows of pre-padded upsampled x1
    x1h_ref : (1, 4,  W+2, C1)   bf16
    w1a_ref : (9, C2, Cmid)      bf16  conv1 weights for x2 channels (BN folded)
    w1b_ref : (9, C1, Cmid)      bf16  conv1 weights for x1 channels (BN folded)
    b1_ref  : (1, Cmid)          f32   folded BN1 bias
    w2_ref  : (9, Cmid, Cout)    bf16  conv2 weights (BN folded)
    b2_ref  : (1, Cout)          f32   folded BN2 bias
    o_ref   : (1, TH, W, Cout)   bf16  output tile
    y1_ref  : (TH+2, W+2*ALIGN, Cmid) bf16 VMEM scratch for the intermediate
              (interior columns [ALIGN, ALIGN+W); zero halo at ALIGN-1 / ALIGN+W)
    """
    TH = x2m_ref.shape[1]
    W = x2m_ref.shape[2] - 2
    Cmid = w1a_ref.shape[2]
    Cout = w2_ref.shape[2]
    R1 = TH + 2                          # conv1 output rows: tile + conv2 row halo
    t = pl.program_id(1)
    n_tiles = pl.num_programs(1)

    # --- conv1 + folded BN1 + ReLU: tap-accumulate over both input stacks ----
    acc1 = None
    for m_ref, h_ref, w_ref in ((x2m_ref, x2h_ref, w1a_ref),
                                (x1m_ref, x1h_ref, w1b_ref)):
        xw = jnp.concatenate([m_ref[0], h_ref[0]], axis=0)      # (TH+4, W+2, C)
        cin = xw.shape[-1]
        for k in range(9):
            dy, dx = divmod(k, 3)
            tap = xw[dy:dy + R1, dx:dx + W, :].reshape(R1 * W, cin)
            part = jnp.dot(tap, w_ref[k], preferred_element_type=jnp.float32)
            acc1 = part if acc1 is None else acc1 + part
    y1 = jnp.maximum(acc1 + b1_ref[...], 0.0)                   # (R1*W, Cmid) f32

    # --- stage the intermediate in VMEM (aligned interior; never hits HBM) ---
    y1_ref[:, pl.ds(ALIGN, W), :] = y1.reshape(R1, W, Cmid).astype(y1_ref.dtype)
    zcol = jnp.zeros((R1, 1, Cmid), y1_ref.dtype)
    y1_ref[:, pl.ds(ALIGN - 1, 1), :] = zcol        # conv2 zero pad, left column
    y1_ref[:, pl.ds(ALIGN + W, 1), :] = zcol        # conv2 zero pad, right column

    zrow = jnp.zeros((1, W, Cmid), y1_ref.dtype)

    @pl.when(t == 0)                                # image top: conv2 zero-pad row
    def _():
        y1_ref[pl.ds(0, 1), pl.ds(ALIGN, W), :] = zrow

    @pl.when(t == n_tiles - 1)                      # image bottom
    def _():
        y1_ref[pl.ds(R1 - 1, 1), pl.ds(ALIGN, W), :] = zrow

    # --- conv2 + folded BN2 + ReLU: tap-accumulate ---------------------------
    acc2 = None
    for k in range(9):
        dy, dx = divmod(k, 3)
        tap = y1_ref[pl.ds(dy, TH), pl.ds(ALIGN - 1 + dx, W), :].reshape(TH * W, Cmid)
        part = jnp.dot(tap, w2_ref[k], preferred_element_type=jnp.float32)
        acc2 = part if acc2 is None else acc2 + part
    y2 = jnp.maximum(acc2 + b2_ref[...], 0.0)                   # (TH*W, Cout) f32
    o_ref[...] = y2.reshape(1, TH, W, Cout).astype(o_ref.dtype)


# --------------------------- kernel wrapper ----------------------------------

def _vmem_capacity_bytes():
    try:
        info = pltpu.get_tpu_info()
        return int(getattr(info, "vmem_capacity_bytes", 64 * 1024 * 1024))
    except Exception:
        return 64 * 1024 * 1024


def _pick_tile_h(H, W, c2, c1, cmid, cout, vmem_cap):
    """Largest TH (multiple of 8, divides H) whose per-step working set fits in
    a fraction of this generation's VMEM (v7x: 64 MiB, v5e/v6e: 128 MiB)."""
    per_row = (2 * (W + 2) * (c2 + c1) * 2        # double-buffered bf16 inputs
               + (W + 2 * ALIGN) * cmid * 2       # bf16 intermediate scratch
               + 2 * W * cout * 2                 # double-buffered bf16 output
               + W * (cmid + cout) * 4)           # live f32 accumulators
    budget = max(vmem_cap // 4, 1 << 20)
    th = max(8, min(H, (budget // per_row) // 8 * 8))
    while th > 8 and H % th:
        th -= 8
    return th if H % th == 0 else H


def double_conv_fused(x2_nhwc, x1_nhwc, w1a, w1b, b1, w2, b2, *, tile_h=None):
    """(conv3x3 -> BN -> ReLU) x 2 on concat([x2, x1], channels) without
    materializing the concat.  Returns (N, H, W, Cout_padded) bf16."""
    N, H, W, c2 = x2_nhwc.shape
    c1 = x1_nhwc.shape[-1]
    assert x1_nhwc.shape[:3] == (N, H, W)
    cmid_p = w1a.shape[2]
    cout_p = w2.shape[2]
    assert w1a.shape == (9, c2, cmid_p) and w1b.shape == (9, c1, cmid_p)
    assert w2.shape == (9, cmid_p, cout_p)
    # TODO(synk): support H, W that are not multiples of 8 (mask the edge tile).
    assert H % 8 == 0 and W % 8 == 0, "kernel assumes 8-aligned spatial dims"

    vmem_cap = _vmem_capacity_bytes()
    TH = tile_h if tile_h is not None else _pick_tile_h(H, W, c2, c1, cmid_p,
                                                        cout_p, vmem_cap)
    assert TH % 8 == 0 and H % TH == 0
    n_tiles = H // TH

    # halo pad: 2 zero rows top/bottom (conv1 of the conv2-halo rows), 1 zero
    # col left/right (conv1's own SAME padding); bf16 halves kernel HBM reads.
    pad = ((0, 0), (2, 2), (1, 1), (0, 0))
    x2p = jnp.pad(x2_nhwc, pad).astype(jnp.bfloat16)
    x1p = jnp.pad(x1_nhwc, pad).astype(jnp.bfloat16)
    Wp = W + 2
    halo_stride = TH // 4          # halo block index step (4-row halo blocks)

    def main_spec(c):
        return pl.BlockSpec((1, TH, Wp, c), lambda n, t: (n, t, 0, 0))

    def halo_spec(c):
        return pl.BlockSpec((1, 4, Wp, c),
                            lambda n, t: (n, (t + 1) * halo_stride, 0, 0))

    const3 = lambda n, t: (0, 0, 0)
    const2 = lambda n, t: (0, 0)

    flops = 2 * N * H * W * 9 * ((c2 + c1) * cmid_p + cmid_p * cout_p)
    bytes_accessed = ((x2p.size + x1p.size) * 2 * (TH + 4) // TH
                      + N * H * W * cout_p * 2
                      + (w1a.size + w1b.size + w2.size) * 2
                      + (b1.size + b2.size) * 4)

    out = pl.pallas_call(
        _double_conv_kernel,
        out_shape=jax.ShapeDtypeStruct((N, H, W, cout_p), jnp.bfloat16),
        grid_spec=pltpu.PrefetchScalarGridSpec(
            num_scalar_prefetch=0,
            grid=(N, n_tiles),
            in_specs=[
                main_spec(c2), halo_spec(c2),
                main_spec(c1), halo_spec(c1),
                pl.BlockSpec((9, c2, cmid_p), const3),
                pl.BlockSpec((9, c1, cmid_p), const3),
                pl.BlockSpec((1, cmid_p), const2),
                pl.BlockSpec((9, cmid_p, cout_p), const3),
                pl.BlockSpec((1, cout_p), const2),
            ],
            out_specs=pl.BlockSpec((1, TH, W, cout_p), lambda n, t: (n, t, 0, 0)),
            scratch_shapes=[
                pltpu.VMEM((TH + 2, W + 2 * ALIGN, cmid_p), jnp.bfloat16)],
        ),
        compiler_params=pltpu.CompilerParams(
            # both axes are independent -> v7x megacore splits (N, H-tiles)
            dimension_semantics=("parallel", "parallel"),
            vmem_limit_bytes=int(min(vmem_cap // 2, 96 * 1024 * 1024)),
        ),
        cost_estimate=pl.CostEstimate(
            flops=flops, transcendentals=0, bytes_accessed=bytes_accessed),
    )(x2p, x2p, x1p, x1p, w1a, w1b, b1, w2, b2)
    return out


# ------------------------------- JAX glue ------------------------------------

def bilinear_upsample_x2_align_corners_nhwc(x):
    """nn.Upsample(scale_factor=2, mode='bilinear', align_corners=True), NHWC."""
    N, H, W, C = x.shape
    Ho, Wo = 2 * H, 2 * W

    def coords(n_in, n_out):
        if n_in == 1:
            src = jnp.zeros((n_out,), jnp.float32)
        else:
            src = jnp.arange(n_out, dtype=jnp.float32) * (n_in - 1) / (n_out - 1)
        lo = jnp.floor(src).astype(jnp.int32)
        hi = jnp.minimum(lo + 1, n_in - 1)
        return src - lo.astype(jnp.float32), lo, hi

    fy, y0, y1 = coords(H, Ho)
    fx, x0, x1 = coords(W, Wo)
    rows = (x[:, y0, :, :] * (1.0 - fy)[None, :, None, None]
            + x[:, y1, :, :] * fy[None, :, None, None])           # (N,Ho,W,C)
    out = (rows[:, :, x0, :] * (1.0 - fx)[None, None, :, None]
           + rows[:, :, x1, :] * fx[None, None, :, None])         # (N,Ho,Wo,C)
    return out


def fold_bn_into_conv(w_hwio, conv_b, gamma, beta, mean, var, eps=1e-5,
                      cin_pad=None, cout_pad=None):
    """Fold eval-mode BatchNorm into the conv; returns tap-major bf16 weights
    (9, Cin[pad], Cout[pad]) and an f32 bias row (1, Cout[pad])."""
    scale = gamma / jnp.sqrt(var + eps)
    w = w_hwio * scale[None, None, None, :]           # MXU does the BN scaling
    b = beta + (conv_b - mean) * scale
    kh, kw, cin, cout = w_hwio.shape
    w = w.reshape(kh * kw, cin, cout)
    if cin_pad is not None and cin_pad > cin:
        w = jnp.pad(w, ((0, 0), (0, cin_pad - cin), (0, 0)))
    if cout_pad is not None and cout_pad > cout:
        w = jnp.pad(w, ((0, 0), (0, 0), (0, cout_pad - cout)))
        b = jnp.pad(b, (0, cout_pad - cout))
    return w.astype(jnp.bfloat16), b[None, :].astype(jnp.float32)


def make_params(key, in_ch, out_ch):
    ks = jax.random.split(key, 10)
    p = {}
    # conv1: in_ch -> out_ch, conv2: out_ch -> out_ch ; weights stored HWIO
    p["w1"] = 0.1 * jax.random.normal(ks[0], (3, 3, in_ch, out_ch), jnp.float32)
    p["b1"] = 0.1 * jax.random.normal(ks[1], (out_ch,), jnp.float32)
    p["g1"] = 1.0 + 0.1 * jax.random.normal(ks[2], (out_ch,), jnp.float32)
    p["be1"] = 0.1 * jax.random.normal(ks[3], (out_ch,), jnp.float32)
    p["m1"] = 0.1 * jax.random.normal(ks[4], (out_ch,), jnp.float32)
    p["v1"] = 1.0 + 0.1 * jnp.abs(jax.random.normal(ks[5], (out_ch,), jnp.float32))
    p["w2"] = 0.1 * jax.random.normal(ks[6], (3, 3, out_ch, out_ch), jnp.float32)
    p["b2"] = 0.1 * jax.random.normal(ks[7], (out_ch,), jnp.float32)
    p["g2"] = 1.0 + 0.1 * jax.random.normal(ks[8], (out_ch,), jnp.float32)
    p["be2"] = 0.1 * jax.random.normal(ks[9], (out_ch,), jnp.float32)
    p["m2"] = jnp.zeros((out_ch,), jnp.float32)
    p["v2"] = jnp.ones((out_ch,), jnp.float32)
    return p


def up_forward(x1_nchw, x2_nchw, params, tile_h=None):
    """Forward of `up` (bilinear=True).  Inputs/outputs in NCHW like PyTorch."""
    # glue runs in NHWC so the upsampled x1 feeds the kernel without a transpose
    x1 = jnp.transpose(x1_nchw, (0, 2, 3, 1))
    x2 = jnp.transpose(x2_nchw, (0, 2, 3, 1))

    # 1) bilinear 2x upsample (align_corners=True)
    x1 = bilinear_upsample_x2_align_corners_nhwc(x1)

    # 2) F.pad to x2's spatial size
    diffY = x2.shape[1] - x1.shape[1]
    diffX = x2.shape[2] - x1.shape[2]
    x1 = jnp.pad(x1, ((0, 0),
                      (diffY // 2, diffY - diffY // 2),
                      (diffX // 2, diffX - diffX // 2),
                      (0, 0)))

    # 3)+4) concat([x2, x1]) + double_conv, fused: the concat never hits HBM --
    #       the kernel takes x2 / x1 separately and w1 is split along Cin.
    cmid = params["w1"].shape[-1]
    cout = params["w2"].shape[-1]
    cmid_p = _round_up(cmid, LANE)
    cout_p = _round_up(cout, LANE)
    w1, b1 = fold_bn_into_conv(params["w1"], params["b1"], params["g1"],
                               params["be1"], params["m1"], params["v1"],
                               cout_pad=cmid_p)
    w2, b2 = fold_bn_into_conv(params["w2"], params["b2"], params["g2"],
                               params["be2"], params["m2"], params["v2"],
                               cin_pad=cmid_p, cout_pad=cout_p)
    c2 = x2.shape[-1]
    w1a, w1b = w1[:, :c2, :], w1[:, c2:, :]

    y = double_conv_fused(x2, x1, w1a, w1b, b1, w2, b2, tile_h=tile_h)
    y = y[..., :cout]                                     # drop channel padding
    return jnp.transpose(y, (0, 3, 1, 2)).astype(jnp.float32)    # NCHW, f32


# --------------------------- reference (for check) ---------------------------

def _ref_conv_bn_relu_nhwc(x, w, b, g, be, m, v, eps=1e-5):
    y = lax.conv_general_dilated(
        x, w, window_strides=(1, 1), padding="SAME",
        dimension_numbers=("NHWC", "HWIO", "NHWC"))
    y = y + b[None, None, None, :]
    y = (y - m) * (g / jnp.sqrt(v + eps)) + be
    return jnp.maximum(y, 0.0)


# --------------------------------- main --------------------------------------

if __name__ == "__main__":
    key = jax.random.PRNGKey(0)
    k1, k2, kp = jax.random.split(key, 3)

    in_ch, out_ch = 8, 4
    N, H2, W2 = 2, 16, 16                         # x2 spatial size
    # x1 comes from the deeper level: half spatial, in_ch // 2 channels
    x1 = jax.random.normal(k1, (N, in_ch // 2, H2 // 2, W2 // 2), jnp.float32)
    x2 = jax.random.normal(k2, (N, in_ch // 2, H2, W2), jnp.float32)
    params = make_params(kp, in_ch, out_ch)

    up_fn = jax.jit(up_forward, static_argnames=("tile_h",))
    out = jax.block_until_ready(up_fn(x1, x2, params, tile_h=8))   # 2 H-tiles
    assert out.shape == (N, out_ch, H2, W2), out.shape

    # correctness check vs a pure-JAX f32 reference (full conv + BN + ReLU).
    # Tolerance is loose-ish because matmuls / intermediate / output are bf16.
    x1u = bilinear_upsample_x2_align_corners_nhwc(jnp.transpose(x1, (0, 2, 3, 1)))
    xc = jnp.concatenate([jnp.transpose(x2, (0, 2, 3, 1)), x1u], axis=-1)
    ref = _ref_conv_bn_relu_nhwc(xc, params["w1"], params["b1"], params["g1"],
                                 params["be1"], params["m1"], params["v1"])
    ref = _ref_conv_bn_relu_nhwc(ref, params["w2"], params["b2"], params["g2"],
                                 params["be2"], params["m2"], params["v2"])
    ref = jnp.transpose(ref, (0, 3, 1, 2))
    max_err = float(jnp.max(jnp.abs(out - ref)))
    assert jnp.allclose(out, ref, rtol=5e-2, atol=5e-2), max_err

    print("KERNEL_OK")
</pallas_src>

<mosaic_0001>
module attributes {stable_mosaic.version = 11 : i64} {
  func.func @_double_conv_kernel(%arg0: i32, %arg1: i32, %arg2: memref<1x8x18x4xbf16, #tpu.memory_space<vmem>>, %arg3: memref<1x4x18x4xbf16, #tpu.memory_space<vmem>>, %arg4: memref<1x8x18x4xbf16, #tpu.memory_space<vmem>>, %arg5: memref<1x4x18x4xbf16, #tpu.memory_space<vmem>>, %arg6: memref<9x4x128xbf16, #tpu.memory_space<vmem>>, %arg7: memref<9x4x128xbf16, #tpu.memory_space<vmem>>, %arg8: memref<1x128xf32, #tpu.memory_space<vmem>>, %arg9: memref<9x128x128xbf16, #tpu.memory_space<vmem>>, %arg10: memref<1x128xf32, #tpu.memory_space<vmem>>, %arg11: memref<1x8x16x128xbf16, #tpu.memory_space<vmem>>, %arg12: memref<10x48x128xbf16, #tpu.memory_space<vmem>>) attributes {dimension_semantics = [#tpu.dimension_semantics<parallel>, #tpu.dimension_semantics<parallel>], iteration_bounds = array<i64: 2, 2>, scalar_prefetch = 0 : i64, scratch_operands = 1 : i64, tpu.core_type = #tpu.core_type<tc>, window_params = [{transform_indices = @transform_0, window_bounds = array<i64: 1, 8, 18, 4>}, {transform_indices = @transform_1, window_bounds = array<i64: 1, 4, 18, 4>}, {transform_indices = @transform_2, window_bounds = array<i64: 1, 8, 18, 4>}, {transform_indices = @transform_3, window_bounds = array<i64: 1, 4, 18, 4>}, {pipeline_mode = #tpu.pipeline_mode<synchronous>, transform_indices = @transform_4, window_bounds = array<i64: 9, 4, 128>}, {pipeline_mode = #tpu.pipeline_mode<synchronous>, transform_indices = @transform_5, window_bounds = array<i64: 9, 4, 128>}, {pipeline_mode = #tpu.pipeline_mode<synchronous>, transform_indices = @transform_6, window_bounds = array<i64: 1, 128>}, {pipeline_mode = #tpu.pipeline_mode<synchronous>, transform_indices = @transform_7, window_bounds = array<i64: 9, 128, 128>}, {pipeline_mode = #tpu.pipeline_mode<synchronous>, transform_indices = @transform_8, window_bounds = array<i64: 1, 128>}, {transform_indices = @transform_9, window_bounds = array<i64: 1, 8, 16, 128>}]} {
    %c0 = arith.constant 0 : index
    %c0_0 = arith.constant 0 : index
    %c0_1 = arith.constant 0 : index
    %c0_2 = arith.constant 0 : index
    %0 = vector.load %arg2[%c0, %c0_0, %c0_1, %c0_2] : memref<1x8x18x4xbf16, #tpu.memory_space<vmem>>, vector<1x8x18x4xbf16>
    %1 = vector.shape_cast %0 : vector<1x8x18x4xbf16> to vector<8x18x4xbf16>
    %c0_3 = arith.constant 0 : index
    %c0_4 = arith.constant 0 : index
    %c0_5 = arith.constant 0 : index
    %c0_6 = arith.constant 0 : index
    %2 = vector.load %arg3[%c0_3, %c0_4, %c0_5, %c0_6] : memref<1x4x18x4xbf16, #tpu.memory_space<vmem>>, vector<1x4x18x4xbf16>
    %3 = vector.shape_cast %2 : vector<1x4x18x4xbf16> to vector<4x18x4xbf16>
    %4 = tpu.concatenate %1, %3 in 0 : vector<8x18x4xbf16>, vector<4x18x4xbf16> -> vector<12x18x4xbf16>
    %5 = vector.extract_strided_slice %4 {offsets = [0, 0, 0], sizes = [10, 16, 4], strides = [1, 1, 1]} : vector<12x18x4xbf16> to vector<10x16x4xbf16>
    %6 = vector.shape_cast %5 : vector<10x16x4xbf16> to vector<160x4xbf16>
    %c0_7 = arith.constant 0 : index
    %c0_8 = arith.constant 0 : index
    %c0_9 = arith.constant 0 : index
    %7 = vector.load %arg6[%c0_7, %c0_8, %c0_9] : memref<9x4x128xbf16, #tpu.memory_space<vmem>>, vector<1x4x128xbf16>
    %8 = vector.shape_cast %7 : vector<1x4x128xbf16> to vector<4x128xbf16>
    %cst = arith.constant dense<0.000000e+00> : vector<160x128xf32>
    %9 = tpu.matmul %6, %8, %cst {dimension_numbers = #tpu.dot_dimension_numbers<[1], [0], [0], [1], [0, 0, 1, 1], [], []>} : vector<160x4xbf16>, vector<4x128xbf16>, vector<160x128xf32> -> vector<160x128xf32>
    %10 = vector.extract_strided_slice %4 {offsets = [0, 1, 0], sizes = [10, 16, 4], strides = [1, 1, 1]} : vector<12x18x4xbf16> to vector<10x16x4xbf16>
    %11 = vector.shape_cast %10 : vector<10x16x4xbf16> to vector<160x4xbf16>
    %c1 = arith.constant 1 : index
    %c0_10 = arith.constant 0 : index
    %c0_11 = arith.constant 0 : index
    %12 = vector.load %arg6[%c1, %c0_10, %c0_11] : memref<9x4x128xbf16, #tpu.memory_space<vmem>>, vector<1x4x128xbf16>
    %13 = vector.shape_cast %12 : vector<1x4x128xbf16> to vector<4x128xbf16>
    %cst_12 = arith.constant dense<0.000000e+00> : vector<160x128xf32>
    %14 = tpu.matmul %11, %13, %cst_12 {dimension_numbers = #tpu.dot_dimension_numbers<[1], [0], [0], [1], [0, 0, 1, 1], [], []>} : vector<160x4xbf16>, vector<4x128xbf16>, vector<160x128xf32> -> vector<160x128xf32>
    %15 = arith.addf %9, %14 : vector<160x128xf32>
    %16 = vector.extract_strided_slice %4 {offsets = [0, 2, 0], sizes = [10, 16, 4], strides = [1, 1, 1]} : vector<12x18x4xbf16> to vector<10x16x4xbf16>
    %17 = vector.shape_cast %16 : vector<10x16x4xbf16> to vector<160x4xbf16>
    %c2 = arith.constant 2 : index
    %c0_13 = arith.constant 0 : index
    %c0_14 = arith.constant 0 : index
    %18 = vector.load %arg6[%c2, %c0_13, %c0_14] : memref<9x4x128xbf16, #tpu.memory_space<vmem>>, vector<1x4x128xbf16>
    %19 = vector.shape_cast %18 : vector<1x4x128xbf16> to vector<4x128xbf16>
    %cst_15 = arith.constant dense<0.000000e+00> : vector<160x128xf32>
    %20 = tpu.matmul %17, %19, %cst_15 {dimension_numbers = #tpu.dot_dimension_numbers<[1], [0], [0], [1], [0, 0, 1, 1], [], []>} : vector<160x4xbf16>, vector<4x128xbf16>, vector<160x128xf32> -> vector<160x128xf32>
    %21 = arith.addf %15, %20 : vector<160x128xf32>
    %22 = vector.extract_strided_slice %4 {offsets = [1, 0, 0], sizes = [10, 16, 4], strides = [1, 1, 1]} : vector<12x18x4xbf16> to vector<10x16x4xbf16>
    %23 = vector.shape_cast %22 : vector<10x16x4xbf16> to vector<160x4xbf16>
    %c3 = arith.constant 3 : index
    %c0_16 = arith.constant 0 : index
    %c0_17 = arith.constant 0 : index
    %24 = vector.load %arg6[%c3, %c0_16, %c0_17] : memref<9x4x128xbf16, #tpu.memory_space<vmem>>, vector<1x4x128xbf16>
    %25 = vector.shape_cast %24 : vector<1x4x128xbf16> to vector<4x128xbf16>
    %cst_18 = arith.constant dense<0.000000e+00> : vector<160x128xf32>
    %26 = tpu.matmul %23, %25, %cst_18 {dimension_numbers = #tpu.dot_dimension_numbers<[1], [0], [0], [1], [0, 0, 1, 1], [], []>} : vector<160x4xbf16>, vector<4x128xbf16>, vector<160x128xf32> -> vector<160x128xf32>
    %27 = arith.addf %21, %26 : vector<160x128xf32>
    %28 = vector.extract_strided_slice %4 {offsets = [1, 1, 0], sizes = [10, 16, 4], strides = [1, 1, 1]} : vector<12x18x4xbf16> to vector<10x16x4xbf16>
    %29 = vector.shape_cast %28 : vector<10x16x4xbf16> to vector<160x4xbf16>
    %c4 = arith.constant 4 : index
    %c0_19 = arith.constant 0 : index
    %c0_20 = arith.constant 0 : index
    %30 = vector.load %arg6[%c4, %c0_19, %c0_20] : memref<9x4x128xbf16, #tpu.memory_space<vmem>>, vector<1x4x128xbf16>
    %31 = vector.shape_cast %30 : vector<1x4x128xbf16> to vector<4x128xbf16>
    %cst_21 = arith.constant dense<0.000000e+00> : vector<160x128xf32>
    %32 = tpu.matmul %29, %31, %cst_21 {dimension_numbers = #tpu.dot_dimension_numbers<[1], [0], [0], [1], [0, 0, 1, 1], [], []>} : vector<160x4xbf16>, vector<4x128xbf16>, vector<160x128xf32> -> vector<160x128xf32>
    %33 = arith.addf %27, %32 : vector<160x128xf32>
    %34 = vector.extract_strided_slice %4 {offsets = [1, 2, 0], sizes = [10, 16, 4], strides = [1, 1, 1]} : vector<12x18x4xbf16> to vector<10x16x4xbf16>
    %35 = vector.shape_cast %34 : vector<10x16x4xbf16> to vector<160x4xbf16>
    %c5 = arith.constant 5 : index
    %c0_22 = arith.constant 0 : index
    %c0_23 = arith.constant 0 : index
    %36 = vector.load %arg6[%c5, %c0_22, %c0_23] : memref<9x4x128xbf16, #tpu.memory_space<vmem>>, vector<1x4x128xbf16>
    %37 = vector.shape_cast %36 : vector<1x4x128xbf16> to vector<4x128xbf16>
    %cst_24 = arith.constant dense<0.000000e+00> : vector<160x128xf32>
    %38 = tpu.matmul %35, %37, %cst_24 {dimension_numbers = #tpu.dot_dimension_numbers<[1], [0], [0], [1], [0, 0, 1, 1], [], []>} : vector<160x4xbf16>, vector<4x128xbf16>, vector<160x128xf32> -> vector<160x128xf32>
    %39 = arith.addf %33, %38 : vector<160x128xf32>
    %40 = vector.extract_strided_slice %4 {offsets = [2, 0, 0], sizes = [10, 16, 4], strides = [1, 1, 1]} : vector<12x18x4xbf16> to vector<10x16x4xbf16>
    %41 = vector.shape_cast %40 : vector<10x16x4xbf16> to vector<160x4xbf16>
    %c6 = arith.constant 6 : index
    %c0_25 = arith.constant 0 : index
    %c0_26 = arith.constant 0 : index
    %42 = vector.load %arg6[%c6, %c0_25, %c0_26] : memref<9x4x128xbf16, #tpu.memory_space<vmem>>, vector<1x4x128xbf16>
    %43 = vector.shape_cast %42 : vector<1x4x128xbf16> to vector<4x128xbf16>
    %cst_27 = arith.constant dense<0.000000e+00> : vector<160x128xf32>
    %44 = tpu.matmul %41, %43, %cst_27 {dimension_numbers = #tpu.dot_dimension_numbers<[1], [0], [0], [1], [0, 0, 1, 1], [], []>} : vector<160x4xbf16>, vector<4x128xbf16>, vector<160x128xf32> -> vector<160x128xf32>
    %45 = arith.addf %39, %44 : vector<160x128xf32>
    %46 = vector.extract_strided_slice %4 {offsets = [2, 1, 0], sizes = [10, 16, 4], strides = [1, 1, 1]} : vector<12x18x4xbf16> to vector<10x16x4xbf16>
    %47 = vector.shape_cast %46 : vector<10x16x4xbf16> to vector<160x4xbf16>
    %c7 = arith.constant 7 : index
    %c0_28 = arith.constant 0 : index
    %c0_29 = arith.constant 0 : index
    %48 = vector.load %arg6[%c7, %c0_28, %c0_29] : memref<9x4x128xbf16, #tpu.memory_space<vmem>>, vector<1x4x128xbf16>
    %49 = vector.shape_cast %48 : vector<1x4x128xbf16> to vector<4x128xbf16>
    %cst_30 = arith.constant dense<0.000000e+00> : vector<160x128xf32>
    %50 = tpu.matmul %47, %49, %cst_30 {dimension_numbers = #tpu.dot_dimension_numbers<[1], [0], [0], [1], [0, 0, 1, 1], [], []>} : vector<160x4xbf16>, vector<4x128xbf16>, vector<160x128xf32> -> vector<160x128xf32>
    %51 = arith.addf %45, %50 : vector<160x128xf32>
    %52 = vector.extract_strided_slice %4 {offsets = [2, 2, 0], sizes = [10, 16, 4], strides = [1, 1, 1]} : vector<12x18x4xbf16> to vector<10x16x4xbf16>
    %53 = vector.shape_cast %52 : vector<10x16x4xbf16> to vector<160x4xbf16>
    %c8 = arith.constant 8 : index
    %c0_31 = arith.constant 0 : index
    %c0_32 = arith.constant 0 : index
    %54 = vector.load %arg6[%c8, %c0_31, %c0_32] : memref<9x4x128xbf16, #tpu.memory_space<vmem>>, vector<1x4x128xbf16>
    %55 = vector.shape_cast %54 : vector<1x4x128xbf16> to vector<4x128xbf16>
    %cst_33 = arith.constant dense<0.000000e+00> : vector<160x128xf32>
    %56 = tpu.matmul %53, %55, %cst_33 {dimension_numbers = #tpu.dot_dimension_numbers<[1], [0], [0], [1], [0, 0, 1, 1], [], []>} : vector<160x4xbf16>, vector<4x128xbf16>, vector<160x128xf32> -> vector<160x128xf32>
    %57 = arith.addf %51, %56 : vector<160x128xf32>
    %c0_34 = arith.constant 0 : index
    %c0_35 = arith.constant 0 : index
    %c0_36 = arith.constant 0 : index
    %c0_37 = arith.constant 0 : index
    %58 = vector.load %arg4[%c0_34, %c0_35, %c0_36, %c0_37] : memref<1x8x18x4xbf16, #tpu.memory_space<vmem>>, vector<1x8x18x4xbf16>
    %59 = vector.shape_cast %58 : vector<1x8x18x4xbf16> to vector<8x18x4xbf16>
    %c0_38 = arith.constant 0 : index
    %c0_39 = arith.constant 0 : index
    %c0_40 = arith.constant 0 : index
    %c0_41 = arith.constant 0 : index
    %60 = vector.load %arg5[%c0_38, %c0_39, %c0_40, %c0_41] : memref<1x4x18x4xbf16, #tpu.memory_space<vmem>>, vector<1x4x18x4xbf16>
    %61 = vector.shape_cast %60 : vector<1x4x18x4xbf16> to vector<4x18x4xbf16>
    %62 = tpu.concatenate %59, %61 in 0 : vector<8x18x4xbf16>, vector<4x18x4xbf16> -> vector<12x18x4xbf16>
    %63 = vector.extract_strided_slice %62 {offsets = [0, 0, 0], sizes = [10, 16, 4], strides = [1, 1, 1]} : vector<12x18x4xbf16> to vector<10x16x4xbf16>
    %64 = vector.shape_cast %63 : vector<10x16x4xbf16> to vector<160x4xbf16>
    %c0_42 = arith.constant 0 : index
    %c0_43 = arith.constant 0 : index
    %c0_44 = arith.constant 0 : index
    %65 = vector.load %arg7[%c0_42, %c0_43, %c0_44] : memref<9x4x128xbf16, #tpu.memory_space<vmem>>, vector<1x4x128xbf16>
    %66 = vector.shape_cast %65 : vector<1x4x128xbf16> to vector<4x128xbf16>
    %cst_45 = arith.constant dense<0.000000e+00> : vector<160x128xf32>
    %67 = tpu.matmul %64, %66, %cst_45 {dimension_numbers = #tpu.dot_dimension_numbers<[1], [0], [0], [1], [0, 0, 1, 1], [], []>} : vector<160x4xbf16>, vector<4x128xbf16>, vector<160x128xf32> -> vector<160x128xf32>
    %68 = arith.addf %57, %67 : vector<160x128xf32>
    %69 = vector.extract_strided_slice %62 {offsets = [0, 1, 0], sizes = [10, 16, 4], strides = [1, 1, 1]} : vector<12x18x4xbf16> to vector<10x16x4xbf16>
    %70 = vector.shape_cast %69 : vector<10x16x4xbf16> to vector<160x4xbf16>
    %c1_46 = arith.constant 1 : index
    %c0_47 = arith.constant 0 : index
    %c0_48 = arith.constant 0 : index
    %71 = vector.load %arg7[%c1_46, %c0_47, %c0_48] : memref<9x4x128xbf16, #tpu.memory_space<vmem>>, vector<1x4x128xbf16>
    %72 = vector.shape_cast %71 : vector<1x4x128xbf16> to vector<4x128xbf16>
    %cst_49 = arith.constant dense<0.000000e+00> : vector<160x128xf32>
    %73 = tpu.matmul %70, %72, %cst_49 {dimension_numbers = #tpu.dot_dimension_numbers<[1], [0], [0], [1], [0, 0, 1, 1], [], []>} : vector<160x4xbf16>, vector<4x128xbf16>, vector<160x128xf32> -> vector<160x128xf32>
    %74 = arith.addf %68, %73 : vector<160x128xf32>
    %75 = vector.extract_strided_slice %62 {offsets = [0, 2, 0], sizes = [10, 16, 4], strides = [1, 1, 1]} : vector<12x18x4xbf16> to vector<10x16x4xbf16>
    %76 = vector.shape_cast %75 : vector<10x16x4xbf16> to vector<160x4xbf16>
    %c2_50 = arith.constant 2 : index
    %c0_51 = arith.constant 0 : index
    %c0_52 = arith.constant 0 : index
    %77 = vector.load %arg7[%c2_50, %c0_51, %c0_52] : memref<9x4x128xbf16, #tpu.memory_space<vmem>>, vector<1x4x128xbf16>
    %78 = vector.shape_cast %77 : vector<1x4x128xbf16> to vector<4x128xbf16>
    %cst_53 = arith.constant dense<0.000000e+00> : vector<160x128xf32>
    %79 = tpu.matmul %76, %78, %cst_53 {dimension_numbers = #tpu.dot_dimension_numbers<[1], [0], [0], [1], [0, 0, 1, 1], [], []>} : vector<160x4xbf16>, vector<4x128xbf16>, vector<160x128xf32> -> vector<160x128xf32>
    %80 = arith.addf %74, %79 : vector<160x128xf32>
    %81 = vector.extract_strided_slice %62 {offsets = [1, 0, 0], sizes = [10, 16, 4], strides = [1, 1, 1]} : vector<12x18x4xbf16> to vector<10x16x4xbf16>
    %82 = vector.shape_cast %81 : vector<10x16x4xbf16> to vector<160x4xbf16>
    %c3_54 = arith.constant 3 : index
    %c0_55 = arith.constant 0 : index
    %c0_56 = arith.constant 0 : index
    %83 = vector.load %arg7[%c3_54, %c0_55, %c0_56] : memref<9x4x128xbf16, #tpu.memory_space<vmem>>, vector<1x4x128xbf16>
    %84 = vector.shape_cast %83 : vector<1x4x128xbf16> to vector<4x128xbf16>
    %cst_57 = arith.constant dense<0.000000e+00> : vector<160x128xf32>
    %85 = tpu.matmul %82, %84, %cst_57 {dimension_numbers = #tpu.dot_dimension_numbers<[1], [0], [0], [1], [0, 0, 1, 1], [], []>} : vector<160x4xbf16>, vector<4x128xbf16>, vector<160x128xf32> -> vector<160x128xf32>
    %86 = arith.addf %80, %85 : vector<160x128xf32>
    %87 = vector.extract_strided_slice %62 {offsets = [1, 1, 0], sizes = [10, 16, 4], strides = [1, 1, 1]} : vector<12x18x4xbf16> to vector<10x16x4xbf16>
    %88 = vector.shape_cast %87 : vector<10x16x4xbf16> to vector<160x4xbf16>
    %c4_58 = arith.constant 4 : index
    %c0_59 = arith.constant 0 : index
    %c0_60 = arith.constant 0 : index
    %89 = vector.load %arg7[%c4_58, %c0_59, %c0_60] : memref<9x4x128xbf16, #tpu.memory_space<vmem>>, vector<1x4x128xbf16>
    %90 = vector.shape_cast %89 : vector<1x4x128xbf16> to vector<4x128xbf16>
    %cst_61 = arith.constant dense<0.000000e+00> : vector<160x128xf32>
    %91 = tpu.matmul %88, %90, %cst_61 {dimension_numbers = #tpu.dot_dimension_numbers<[1], [0], [0], [1], [0, 0, 1, 1], [], []>} : vector<160x4xbf16>, vector<4x128xbf16>, vector<160x128xf32> -> vector<160x128xf32>
    %92 = arith.addf %86, %91 : vector<160x128xf32>
    %93 = vector.extract_strided_slice %62 {offsets = [1, 2, 0], sizes = [10, 16, 4], strides = [1, 1, 1]} : vector<12x18x4xbf16> to vector<10x16x4xbf16>
    %94 = vector.shape_cast %93 : vector<10x16x4xbf16> to vector<160x4xbf16>
    %c5_62 = arith.constant 5 : index
    %c0_63 = arith.constant 0 : index
    %c0_64 = arith.constant 0 : index
    %95 = vector.load %arg7[%c5_62, %c0_63, %c0_64] : memref<9x4x128xbf16, #tpu.memory_space<vmem>>, vector<1x4x128xbf16>
    %96 = vector.shape_cast %95 : vector<1x4x128xbf16> to vector<4x128xbf16>
    %cst_65 = arith.constant dense<0.000000e+00> : vector<160x128xf32>
    %97 = tpu.matmul %94, %96, %cst_65 {dimension_numbers = #tpu.dot_dimension_numbers<[1], [0], [0], [1], [0, 0, 1, 1], [], []>} : vector<160x4xbf16>, vector<4x128xbf16>, vector<160x128xf32> -> vector<160x128xf32>
    %98 = arith.addf %92, %97 : vector<160x128xf32>
    %99 = vector.extract_strided_slice %62 {offsets = [2, 0, 0], sizes = [10, 16, 4], strides = [1, 1, 1]} : vector<12x18x4xbf16> to vector<10x16x4xbf16>
    %100 = vector.shape_cast %99 : vector<10x16x4xbf16> to vector<160x4xbf16>
    %c6_66 = arith.constant 6 : index
    %c0_67 = arith.constant 0 : index
    %c0_68 = arith.constant 0 : index
    %101 = vector.load %arg7[%c6_66, %c0_67, %c0_68] : memref<9x4x128xbf16, #tpu.memory_space<vmem>>, vector<1x4x128xbf16>
    %102 = vector.shape_cast %101 : vector<1x4x128xbf16> to vector<4x128xbf16>
    %cst_69 = arith.constant dense<0.000000e+00> : vector<160x128xf32>
    %103 = tpu.matmul %100, %102, %cst_69 {dimension_numbers = #tpu.dot_dimension_numbers<[1], [0], [0], [1], [0, 0, 1, 1], [], []>} : vector<160x4xbf16>, vector<4x128xbf16>, vector<160x128xf32> -> vector<160x128xf32>
    %104 = arith.addf %98, %103 : vector<160x128xf32>
    %105 = vector.extract_strided_slice %62 {offsets = [2, 1, 0], sizes = [10, 16, 4], strides = [1, 1, 1]} : vector<12x18x4xbf16> to vector<10x16x4xbf16>
    %106 = vector.shape_cast %105 : vector<10x16x4xbf16> to vector<160x4xbf16>
    %c7_70 = arith.constant 7 : index
    %c0_71 = arith.constant 0 : index
    %c0_72 = arith.constant 0 : index
    %107 = vector.load %arg7[%c7_70, %c0_71, %c0_72] : memref<9x4x128xbf16, #tpu.memory_space<vmem>>, vector<1x4x128xbf16>
    %108 = vector.shape_cast %107 : vector<1x4x128xbf16> to vector<4x128xbf16>
    %cst_73 = arith.constant dense<0.000000e+00> : vector<160x128xf32>
    %109 = tpu.matmul %106, %108, %cst_73 {dimension_numbers = #tpu.dot_dimension_numbers<[1], [0], [0], [1], [0, 0, 1, 1], [], []>} : vector<160x4xbf16>, vector<4x128xbf16>, vector<160x128xf32> -> vector<160x128xf32>
    %110 = arith.addf %104, %109 : vector<160x128xf32>
    %111 = vector.extract_strided_slice %62 {offsets = [2, 2, 0], sizes = [10, 16, 4], strides = [1, 1, 1]} : vector<12x18x4xbf16> to vector<10x16x4xbf16>
    %112 = vector.shape_cast %111 : vector<10x16x4xbf16> to vector<160x4xbf16>
    %c8_74 = arith.constant 8 : index
    %c0_75 = arith.constant 0 : index
    %c0_76 = arith.constant 0 : index
    %113 = vector.load %arg7[%c8_74, %c0_75, %c0_76] : memref<9x4x128xbf16, #tpu.memory_space<vmem>>, vector<1x4x128xbf16>
    %114 = vector.shape_cast %113 : vector<1x4x128xbf16> to vector<4x128xbf16>
    %cst_77 = arith.constant dense<0.000000e+00> : vector<160x128xf32>
    %115 = tpu.matmul %112, %114, %cst_77 {dimension_numbers = #tpu.dot_dimension_numbers<[1], [0], [0], [1], [0, 0, 1, 1], [], []>} : vector<160x4xbf16>, vector<4x128xbf16>, vector<160x128xf32> -> vector<160x128xf32>
    %116 = arith.addf %110, %115 : vector<160x128xf32>
    %c0_78 = arith.constant 0 : index
    %c0_79 = arith.constant 0 : index
    %117 = vector.load %arg8[%c0_78, %c0_79] : memref<1x128xf32, #tpu.memory_space<vmem>>, vector<1x128xf32>
    %118 = vector.broadcast %117 : vector<1x128xf32> to vector<160x128xf32>
    %119 = arith.addf %116, %118 : vector<160x128xf32>
    %cst_80 = arith.constant 0.000000e+00 : f32
    %120 = vector.broadcast %cst_80 : f32 to vector<160x128xf32>
    %121 = arith.maximumf %119, %120 : vector<160x128xf32>
    %122 = vector.shape_cast %121 : vector<160x128xf32> to vector<10x16x128xf32>
    %123 = arith.truncf %122 : vector<10x16x128xf32> to vector<10x16x128xbf16>
    %c0_81 = arith.constant 0 : index
    %c16 = arith.constant 16 : index
    %c0_82 = arith.constant 0 : index
    %124 = vector.load %arg12[%c0_81, %c16, %c0_82] : memref<10x48x128xbf16, #tpu.memory_space<vmem>>, vector<10x16x128xbf16>
    tpu.vector_store %arg12[%c0_81, %c16, %c0_82], %123 {strides = array<i32>} : memref<10x48x128xbf16, #tpu.memory_space<vmem>>, vector<10x16x128xbf16>,
    %cst_83 = arith.constant 0.000000e+00 : bf16
    %125 = vector.broadcast %cst_83 : bf16 to vector<10x1x128xbf16>
    %c0_84 = arith.constant 0 : index
    %c15 = arith.constant 15 : index
    %c0_85 = arith.constant 0 : index
    %126 = vector.load %arg12[%c0_84, %c15, %c0_85] : memref<10x48x128xbf16, #tpu.memory_space<vmem>>, vector<10x1x128xbf16>
    tpu.vector_store %arg12[%c0_84, %c15, %c0_85], %125 {strides = array<i32>} : memref<10x48x128xbf16, #tpu.memory_space<vmem>>, vector<10x1x128xbf16>,
    %c0_86 = arith.constant 0 : index
    %c32 = arith.constant 32 : index
    %c0_87 = arith.constant 0 : index
    %127 = vector.load %arg12[%c0_86, %c32, %c0_87] : memref<10x48x128xbf16, #tpu.memory_space<vmem>>, vector<10x1x128xbf16>
    tpu.vector_store %arg12[%c0_86, %c32, %c0_87], %125 {strides = array<i32>} : memref<10x48x128xbf16, #tpu.memory_space<vmem>>, vector<10x1x128xbf16>,
    %cst_88 = arith.constant 0.000000e+00 : bf16
    %128 = vector.broadcast %cst_88 : bf16 to vector<1x16x128xbf16>
    %c0_i32 = arith.constant 0 : i32
    %129 = arith.cmpi eq, %arg1, %c0_i32 : i32
    %130 = arith.extui %129 : i1 to i32
    %c0_i32_89 = arith.constant 0 : i32
    %131 = arith.cmpi ne, %130, %c0_i32_89 : i32
    scf.if %131 {
      %c0_160 = arith.constant 0 : index
      %c16_161 = arith.constant 16 : index
      %c0_162 = arith.constant 0 : index
      %196 = vector.load %arg12[%c0_160, %c16_161, %c0_162] : memref<10x48x128xbf16, #tpu.memory_space<vmem>>, vector<1x16x128xbf16>
      tpu.vector_store %arg12[%c0_160, %c16_161, %c0_162], %128 {strides = array<i32>} : memref<10x48x128xbf16, #tpu.memory_space<vmem>>, vector<1x16x128xbf16>,
    } else {
    }
    %c1_i32 = arith.constant 1 : i32
    %132 = arith.cmpi eq, %arg1, %c1_i32 : i32
    %133 = arith.extui %132 : i1 to i32
    %c0_i32_90 = arith.constant 0 : i32
    %134 = arith.cmpi ne, %133, %c0_i32_90 : i32
    scf.if %134 {
      %c9 = arith.constant 9 : index
      %c16_160 = arith.constant 16 : index
      %c0_161 = arith.constant 0 : index
      %196 = vector.load %arg12[%c9, %c16_160, %c0_161] : memref<10x48x128xbf16, #tpu.memory_space<vmem>>, vector<1x16x128xbf16>
      tpu.vector_store %arg12[%c9, %c16_160, %c0_161], %128 {strides = array<i32>} : memref<10x48x128xbf16, #tpu.memory_space<vmem>>, vector<1x16x128xbf16>,
    } else {
    }
    %c0_91 = arith.constant 0 : index
    %c15_92 = arith.constant 15 : index
    %c0_93 = arith.constant 0 : index
    %135 = vector.load %arg12[%c0_91, %c15_92, %c0_93] : memref<10x48x128xbf16, #tpu.memory_space<vmem>>, vector<8x16x128xbf16>
    %136 = vector.shape_cast %135 : vector<8x16x128xbf16> to vector<128x128xbf16>
    %c0_94 = arith.constant 0 : index
    %c0_95 = arith.constant 0 : index
    %c0_96 = arith.constant 0 : index
    %137 = vector.load %arg9[%c0_94, %c0_95, %c0_96] : memref<9x128x128xbf16, #tpu.memory_space<vmem>>, vector<1x128x128xbf16>
    %138 = vector.shape_cast %137 : vector<1x128x128xbf16> to vector<128x128xbf16>
    %cst_97 = arith.constant dense<0.000000e+00> : vector<128x128xf32>
    %139 = tpu.matmul %136, %138, %cst_97 {dimension_numbers = #tpu.dot_dimension_numbers<[1], [0], [0], [1], [0, 0, 1, 1], [], []>} : vector<128x128xbf16>, vector<128x128xbf16>, vector<128x128xf32> -> vector<128x128xf32>
    %c0_98 = arith.constant 0 : index
    %c16_99 = arith.constant 16 : index
    %c0_100 = arith.constant 0 : index
    %140 = vector.load %arg12[%c0_98, %c16_99, %c0_100] : memref<10x48x128xbf16, #tpu.memory_space<vmem>>, vector<8x16x128xbf16>
    %141 = vector.shape_cast %140 : vector<8x16x128xbf16> to vector<128x128xbf16>
    %c1_101 = arith.constant 1 : index
    %c0_102 = arith.constant 0 : index
    %c0_103 = arith.constant 0 : index
    %142 = vector.load %arg9[%c1_101, %c0_102, %c0_103] : memref<9x128x128xbf16, #tpu.memory_space<vmem>>, vector<1x128x128xbf16>
    %143 = vector.shape_cast %142 : vector<1x128x128xbf16> to vector<128x128xbf16>
    %cst_104 = arith.constant dense<0.000000e+00> : vector<128x128xf32>
    %144 = tpu.matmul %141, %143, %cst_104 {dimension_numbers = #tpu.dot_dimension_numbers<[1], [0], [0], [1], [0, 0, 1, 1], [], []>} : vector<128x128xbf16>, vector<128x128xbf16>, vector<128x128xf32> -> vector<128x128xf32>
    %145 = arith.addf %139, %144 : vector<128x128xf32>
    %c0_105 = arith.constant 0 : index
    %c17 = arith.constant 17 : index
    %c0_106 = arith.constant 0 : index
    %146 = vector.load %arg12[%c0_105, %c17, %c0_106] : memref<10x48x128xbf16, #tpu.memory_space<vmem>>, vector<8x16x128xbf16>
    %147 = vector.shape_cast %146 : vector<8x16x128xbf16> to vector<128x128xbf16>
    %c2_107 = arith.constant 2 : index
    %c0_108 = arith.constant 0 : index
    %c0_109 = arith.constant 0 : index
    %148 = vector.load %arg9[%c2_107, %c0_108, %c0_109] : memref<9x128x128xbf16, #tpu.memory_space<vmem>>, vector<1x128x128xbf16>
    %149 = vector.shape_cast %148 : vector<1x128x128xbf16> to vector<128x128xbf16>
    %cst_110 = arith.constant dense<0.000000e+00> : vector<128x128xf32>
    %150 = tpu.matmul %147, %149, %cst_110 {dimension_numbers = #tpu.dot_dimension_numbers<[1], [0], [0], [1], [0, 0, 1, 1], [], []>} : vector<128x128xbf16>, vector<128x128xbf16>, vector<128x128xf32> -> vector<128x128xf32>
    %151 = arith.addf %145, %150 : vector<128x128xf32>
    %c1_111 = arith.constant 1 : index
    %c15_112 = arith.constant 15 : index
    %c0_113 = arith.constant 0 : index
    %152 = vector.load %arg12[%c1_111, %c15_112, %c0_113] : memref<10x48x128xbf16, #tpu.memory_space<vmem>>, vector<8x16x128xbf16>
    %153 = vector.shape_cast %152 : vector<8x16x128xbf16> to vector<128x128xbf16>
    %c3_114 = arith.constant 3 : index
    %c0_115 = arith.constant 0 : index
    %c0_116 = arith.constant 0 : index
    %154 = vector.load %arg9[%c3_114, %c0_115, %c0_116] : memref<9x128x128xbf16, #tpu.memory_space<vmem>>, vector<1x128x128xbf16>
    %155 = vector.shape_cast %154 : vector<1x128x128xbf16> to vector<128x128xbf16>
    %cst_117 = arith.constant dense<0.000000e+00> : vector<128x128xf32>
    %156 = tpu.matmul %153, %155, %cst_117 {dimension_numbers = #tpu.dot_dimension_numbers<[1], [0], [0], [1], [0, 0, 1, 1], [], []>} : vector<128x128xbf16>, vector<128x128xbf16>, vector<128x128xf32> -> vector<128x128xf32>
    %157 = arith.addf %151, %156 : vector<128x128xf32>
    %c1_118 = arith.constant 1 : index
    %c16_119 = arith.constant 16 : index
    %c0_120 = arith.constant 0 : index
    %158 = vector.load %arg12[%c1_118, %c16_119, %c0_120] : memref<10x48x128xbf16, #tpu.memory_space<vmem>>, vector<8x16x128xbf16>
    %159 = vector.shape_cast %158 : vector<8x16x128xbf16> to vector<128x128xbf16>
    %c4_121 = arith.constant 4 : index
    %c0_122 = arith.constant 0 : index
    %c0_123 = arith.constant 0 : index
    %160 = vector.load %arg9[%c4_121, %c0_122, %c0_123] : memref<9x128x128xbf16, #tpu.memory_space<vmem>>, vector<1x128x128xbf16>
    %161 = vector.shape_cast %160 : vector<1x128x128xbf16> to vector<128x128xbf16>
    %cst_124 = arith.constant dense<0.000000e+00> : vector<128x128xf32>
    %162 = tpu.matmul %159, %161, %cst_124 {dimension_numbers = #tpu.dot_dimension_numbers<[1], [0], [0], [1], [0, 0, 1, 1], [], []>} : vector<128x128xbf16>, vector<128x128xbf16>, vector<128x128xf32> -> vector<128x128xf32>
    %163 = arith.addf %157, %162 : vector<128x128xf32>
    %c1_125 = arith.constant 1 : index
    %c17_126 = arith.constant 17 : index
    %c0_127 = arith.constant 0 : index
    %164 = vector.load %arg12[%c1_125, %c17_126, %c0_127] : memref<10x48x128xbf16, #tpu.memory_space<vmem>>, vector<8x16x128xbf16>
    %165 = vector.shape_cast %164 : vector<8x16x128xbf16> to vector<128x128xbf16>
    %c5_128 = arith.constant 5 : index
    %c0_129 = arith.constant 0 : index
    %c0_130 = arith.constant 0 : index
    %166 = vector.load %arg9[%c5_128, %c0_129, %c0_130] : memref<9x128x128xbf16, #tpu.memory_space<vmem>>, vector<1x128x128xbf16>
    %167 = vector.shape_cast %166 : vector<1x128x128xbf16> to vector<128x128xbf16>
    %cst_131 = arith.constant dense<0.000000e+00> : vector<128x128xf32>
    %168 = tpu.matmul %165, %167, %cst_131 {dimension_numbers = #tpu.dot_dimension_numbers<[1], [0], [0], [1], [0, 0, 1, 1], [], []>} : vector<128x128xbf16>, vector<128x128xbf16>, vector<128x128xf32> -> vector<128x128xf32>
    %169 = arith.addf %163, %168 : vector<128x128xf32>
    %c2_132 = arith.constant 2 : index
    %c15_133 = arith.constant 15 : index
    %c0_134 = arith.constant 0 : index
    %170 = vector.load %arg12[%c2_132, %c15_133, %c0_134] : memref<10x48x128xbf16, #tpu.memory_space<vmem>>, vector<8x16x128xbf16>
    %171 = vector.shape_cast %170 : vector<8x16x128xbf16> to vector<128x128xbf16>
    %c6_135 = arith.constant 6 : index
    %c0_136 = arith.constant 0 : index
    %c0_137 = arith.constant 0 : index
    %172 = vector.load %arg9[%c6_135, %c0_136, %c0_137] : memref<9x128x128xbf16, #tpu.memory_space<vmem>>, vector<1x128x128xbf16>
    %173 = vector.shape_cast %172 : vector<1x128x128xbf16> to vector<128x128xbf16>
    %cst_138 = arith.constant dense<0.000000e+00> : vector<128x128xf32>
    %174 = tpu.matmul %171, %173, %cst_138 {dimension_numbers = #tpu.dot_dimension_numbers<[1], [0], [0], [1], [0, 0, 1, 1], [], []>} : vector<128x128xbf16>, vector<128x128xbf16>, vector<128x128xf32> -> vector<128x128xf32>
    %175 = arith.addf %169, %174 : vector<128x128xf32>
    %c2_139 = arith.constant 2 : index
    %c16_140 = arith.constant 16 : index
    %c0_141 = arith.constant 0 : index
    %176 = vector.load %arg12[%c2_139, %c16_140, %c0_141] : memref<10x48x128xbf16, #tpu.memory_space<vmem>>, vector<8x16x128xbf16>
    %177 = vector.shape_cast %176 : vector<8x16x128xbf16> to vector<128x128xbf16>
    %c7_142 = arith.constant 7 : index
    %c0_143 = arith.constant 0 : index
    %c0_144 = arith.constant 0 : index
    %178 = vector.load %arg9[%c7_142, %c0_143, %c0_144] : memref<9x128x128xbf16, #tpu.memory_space<vmem>>, vector<1x128x128xbf16>
    %179 = vector.shape_cast %178 : vector<1x128x128xbf16> to vector<128x128xbf16>
    %cst_145 = arith.constant dense<0.000000e+00> : vector<128x128xf32>
    %180 = tpu.matmul %177, %179, %cst_145 {dimension_numbers = #tpu.dot_dimension_numbers<[1], [0], [0], [1], [0, 0, 1, 1], [], []>} : vector<128x128xbf16>, vector<128x128xbf16>, vector<128x128xf32> -> vector<128x128xf32>
    %181 = arith.addf %175, %180 : vector<128x128xf32>
    %c2_146 = arith.constant 2 : index
    %c17_147 = arith.constant 17 : index
    %c0_148 = arith.constant 0 : index
    %182 = vector.load %arg12[%c2_146, %c17_147, %c0_148] : memref<10x48x128xbf16, #tpu.memory_space<vmem>>, vector<8x16x128xbf16>
    %183 = vector.shape_cast %182 : vector<8x16x128xbf16> to vector<128x128xbf16>
    %c8_149 = arith.constant 8 : index
    %c0_150 = arith.constant 0 : index
    %c0_151 = arith.constant 0 : index
    %184 = vector.load %arg9[%c8_149, %c0_150, %c0_151] : memref<9x128x128xbf16, #tpu.memory_space<vmem>>, vector<1x128x128xbf16>
    %185 = vector.shape_cast %184 : vector<1x128x128xbf16> to vector<128x128xbf16>
    %cst_152 = arith.constant dense<0.000000e+00> : vector<128x128xf32>
    %186 = tpu.matmul %183, %185, %cst_152 {dimension_numbers = #tpu.dot_dimension_numbers<[1], [0], [0], [1], [0, 0, 1, 1], [], []>} : vector<128x128xbf16>, vector<128x128xbf16>, vector<128x128xf32> -> vector<128x128xf32>
    %187 = arith.addf %181, %186 : vector<128x128xf32>
    %c0_153 = arith.constant 0 : index
    %c0_154 = arith.constant 0 : index
    %188 = vector.load %arg10[%c0_153, %c0_154] : memref<1x128xf32, #tpu.memory_space<vmem>>, vector<1x128xf32>
    %189 = vector.broadcast %188 : vector<1x128xf32> to vector<128x128xf32>
    %190 = arith.addf %187, %189 : vector<128x128xf32>
    %cst_155 = arith.constant 0.000000e+00 : f32
    %191 = vector.broadcast %cst_155 : f32 to vector<128x128xf32>
    %192 = arith.maximumf %190, %191 : vector<128x128xf32>
    %193 = vector.shape_cast %192 : vector<128x128xf32> to vector<1x8x16x128xf32>
    %194 = arith.truncf %193 : vector<1x8x16x128xf32> to vector<1x8x16x128xbf16>
    %c0_156 = arith.constant 0 : index
    %c0_157 = arith.constant 0 : index
    %c0_158 = arith.constant 0 : index
    %c0_159 = arith.constant 0 : index
    %195 = vector.load %arg11[%c0_156, %c0_157, %c0_158, %c0_159] : memref<1x8x16x128xbf16, #tpu.memory_space<vmem>>, vector<1x8x16x128xbf16>
    tpu.vector_store %arg11[%c0_156, %c0_157, %c0_158, %c0_159], %194 {strides = array<i32>} : memref<1x8x16x128xbf16, #tpu.memory_space<vmem>>, vector<1x8x16x128xbf16>,
    return
  }
  func.func @transform_0(%arg0: i32, %arg1: i32) -> (i32, i32, i32, i32) {
    %c0_i32 = arith.constant 0 : i32
    %c0_i32_0 = arith.constant 0 : i32
    %c0_i32_1 = arith.constant 0 : i32
    return %arg0, %arg1, %c0_i32, %c0_i32_0 : i32, i32, i32, i32
  }
  func.func @transform_1(%arg0: i32, %arg1: i32) -> (i32, i32, i32, i32) {
    %c1_i32 = arith.constant 1 : i32
    %0 = arith.addi %arg1, %c1_i32 : i32
    %c2_i32 = arith.constant 2 : i32
    %1 = arith.muli %0, %c2_i32 : i32
    %c0_i32 = arith.constant 0 : i32
    %c0_i32_0 = arith.constant 0 : i32
    %c0_i32_1 = arith.constant 0 : i32
    return %arg0, %1, %c0_i32, %c0_i32_0 : i32, i32, i32, i32
  }
  func.func @transform_2(%arg0: i32, %arg1: i32) -> (i32, i32, i32, i32) {
    %c0_i32 = arith.constant 0 : i32
    %c0_i32_0 = arith.constant 0 : i32
    %c0_i32_1 = arith.constant 0 : i32
    return %arg0, %arg1, %c0_i32, %c0_i32_0 : i32, i32, i32, i32
  }
  func.func @transform_3(%arg0: i32, %arg1: i32) -> (i32, i32, i32, i32) {
    %c1_i32 = arith.constant 1 : i32
    %0 = arith.addi %arg1, %c1_i32 : i32
    %c2_i32 = arith.constant 2 : i32
    %1 = arith.muli %0, %c2_i32 : i32
    %c0_i32 = arith.constant 0 : i32
    %c0_i32_0 = arith.constant 0 : i32
    %c0_i32_1 = arith.constant 0 : i32
    return %arg0, %1, %c0_i32, %c0_i32_0 : i32, i32, i32, i32
  }
  func.func @transform_4(%arg0: i32, %arg1: i32) -> (i32, i32, i32) {
    %c0_i32 = arith.constant 0 : i32
    %c0_i32_0 = arith.constant 0 : i32
    %c0_i32_1 = arith.constant 0 : i32
    %c0_i32_2 = arith.constant 0 : i32
    return %c0_i32, %c0_i32_0, %c0_i32_1 : i32, i32, i32
  }
  func.func @transform_5(%arg0: i32, %arg1: i32) -> (i32, i32, i32) {
    %c0_i32 = arith.constant 0 : i32
    %c0_i32_0 = arith.constant 0 : i32
    %c0_i32_1 = arith.constant 0 : i32
    %c0_i32_2 = arith.constant 0 : i32
    return %c0_i32, %c0_i32_0, %c0_i32_1 : i32, i32, i32
  }
  func.func @transform_6(%arg0: i32, %arg1: i32) -> (i32, i32) {
    %c0_i32 = arith.constant 0 : i32
    %c0_i32_0 = arith.constant 0 : i32
    %c0_i32_1 = arith.constant 0 : i32
    return %c0_i32, %c0_i32_0 : i32, i32
  }
  func.func @transform_7(%arg0: i32, %arg1: i32) -> (i32, i32, i32) {
    %c0_i32 = arith.constant 0 : i32
    %c0_i32_0 = arith.constant 0 : i32
    %c0_i32_1 = arith.constant 0 : i32
    %c0_i32_2 = arith.constant 0 : i32
    return %c0_i32, %c0_i32_0, %c0_i32_1 : i32, i32, i32
  }
  func.func @transform_8(%arg0: i32, %arg1: i32) -> (i32, i32) {
    %c0_i32 = arith.constant 0 : i32
    %c0_i32_0 = arith.constant 0 : i32
    %c0_i32_1 = arith.constant 0 : i32
    return %c0_i32, %c0_i32_0 : i32, i32
  }
  func.func @transform_9(%arg0: i32, %arg1: i32) -> (i32, i32, i32, i32) {
    %c0_i32 = arith.constant 0 : i32
    %c0_i32_0 = arith.constant 0 : i32
    %c0_i32_1 = arith.constant 0 : i32
    return %arg0, %arg1, %c0_i32, %c0_i32_0 : i32, i32, i32, i32
  }
}

</mosaic_0001>

<bundles_post_ra>
// kernel: up_forward.1
= control target key start
LH: loop header
LB: loop body
LE: loop exit
PB: predicated region body
PF: predicated region fallthrough
CT: control target
= control target key end

     0   :  { %s9423_s30 = smov 0   ;;  %s9425_s10 = smov 0   ;;  %s11452_s0 = inlined_call_operand.vmem [shape: bf16[2,20,18,4], index: 0, kind: input, shape index: {}, may-alias: {0,1}]   ;;  %s11453_s1 = inlined_call_operand.vmem [shape: bf16[2,20,18,4], index: 1, kind: input, shape index: {}, may-alias: {0,1}]   ;;  %s11454_s2 = inlined_call_operand.vmem [shape: bf16[2,20,18,4], index: 2, kind: input, shape index: {}, may-alias: {2,3}]   ;;  %s11455_s3 = inlined_call_operand.vmem [shape: bf16[2,20,18,4], index: 3, kind: input, shape index: {}, may-alias: {2,3}]   ;;  %s11456_s4 = inlined_call_operand.vmem [shape: bf16[9,4,128], index: 4, kind: input, shape index: {}]   ;;  %s11457_s5 = inlined_call_operand.vmem [shape: bf16[9,4,128], index: 5, kind: input, shape index: {}]   ;;  %s11458_s6 = inlined_call_operand.vmem [shape: f32[1,128], index: 6, kind: input, shape index: {}]   ;;  %s11459_s7 = inlined_call_operand.vmem [shape: bf16[9,128,128], index: 7, kind: input, shape index: {}]   ;;  %s11460_s8 = inlined_call_operand.vmem [shape: f32[1,128], index: 8, kind: input, shape index: {}]   ;;  %s11461_s9 = inlined_call_operand.vmem [shape: bf16[2,16,16,128], index: 9, kind: output, shape index: {}]  }
   0x1   :  { %s9427_s11 = smov 0   ;;  %s9429_s12 = smov 0  }
   0x2   :  { %s9431_s13 = smov 0  }
   0x3 LB: > { %s28_s14 = sadd.s32 1, %s9361_s11  ;;  %s31_s15 = sadd.s32 1, %s9365_s12  ;;  %s9369_s13 = sphi %s9431_s13, %s19_s13   ;;  %s9365_s12 = sphi %s9429_s12, %s11575_s12   ;;  %s9361_s11 = sphi %s9427_s11, %s11574_s11   ;;  %s9357_s10 = sphi %s9425_s10, %s11573_s10   ;;  %s9353_s30 = sphi %s9423_s30, %s11572_s30  }
   0x4   : > { %p29_p0 = scmp.ge.s32.totalorder %s28_s14, 2  ;;  %p7068_p1 = scmp.ge.s32.totalorder %s9369_s13, 1 }
   0x5   : > { %p399_p2 = scmp.lt.s32.totalorder %s9369_s13, 5 }
   0x6   : > { %s11577_s14 = smov (%p29_p0, %s28_s14), 0  ;;  %s11579_s15 = smov (!%p29_p0, %s31_s15), %s9365_s12 }
   0x7   : > { %p400_p3 = pnand %p7068_p1, %p399_p2  ;;  %p33_p4 = scmp.ge.s32.totalorder %s11579_s15, 2 }
   0x9   : > { %s11581_s15 = smov (%p33_p4, %s11579_s15), 0  ;;  %403 = sbr.rel (%p400_p3) target bundleno = 1316 (0x524), region = 56 }
  0x10   : > { %vm916_vm0 = vcmask 1041408   ;;  %v7180_v0 = vld [vmem:[%s11456_s4 + $0xa] sm:$0x3]  ;;  %s9459_s18 = sshll.u32 %s9353_s30, 3  ;;  %p495_p5 = scmp.lt.s32.totalorder %s9357_s10, 1  ;;  %vm1239_vm1 = vcmask 1042432  }
  0x11   : > { %9177 = vmatprep.subr.msk.bf16.mxu0 %vm916_vm0, %v7180_v0  ;;  %v1841_v1 = vsel %vm916_vm0, %v7180_v0, 0  ;;  %p497_p6 = scmp.lt.s32.totalorder %s9459_s18, 19  ;;  %p564_p7 = scmp.lt.s32.totalorder %s9459_s18, 15  ;;  %v7192_v2 = vld [vmem:[%s11456_s4 + $0xc] sm:$0x3]  ;;  %vm1240_vm2 = vcmask 1046532  }
  0x12   : > { %8131 = vmatpush3.bf16.msra.mxu0 %v1841_v1  ;;  %s11583_s10 = smov (!%p495_p5, %s9357_s10), 1  ;;  %s7668_s24 = sadd.s32 8, %s9459_s18  ;;  %vm9501_vm3 = vmor %vm1239_vm1, %vm1240_vm2  ;;  %v11499_v6 = vmov 0  ;;  %vm885_vm4 = vcmask 31744   ;;  %v7204_v20 = vld [vmem:[%s11456_s4 + $0xe] sm:$0x3] }
  0x13   : > { %s498_s21 = scalar_select %p497_p6, %s9459_s18, 19  ;;  %9178 = vmatprep.subr.msk.bf16.mxu0 %vm916_vm0, %v7192_v2  ;;  %v11500_v6 = vsel %vm9501_vm3, 4294967295, %v11499_v6  ;;  %v1987_v28 = vsel %vm916_vm0, %v7192_v2, 0  ;;  %v9566_v35 = vsel %vm916_vm0, %v7204_v20, 0  ;;  %vm610_vm5 = vsmask.f32 3328 }
  0x14   : > { %s9191_s22 = smul.u32 60, %s11583_s10  ;;  %s11585_s18 = smov (!%p564_p7, %s9459_s18), 15  ;;  %11501 = vst [vmem:[#allocation3_spill] sm:$0xff] %v11500_v6  ;;  %vm611_vm6 = vsmask.f32 7440  ;;  %vm4410_vm8 = vcmask 1047559  }
  0x15   : > { %s9190_s23 = smul.u32 3, %s498_s21  ;;  %s7081_s26 = sshll.u32 %s11583_s10, 5  ;;  %vm9756_vm7 = vmor %vm610_vm5, %vm611_vm6  ;;  %vm4411_vm9 = vsmask.f32 7966  ;;  %vm4443_vm10 = vcmask 1040384  }
  0x16   : > { %s7080_s28 = sshll.u32 %s11585_s18, 1  ;;  %p9488_p8 = scmp.lt.s32.totalorder %s7668_s24, 19  ;;  %vm10833_vm11 = vmand %vm4410_vm8, %vm4411_vm9  ;;  %vm4444_vm12 = vsmask.f32 256 }
  0x17   : > { %s9477_s25 = sadd.s32 %s9191_s22, %s9190_s23  ;;  %s568_s20 = sadd.s32 %s7081_s26, %s7080_s28  ;;  %vm10851_vm13 = vmand %vm4443_vm10, %vm4444_vm12 }
  0x18   : > { %s7070_s27 = sshll.u32 %s9477_s25, 2  ;;  %s7082_s18 = sshll.u32 %s568_s20, 2 }
  0x19   : > { %s9486_s17 = scalar_lea.vmem %s11452_s0, %s7070_s27  ;;  %s9508_s29 = scalar_lea.vmem %s11461_s9, %s7082_s18 }
  0x1a   : > { %v9493_v3 = vld [vmem:[%s9486_s17 + $0xc] sm:$0xf]  ;;  %v9496_v4 = vld [vmem:[%s9486_s17 + $0x10] sm:$0xf]  ;;  %v9499_v5 = vld [vmem:[%s9486_s17 + $0x14] sm:$0x1]  ;;  %s10006_s18 = scalar_lea.vmem %s11454_s2, %s7070_s27 }
  0x1b   : > { %v7125_v7 = vrot.slane %v9493_v3, 9  ;;  %v1251_v8 = vrot.slane %v9496_v4, 5  ;;  %v1254_v9 = vrot.slane %v9499_v5, 5  ;;  %v9514_v10 = vld [vmem:[%s9486_s17 + $0x18] sm:$0xf]  ;;  %s11587_s24 = smov (!%p9488_p8, %s7668_s24), 19 }
  0x1c   : > { %v9517_v11 = vld [vmem:[%s9486_s17 + $0x1c] sm:$0xf]  ;;  %v9520_v12 = vld [vmem:[%s9486_s17 + $0x20] sm:$0x1]  ;;  %v7126_v13 = vrot.slane %v9514_v10, 9  ;;  %s9192_s16 = smul.u32 3, %s11587_s24 }
  0x1d   : > { %v1252_v14 = vsel %vm9501_vm3, %v7125_v7, %v1251_v8  ;;  %v1253_v15 = vrot.slane %v1251_v8, 4  ;;  %v1258_v16 = vrot.slane %v9517_v11, 5  ;;  %v1261_v17 = vrot.slane %v9520_v12, 5  ;;  %v9530_v18 = vld [vmem:[%s9486_s17 + $0x24] sm:$0xf]  ;;  %p7376_p9 = scmp.ne.s32.totalorder %s9353_s30, 0 }
  0x1e   : > { %v9533_v19 = vld [vmem:[%s9486_s17 + $0x28] sm:$0xf]  ;;  %v9543_v24 = vld [vmem:[%s9486_s17 + $0x2c] sm:$0x1]  ;;  %v686_v25 = vshrl.u32 %v9530_v18, 16  ;;  %v689_v32 = vshll.u32 %v9530_v18, 16  ;;  %s9580_s24 = sadd.s32 %s9192_s16, %s9191_s22 }
  0x1f   : > { %v1255_v21 = vsel %vm9501_vm3, %v1253_v15, %v1254_v9  ;;  %v1259_v22 = vsel %vm9501_vm3, %v7126_v13, %v1258_v16  ;;  %v1260_v23 = vrot.slane %v1258_v16, 4  ;;  %v9547_v26 = vld [vmem:[%s9486_s17 + $0x30] sm:$0xf]  ;;  %v9553_v29 = vld [vmem:[%s9486_s17 + $0x34] sm:$0xf]  ;;  %v7127_v33 = vrot.slane %v9530_v18, 9 }
  0x20   : > { %v9549_v27 = vcombine.low %v1252_v14, %v1255_v21  ;;  %v9556_v30 = vld [vmem:[%s9486_s17 + $0x38] sm:$0x1]  ;;  %v9563_v34 = vld [vmem:[%s9486_s17 + $0x3c] sm:$0xf]  ;;  %v695_v37 = vshll.u32 %v9533_v19, 16  ;;  %v1265_v38 = vrot.slane %v9533_v19, 5 }
  0x21   : > { %v1262_v31 = vsel %vm9501_vm3, %v1260_v23, %v1261_v17  ;;  %v1268_v39 = vrot.slane %v9543_v24, 5  ;;  %v9576_v40 = vld [vmem:[%s9486_s17 + $0x40] sm:$0xf]  ;;  %v9582_v41 = vrot.slane %v686_v25, 4  ;;  %v7128_v42 = vrot.slane %v9547_v26, 9  ;;  %s7073_s10 = sshll.u32 %s9580_s24, 2 }
  0x22   : > { %11502 = vst [vmem:[#allocation4_spill] sm:$0xff] %v9549_v27  ;;  %8132 = vmatprep.mubr.msk.bf16.mxu0 %vm885_vm4, %v9549_v27  ;;  %v9570_v36 = vcombine.low %v1259_v22, %v1262_v31  ;;  %v1272_v43 = vrot.slane %v9553_v29, 5  ;;  %v1275_v44 = vrot.slane %v9556_v30, 5  ;;  %v9588_v45 = vld [vmem:[%s9486_s17 + $0x44] sm:$0x1]  ;;  %v1266_v46 = vsel %vm9501_vm3, %v7127_v33, %v1265_v38  ;;  %s9614_s20 = scalar_lea.vmem %s11453_s1, %s7073_s10  ;;  %s10238_s28 = scalar_lea.vmem %s11455_s3, %s7073_s10 }
  0x23   : > { %v1267_v47 = vrot.slane %v1265_v38, 4  ;;  %v7129_v48 = vrot.slane %v9563_v34, 9  ;;  %v1279_v49 = vrot.slane %v9576_v40, 5  ;;  %v9597_v50 = vld [vmem:[%s9486_s17 + $0x48] sm:$0xf]  ;;  %v1282_v53 = vrot.slane %v9588_v45, 5 }
  0x24   : > { %8133 = vmatmul.mubr.msk.bf16.vlgmr.msra.gmra.mrb[0].mxu0 %vm885_vm4, %v9570_v36  ;;  %v1273_v51 = vsel %vm9501_vm3, %v7128_v42, %v1272_v43  ;;  %v1274_v52 = vrot.slane %v1272_v43, 4  ;;  %v9604_v54 = vld [vmem:[%s9486_s17 + $0x4c] sm:$0xf]  ;;  %v9607_v55 = vld [vmem:[%s9486_s17 + $0x50] sm:$0x1]  ;;  %v7130_v59 = vrot.slane %v9597_v50, 9  ;;  %v9665_v25 = vcombine.low %v9514_v10, %v9517_v11 }
  0x25   : > { %8153 = vmatpush3.bf16.msra.mxu0 %v1987_v28  ;;  %v1269_v56 = vsel %vm9501_vm3, %v1267_v47, %v1268_v39  ;;  %v1280_v57 = vsel %vm9501_vm3, %v7129_v48, %v1279_v49  ;;  %v1281_v58 = vrot.slane %v1279_v49, 4  ;;  %v9622_v60 = vld [vmem:[%s9486_s17 + $0x54] sm:$0xf]  ;;  %v9625_v61 = vld [vmem:[%s9486_s17 + $0x58] sm:$0xf]  ;;  %v1286_v0 = vrot.slane %v9604_v54, 5 }
  0x26   : > { %9179 = vmatprep.subr.msk.bf16.mxu0 %vm916_vm0, %v7204_v20  ;;  %v9628_v62 = vcombine.low %v1266_v46, %v1269_v56  ;;  %v1276_v63 = vsel %vm9501_vm3, %v1274_v52, %v1275_v44  ;;  %v1289_v1 = vrot.slane %v9607_v55, 5  ;;  %v9635_v2 = vld [vmem:[%s9486_s17 + $0x5c] sm:$0x1]  ;;  %v9638_v7 = vld [vmem:[%s9614_s20] sm:$0xf]  ;;  %v7131_v13 = vrot.slane %v9622_v60, 9 }
  0x27   : > { %v9640_v8 = vcombine.low %v1273_v51, %v1276_v63  ;;  %v1283_v9 = vsel %vm9501_vm3, %v1281_v58, %v1282_v53  ;;  %v1293_v14 = vrot.slane %v9625_v61, 5  ;;  %v9647_v15 = vld [vmem:[%s9614_s20 + $0x4] sm:$0xf]  ;;  %v9650_v16 = vld [vmem:[%s9614_s20 + $0x8] sm:$0x1]  ;;  %v1288_v20 = vrot.slane %v1286_v0, 4 }
  0x28   : > { %8136 = vmatprep.mubr.msk.bf16.mxu0 %vm885_vm4, %v9628_v62  ;;  %v9654_v17 = vcombine.low %v1280_v57, %v1283_v9  ;;  %v1296_v21 = vrot.slane %v9635_v2, 5  ;;  %v9658_v22 = vld [vmem:[%s9614_s20 + $0xc] sm:$0xf]  ;;  %v9661_v23 = vld [vmem:[%s9614_s20 + $0x10] sm:$0xf]  ;;  %v699_v28 = vshrl.u32 %v9533_v19, 16  ;;  %v1287_v48 = vsel %vm9501_vm3, %v7130_v59, %v1286_v0 }
  0x29   : > { %v1295_v31 = vrot.slane %v1293_v14, 4  ;;  %v7132_v33 = vrot.slane %v9638_v7, 9  ;;  %v1300_v38 = vrot.slane %v9647_v15, 5  ;;  %v9671_v39 = vld [vmem:[%s9614_s20 + $0x14] sm:$0x1]  ;;  %v705_v42 = vshll.u32 %v9543_v24, 16 }
  0x2a   : > { %v1303_v43 = vrot.slane %v9650_v16, 5  ;;  %v7133_v44 = vrot.slane %v9658_v22, 9  ;;  %v1307_v46 = vrot.slane %v9661_v23, 5  ;;  %v9678_v47 = vld [vmem:[%s9614_s20 + $0x18] sm:$0xf]  ;;  %v1290_v49 = vsel %vm9501_vm3, %v1288_v20, %v1289_v1 }
  0x2b   : > { %v1294_v24 = vsel %vm9501_vm3, %v7131_v13, %v1293_v14  ;;  %v1302_v51 = vrot.slane %v1300_v38, 4  ;;  %v9689_v52 = vld [vmem:[%s9614_s20 + $0x1c] sm:$0xf]  ;;  %v9692_v53 = vld [vmem:[%s9614_s20 + $0x20] sm:$0x1]  ;;  %v1297_v56 = vsel %vm9501_vm3, %v1295_v31, %v1296_v21  ;;  %v1301_v57 = vsel %vm9501_vm3, %v7132_v33, %v1300_v38 }
  0x2c   : > { %8137 = vmatmul.mubr.msk.bf16.gmra.mrb[4].mxu0 %vm885_vm4, %v9640_v8  ;;  %v1309_v58 = vrot.slane %v1307_v46, 4  ;;  %v1310_v59 = vrot.slane %v9671_v39, 5  ;;  %v7179_v0 = vrot.slane %v9678_v47, 9  ;;  %v1827_v1 = vrot.slane %v9689_v52, 5 }
  0x2d   : > { %8140 = vmatprep.mubr.msk.bf16.mxu0 %vm885_vm4, %v9654_v17  ;;  %v1304_v63 = vsel %vm9501_vm3, %v1302_v51, %v1303_v43  ;;  %v1830_v9 = vrot.slane %v9692_v53, 5  ;;  %v691_v13 = vrot.slane %v689_v32, 5  ;;  %v697_v14 = vrot.slane %v695_v37, 5 }
  0x2e   : > { %v1308_v20 = vsel %vm9501_vm3, %v7133_v44, %v1307_v46  ;;  %v1311_v21 = vsel %vm9501_vm3, %v1309_v58, %v1310_v59  ;;  %v701_v31 = vrot.slane %v699_v28, 4  ;;  %v9714_v33 = vcombine.low %v1287_v48, %v1290_v49 }
  0x2f   : > { %v1828_v38 = vsel %vm9501_vm3, %v7179_v0, %v1827_v1  ;;  %v1829_v43 = vrot.slane %v1827_v1, 4  ;;  %v707_v51 = vrot.slane %v705_v42, 5  ;;  %v9718_v27 = vcombine.low %v1294_v24, %v1297_v56 }
  0x30   : > { %v9720_v32 = vcombine.low %v1301_v57, %v1304_v63  ;;  %v9724_v37 = vcombine.low %v9530_v18, %v9533_v19  ;;  %v9726_v44 = vcombine.low %v1308_v20, %v1311_v21  ;;  %v9732_v46 = vcombine.low %v9547_v26, %v9553_v29 }
  0x31   : > { %11503 = vst [vmem:[#allocation5_spill] sm:$0xff] %v9718_v27  ;;  %v1831_v28 = vsel %vm9501_vm3, %v1829_v43, %v1830_v9  ;;  %v9736_v42 = vcombine.low %v9563_v34, %v9576_v40  ;;  %v9742_v49 = vcombine.low %v9597_v50, %v9604_v54  ;;  %v662_v18 = vshrl.u32 %v9514_v10, 16 }
  0x32   : > { %v9738_v48 = vcombine.low %v1828_v38, %v1831_v28  ;;  %v665_v19 = vshll.u32 %v9514_v10, 16  ;;  %v671_v24 = vshll.u32 %v9517_v11, 16  ;;  %v675_v56 = vshrl.u32 %v9517_v11, 16 }
  0x33   : > { %11504 = vst [vmem:[#allocation6_spill] sm:$0xff] %v9742_v49  ;;  %v681_v57 = vshll.u32 %v9520_v12, 16  ;;  %v692_v58 = vor.u32 %v691_v13, %v9582_v41  ;;  %v664_v10 = vrot.slane %v662_v18, 4  ;;  %v702_v0 = vor.u32 %v701_v31, %v697_v14 }
  0x34   : > { %8141 = vmatmul.mubr.msk.bf16.gmra.mrb[8].mxu0 %vm885_vm4, %v9714_v33  ;;  %v667_v63 = vrot.slane %v665_v19, 5  ;;  %v710_v1 = vshrl.u32 %v9547_v26, 16  ;;  %v673_v9 = vrot.slane %v671_v24, 5  ;;  %v677_v11 = vrot.slane %v675_v56, 4 }
  0x35   : > { %8144 = vmatprep.mubr.msk.bf16.mxu0 %vm885_vm4, %v9718_v27  ;;  %v683_v20 = vrot.slane %v681_v57, 5  ;;  %v693_v12 = vrot.slane %v692_v58, 4  ;;  %v703_v41 = vrot.slane %v702_v0, 4  ;;  %v713_v38 = vshll.u32 %v9547_v26, 16 }
  0x36   : > { %v668_v21 = vor.u32 %v667_v63, %v664_v10  ;;  %v712_v13 = vrot.slane %v710_v1, 4  ;;  %v678_v43 = vor.u32 %v677_v11, %v673_v9  ;;  %v719_v27 = vshll.u32 %v9553_v29, 16 }
  0x37   : > { %v698_v28 = vsel %vm9756_vm7, %v693_v12, %v697_v14  ;;  %v723_v18 = vshrl.u32 %v9553_v29, 16  ;;  %v708_v19 = vsel %vm9756_vm7, %v703_v41, %v707_v51  ;;  %v715_v24 = vrot.slane %v713_v38, 5 }
  0x38   : > { %v669_v31 = vrot.slane %v668_v21, 4  ;;  %v729_v56 = vshll.u32 %v9556_v30, 16  ;;  %v679_v57 = vrot.slane %v678_v43, 4  ;;  %v9769_v58 = vcombine.low %v698_v28, %v708_v19 }
  0x39   : > { %v721_v10 = vrot.slane %v719_v27, 5  ;;  %v725_v26 = vrot.slane %v723_v18, 4  ;;  %v716_v14 = vor.u32 %v715_v24, %v712_v13  ;;  %v734_v1 = vshrl.u32 %v9563_v34, 16  ;;  %v9783_v27 = vld [vmem:[%s11456_s4 + $0x2] sm:$0x3] }
  0x3a   : > { %11507 = vst [vmem:[#allocation7_spill] sm:$0xff] %v9769_v58  ;;  %v674_v63 = vsel %vm9756_vm7, %v669_v31, %v673_v9  ;;  %v731_v0 = vrot.slane %v729_v56, 5  ;;  %v684_v29 = vsel %vm9756_vm7, %v679_v57, %v683_v20  ;;  %v737_v30 = vshll.u32 %v9563_v34, 16  ;;  %9172 = vmatprep.subr.msk.bf16.mxu1 %vm916_vm0, %v9783_v27 }
  0x3b   : > { %v726_v51 = vor.u32 %v725_v26, %v721_v10  ;;  %v743_v11 = vshll.u32 %v9576_v40, 16  ;;  %v9787_v9 = vcombine.low %v674_v63, %v684_v29  ;;  %v717_v12 = vrot.slane %v716_v14, 4 }
  0x3c   : > { %8145 = vmatmul.mubr.msk.bf16.gmra.mrb[12].mxu0 %vm885_vm4, %v9720_v32  ;;  %v736_v21 = vrot.slane %v734_v1, 4  ;;  %v747_v41 = vshrl.u32 %v9576_v40, 16  ;;  %v739_v20 = vrot.slane %v737_v30, 5  ;;  %v753_v38 = vshll.u32 %v9588_v45, 16 }
  0x3d   : > { %8148 = vmatprep.mubr.msk.bf16.mxu0 %vm885_vm4, %v9726_v44  ;;  %11508 = vst [vmem:[#allocation8_spill] sm:$0xff] %v9787_v9  ;;  %v727_v34 = vrot.slane %v726_v51, 4  ;;  %v745_v13 = vrot.slane %v743_v11, 5  ;;  %v722_v43 = vsel %vm9756_vm7, %v717_v12, %v721_v10  ;;  %v758_v18 = vshrl.u32 %v9597_v50, 16 }
  0x3e   : > { %v749_v28 = vrot.slane %v747_v41, 4  ;;  %v761_v31 = vshll.u32 %v9597_v50, 16  ;;  %v740_v40 = vor.u32 %v739_v20, %v736_v21  ;;  %v755_v24 = vrot.slane %v753_v38, 5 }
  0x3f   : > { %v732_v19 = vsel %vm9756_vm7, %v727_v34, %v731_v0  ;;  %v767_v56 = vshll.u32 %v9604_v54, 16  ;;  %v760_v63 = vrot.slane %v758_v18, 4  ;;  %v771_v10 = vshrl.u32 %v9604_v54, 16 }
  0x40   : > { %v9800_v57 = vcombine.low %v722_v43, %v732_v19  ;;  %v750_v26 = vor.u32 %v749_v28, %v745_v13  ;;  %v763_v45 = vrot.slane %v761_v31, 5  ;;  %v741_v14 = vrot.slane %v740_v40, 4 }
  0x41   : > { %v769_v1 = vrot.slane %v767_v56, 5  ;;  %v777_v29 = vshll.u32 %v9607_v55, 16  ;;  %v782_v30 = vshrl.u32 %v9622_v60, 16  ;;  %v785_v0 = vshll.u32 %v9622_v60, 16 }
  0x42   : > { %11509 = vst [vmem:[#allocation9_spill] sm:$0xff] %v9800_v57  ;;  %v751_v51 = vrot.slane %v750_v26, 4  ;;  %v764_v50 = vor.u32 %v763_v45, %v760_v63  ;;  %v746_v11 = vsel %vm9756_vm7, %v741_v14, %v745_v13  ;;  %v773_v12 = vrot.slane %v771_v10, 4 }
  0x43   : > { %v779_v21 = vrot.slane %v777_v29, 5  ;;  %v791_v41 = vshll.u32 %v9625_v61, 16  ;;  %v784_v34 = vrot.slane %v782_v30, 4  ;;  %v787_v20 = vrot.slane %v785_v0, 5 }
  0x44   : > { %8149 = vmatmul.mubr.msk.bf16.gmra.mrb[16].mxu0 %vm885_vm4, %v9738_v48  ;;  %v756_v54 = vsel %vm9756_vm7, %v751_v51, %v755_v24  ;;  %v765_v55 = vrot.slane %v764_v50, 4  ;;  %v774_v43 = vor.u32 %v773_v12, %v769_v1  ;;  %v795_v18 = vshrl.u32 %v9625_v61, 16 }
  0x45   : > { %8154 = vmatprep.mubr.msk.bf16.mxu0 %vm885_vm4, %v9665_v25  ;;  %v9815_v38 = vcombine.low %v746_v11, %v756_v54  ;;  %v793_v28 = vrot.slane %v791_v41, 5  ;;  %v788_v31 = vor.u32 %v787_v20, %v784_v34  ;;  %v801_v19 = vshll.u32 %v9635_v2, 16  ;;  %v9830_v2 = vld [vmem:[%s11456_s4 + $0x10] sm:$0x3] }
  0x46   : > { %v770_v13 = vsel %vm9756_vm7, %v765_v55, %v769_v1  ;;  %v806_v40 = vshrl.u32 %v9638_v7, 16  ;;  %v775_v56 = vrot.slane %v774_v43, 4  ;;  %v797_v26 = vrot.slane %v795_v18, 4 }
  0x47   : > { %11510 = vst [vmem:[#allocation10_spill] sm:$0xff] %v9815_v38  ;;  %v809_v24 = vshll.u32 %v9638_v7, 16  ;;  %v815_v63 = vshll.u32 %v9647_v15, 16  ;;  %v789_v45 = vrot.slane %v788_v31, 4  ;;  %v803_v14 = vrot.slane %v801_v19, 5 }
  0x48   : > { %v808_v10 = vrot.slane %v806_v40, 4  ;;  %v819_v29 = vshrl.u32 %v9647_v15, 16  ;;  %v780_v51 = vsel %vm9756_vm7, %v775_v56, %v779_v21  ;;  %v798_v1 = vor.u32 %v797_v26, %v793_v28 }
  0x49   : > { %v811_v50 = vrot.slane %v809_v24, 5  ;;  %v817_v30 = vrot.slane %v815_v63, 5  ;;  %v9832_v0 = vcombine.low %v770_v13, %v780_v51  ;;  %v794_v11 = vsel %vm9756_vm7, %v789_v45, %v793_v28 }
  0x4a   : > { %v821_v12 = vrot.slane %v819_v29, 4  ;;  %v825_v41 = vshll.u32 %v9650_v16, 16  ;;  %v799_v21 = vrot.slane %v798_v1, 4  ;;  %v830_v55 = vshrl.u32 %v9658_v22, 16 }
  0x4b   : > { %11511 = vst [vmem:[#allocation11_spill] sm:$0xff] %v9832_v0  ;;  %v812_v54 = vor.u32 %v811_v50, %v808_v10  ;;  %v833_v34 = vshll.u32 %v9658_v22, 16  ;;  %v839_v28 = vshll.u32 %v9661_v23, 16  ;;  %v843_v16 = vshrl.u32 %v9661_v23, 16 }
  0x4c   : > { %8155 = vmatmul.mubr.msk.bf16.vlgmr.msra.gmra.mrb[0].mxu0 %vm885_vm4, %v9724_v37  ;;  %v822_v20 = vor.u32 %v821_v12, %v817_v30  ;;  %v827_v43 = vrot.slane %v825_v41, 5  ;;  %v804_v18 = vsel %vm9756_vm7, %v799_v21, %v803_v14  ;;  %v832_v31 = vrot.slane %v830_v55, 4 }
  0x4d   : > { %8175 = vmatpush3.bf16.msra.mxu0 %v9566_v35  ;;  %8158 = vmatprep.mubr.msk.bf16.mxu0 %vm885_vm4, %v9732_v46  ;;  %v813_v13 = vrot.slane %v812_v54, 4  ;;  %v835_v19 = vrot.slane %v833_v34, 5  ;;  %v9850_v40 = vcombine.low %v794_v11, %v804_v18  ;;  %v841_v56 = vrot.slane %v839_v28, 5  ;;  %v9875_v18 = vld [vmem:[%s9614_s20 + $0x24] sm:$0xf] }
  0x4e   : > { %9180 = vmatprep.subr.msk.bf16.mxu0 %vm916_vm0, %v9830_v2  ;;  %v823_v35 = vrot.slane %v822_v20, 4  ;;  %v845_v26 = vrot.slane %v843_v16, 4  ;;  %v849_v45 = vshll.u32 %v9671_v39, 16  ;;  %v1657_v10 = vshrl.u32 %v9678_v47, 16 }
  0x4f   : > { %11512 = vst [vmem:[#allocation12_spill] sm:$0xff] %v9850_v40  ;;  %v818_v24 = vsel %vm9756_vm7, %v813_v13, %v817_v30  ;;  %v836_v63 = vor.u32 %v835_v19, %v832_v31  ;;  %v1660_v51 = vshll.u32 %v9678_v47, 16  ;;  %v1666_v1 = vshll.u32 %v9689_v52, 16  ;;  %v9878_v13 = vld [vmem:[%s9614_s20 + $0x28] sm:$0xf] }
  0x50   : > { %v828_v29 = vsel %vm9756_vm7, %v823_v35, %v827_v43  ;;  %v846_v14 = vor.u32 %v845_v26, %v841_v56  ;;  %v851_v12 = vrot.slane %v849_v45, 5  ;;  %v1659_v30 = vrot.slane %v1657_v10, 4 }
  0x51   : > { %v9860_v50 = vcombine.low %v818_v24, %v828_v29  ;;  %v837_v11 = vrot.slane %v836_v63, 4  ;;  %v1662_v21 = vrot.slane %v1660_v51, 5  ;;  %v1668_v39 = vrot.slane %v1666_v1, 5  ;;  %v9887_v24 = vld [vmem:[%s9486_s17] sm:$0xf] }
  0x52   : > { %v847_v41 = vrot.slane %v846_v14, 4  ;;  %v1670_v54 = vshrl.u32 %v9689_v52, 16  ;;  %v1676_v34 = vshll.u32 %v9692_v53, 16  ;;  %v9882_v53 = vcombine.low %v9622_v60, %v9625_v61  ;;  %v9897_v14 = vld [vmem:[%s9614_s20 + $0x2c] sm:$0x1] }
  0x53   : > { %11513 = vst [vmem:[#allocation13_spill] sm:$0xff] %v9860_v50  ;;  %v842_v55 = vsel %vm9756_vm7, %v837_v11, %v841_v56  ;;  %v1663_v43 = vor.u32 %v1662_v21, %v1659_v30  ;;  %v7216_v56 = vrot.slane %v9875_v18, 9  ;;  %v2293_v26 = vrot.slane %v9878_v13, 5  ;;  %v9900_v60 = vld [vmem:[%s9486_s17 + $0x4] sm:$0xf] }
  0x54   : > { %8159 = vmatmul.mubr.msk.bf16.gmra.mrb[4].mxu0 %vm885_vm4, %v9736_v42  ;;  %v852_v20 = vsel %vm9756_vm7, %v847_v41, %v851_v12  ;;  %v1672_v28 = vrot.slane %v1670_v54, 4  ;;  %v1678_v35 = vrot.slane %v1676_v34, 5  ;;  %11515 = vst [vmem:[#allocation15_spill] sm:$0xff] %v9882_v53  ;;  %v638_v63 = vshrl.u32 %v9493_v3, 16  ;;  %v9914_v30 = vld [vmem:[%s9486_s17 + $0x8] sm:$0x1] }
  0x55   : > { %8162 = vmatprep.mubr.msk.bf16.mxu0 %vm885_vm4, %v9742_v49  ;;  %v9872_v16 = vcombine.low %v842_v55, %v852_v20  ;;  %v1664_v31 = vrot.slane %v1663_v43, 4  ;;  %v9892_v45 = vcombine.low %v9638_v7, %v9647_v15  ;;  %v641_v61 = vshll.u32 %v9493_v3, 16 }
  0x56   : > { %v1673_v19 = vor.u32 %v1672_v28, %v1668_v39  ;;  %v9905_v51 = vsel %vm9501_vm3, %v7216_v56, %v2293_v26  ;;  %v2295_v1 = vrot.slane %v2293_v26, 4  ;;  %v2296_v11 = vrot.slane %v9897_v14, 5 }
  0x57   : > { %11514 = vst [vmem:[#allocation14_spill] sm:$0xff] %v9872_v16  ;;  %11516 = vst [vmem:[#allocation16_spill] sm:$0xff] %v9892_v45  ;;  %v1669_v10 = vsel %vm9756_vm7, %v1664_v31, %v1668_v39  ;;  %v651_v7 = vshrl.u32 %v9496_v4, 16  ;;  %v918_v12 = vsel %vm916_vm0, %v9783_v27, 0  ;;  %v614_v41 = vshrl.u32 %v9887_v24, 16 }
  0x58   : > { %v1674_v29 = vrot.slane %v1673_v19, 4  ;;  %v9923_v39 = vsel %vm9501_vm3, %v2295_v1, %v2296_v11  ;;  %8021 = vmatpush3.bf16.msra.mxu1 %v918_v12  ;;  %v617_v54 = vshll.u32 %v9887_v24, 16  ;;  %v623_v55 = vshll.u32 %v9900_v60, 16 }
  0x59   : > { %v616_v34 = vrot.slane %v614_v41, 4  ;;  %v627_v20 = vshrl.u32 %v9900_v60, 16  ;;  %v633_v31 = vshll.u32 %v9914_v30, 16  ;;  %v657_v19 = vshll.u32 %v9499_v5, 16 }
  0x5a   : > { %v1679_v15 = vsel %vm9756_vm7, %v1674_v29, %v1678_v35  ;;  %v619_v43 = vrot.slane %v617_v54, 5  ;;  %v625_v28 = vrot.slane %v623_v55, 5  ;;  %v640_v56 = vrot.slane %v638_v63, 4 }
  0x5b   : > { %v9919_v21 = vcombine.low %v1669_v10, %v1679_v15  ;;  %v629_v35 = vrot.slane %v627_v20, 4  ;;  %v643_v26 = vrot.slane %v641_v61, 5  ;;  %v9936_v10 = vcombine.low %v9658_v22, %v9661_v23 }
  0x5c   : > { %8163 = vmatmul.mubr.msk.bf16.gmra.mrb[8].mxu0 %vm885_vm4, %v9882_v53  ;;  %v620_v29 = vor.u32 %v619_v43, %v616_v34  ;;  %v647_v1 = vshll.u32 %v9496_v4, 16  ;;  %v653_v11 = vrot.slane %v651_v7, 4  ;;  %v9941_v15 = vcombine.low %v9678_v47, %v9689_v52  ;;  %v609_v47 = vld [vmem:[%s11456_s4] sm:$0x3] }
  0x5d   : > { %11517 = vst [vmem:[#allocation17_spill] sm:$0xff] %v9919_v21  ;;  %8166 = vmatprep.mubr.msk.bf16.mxu0 %vm885_vm4, %v9892_v45  ;;  %v630_v12 = vor.u32 %v629_v35, %v625_v28  ;;  %v635_v41 = vrot.slane %v633_v31, 5  ;;  %v644_v54 = vor.u32 %v643_v26, %v640_v56  ;;  %v659_v61 = vrot.slane %v657_v19, 5  ;;  %9173 = vmatprep.subr.msk.bf16.mxu1 %vm916_vm0, %v609_v47  ;;  %v9977_v26 = vld [vmem:[%s11457_s5] sm:$0x3] }
  0x5e   : > { %11518 = vst [vmem:[#allocation18_spill] sm:$0xff] %v9941_v15  ;;  %v621_v55 = vrot.slane %v620_v29, 4  ;;  %v649_v5 = vrot.slane %v647_v1, 5  ;;  %v1114_v35 = vsel %vm916_vm0, %v609_v47, 0  ;;  %v2307_v56 = vsel %vm916_vm0, %v9830_v2, 0 }
  0x5f   : > { %v631_v20 = vrot.slane %v630_v12, 4  ;;  %v645_v63 = vrot.slane %v644_v54, 4  ;;  %v2123_v2 = vshrl.u32 %v9875_v18, 16  ;;  %v2126_v29 = vshll.u32 %v9875_v18, 16  ;;  %v10009_v12 = vld [vmem:[%s10006_s18 + $0x54] sm:$0xf] }
  0x60   : > { %v626_v22 = vsel %vm9756_vm7, %v621_v55, %v625_v28  ;;  %v654_v23 = vor.u32 %v653_v11, %v649_v5  ;;  %v7193_v28 = vcombine.low %v9875_v18, %v9878_v13  ;;  %v2136_v1 = vshrl.u32 %v9878_v13, 16 }
  0x61   : > { %v636_v52 = vsel %vm9756_vm7, %v631_v20, %v635_v41  ;;  %v650_v34 = vsel %vm9756_vm7, %v645_v63, %v649_v5  ;;  %v2132_v11 = vshll.u32 %v9878_v13, 16  ;;  %v2864_v18 = vshrl.u32 %v10009_v12, 16  ;;  %v10013_v20 = vld [vmem:[%s10006_s18 + $0x58] sm:$0xf] }
  0x62   : > { %v7084_v7 = vcombine.low %v626_v22, %v636_v52  ;;  %v655_v43 = vrot.slane %v654_v23, 4  ;;  %v2125_v41 = vrot.slane %v2123_v2, 4  ;;  %v2128_v54 = vrot.slane %v2126_v29, 5 }
  0x63   : > { %v2134_v55 = vrot.slane %v2132_v11, 5  ;;  %v2138_v5 = vrot.slane %v2136_v1, 4  ;;  %v2867_v13 = vshll.u32 %v10009_v12, 16  ;;  %v2877_v63 = vshrl.u32 %v10013_v20, 16 }
  0x64   : > { %8167 = vmatmul.mubr.msk.bf16.gmra.mrb[12].mxu0 %vm885_vm4, %v9936_v10  ;;  %8022 = vmatprep.mubr.msk.bf16.mxu1 %vm885_vm4, %v7084_v7  ;;  %v660_v31 = vsel %vm9756_vm7, %v655_v43, %v659_v61  ;;  %v10024_v61 = vld [vmem:[%s10006_s18 + $0x5c] sm:$0x1]  ;;  %v2866_v22 = vrot.slane %v2864_v18, 4  ;;  %v2129_v23 = vor.u32 %v2128_v54, %v2125_v41  ;;  %v2142_v52 = vshll.u32 %v9897_v14, 16 }
  0x65   : > { %8170 = vmatprep.mubr.msk.bf16.mxu0 %vm885_vm4, %v9941_v15  ;;  %v9962_v19 = vcombine.low %v650_v34, %v660_v31  ;;  %v2139_v47 = vor.u32 %v2138_v5, %v2134_v55  ;;  %v2869_v7 = vrot.slane %v2867_v13, 5  ;;  %v2873_v34 = vshll.u32 %v10013_v20, 16  ;;  %v7134_v5 = vld [vmem:[%s11456_s4 + $0x4] sm:$0x3] }
  0x66   : > { %v2879_v43 = vrot.slane %v2877_v63, 4  ;;  %v7104_v31 = vcombine.low %v9887_v24, %v9900_v60  ;;  %v2130_v2 = vrot.slane %v2129_v23, 4  ;;  %v2144_v1 = vrot.slane %v2142_v52, 5 }
  0x67   : > { %11519 = vst [vmem:[#allocation19_spill] sm:$0xff] %v9962_v19  ;;  %8023 = vmatmul.mubr.msk.bf16.vlgmr.msra.gmra.mrb[0].mxu1 %vm885_vm4, %v9962_v19  ;;  %v2140_v29 = vrot.slane %v2139_v47, 4  ;;  %v10054_v23 = vcombine.low %v9493_v3, %v9496_v4  ;;  %v10057_v47 = vld [vmem:[%s10006_s18] sm:$0xf]  ;;  %v1244_v3 = vrot.slane %v9900_v60, 5 }
  0x68   : > { %8026 = vmatprep.mubr.msk.bf16.mxu1 %vm885_vm4, %v9787_v9  ;;  %8043 = vmatpush3.bf16.msra.mxu1 %v1114_v35  ;;  %v2870_v35 = vor.u32 %v2869_v7, %v2866_v22  ;;  %v2135_v13 = vsel %vm9756_vm7, %v2130_v2, %v2134_v55  ;;  %v10062_v55 = vld [vmem:[%s10006_s18 + $0x4] sm:$0xf]  ;;  %v7270_v4 = vrot.slane %v10057_v47, 9  ;;  %v10257_v19 = vld [vmem:[%s10238_s28 + $0xc] sm:$0xf] }
  0x69   : > { %v2145_v63 = vsel %vm9756_vm7, %v2140_v29, %v2144_v1  ;;  %9174 = vmatprep.subr.msk.bf16.mxu1 %vm916_vm0, %v7134_v5  ;;  %v10079_v1 = vld [vmem:[%s10006_s18 + $0x10] sm:$0xf] }
  0x6a   : > { %v2871_v11 = vrot.slane %v2870_v35, 4  ;;  %v7205_v7 = vcombine.low %v2135_v13, %v2145_v63  ;;  %v1375_v35 = vsel %vm916_vm0, %v7134_v5, 0  ;;  %v10106_v13 = vld [vmem:[%s10006_s18 + $0x1c] sm:$0xf]  ;;  %v10109_v63 = vld [vmem:[%s10006_s18 + $0x24] sm:$0xf] }
  0x6c   : > { %8171 = vmatmul.mubr.msk.bf16.gmra.mrb[16].mxu0 %vm885_vm4, %v7193_v28  ;;  %v2883_v28 = vshll.u32 %v10024_v61, 16 }
  0x6d   : > { %8176 = vmatprep.mubr.msk.bf16.mxu0 %vm885_vm4, %v9787_v9 }
  0x6e   : > { %v2885_v41 = vrot.slane %v2883_v28, 5  ;;  %v1247_v28 = vrot.slane %v9914_v30, 5  ;;  %v10092_v30 = vld [vmem:[%s10006_s18 + $0x14] sm:$0x1] }
  0x6f   : > { %8027 = vmatmul.mubr.msk.bf16.gmra.mrb[4].mxu1 %vm885_vm4, %v9769_v58 }
  0x70   : > { %8030 = vmatprep.mubr.msk.bf16.mxu1 %vm885_vm4, %v9800_v57 }
  0x74   : > { %8177 = vmatmul.mubr.msk.bf16.vlgmr.msra.gmra.mrb[0].mxu0 %vm885_vm4, %v9769_v58  ;;  %v10209_v58 = vld [vmem:[%s10006_s18 + $0x48] sm:$0xf] }
  0x75   : > { %8197 = vmatpush3.bf16.msra.mxu0 %v2307_v56  ;;  %8180 = vmatprep.mubr.msk.bf16.mxu0 %vm885_vm4, %v9800_v57  ;;  %v2875_v56 = vrot.slane %v2873_v34, 5  ;;  %v10065_v34 = vld [vmem:[%s10006_s18 + $0xc] sm:$0xf] }
  0x76   : > { %9181 = vmatprep.subr.msk.bf16.mxu0 %vm916_vm0, %v9977_v26  ;;  %v7271_v29 = vrot.slane %v10065_v34, 9 }
  0x77   : > { %8031 = vmatmul.mubr.msk.bf16.gmra.mrb[8].mxu1 %vm885_vm4, %v9815_v38  ;;  %v2880_v18 = vor.u32 %v2879_v43, %v2875_v56  ;;  %v2876_v14 = vsel %vm9756_vm7, %v2871_v11, %v2875_v56  ;;  %v7124_v43 = vrot.slane %v9887_v24, 9  ;;  %v3145_v56 = vrot.slane %v10062_v55, 5  ;;  %v10082_v24 = vld [vmem:[%s10006_s18 + $0x18] sm:$0xf] }
  0x78   : > { %8034 = vmatprep.mubr.msk.bf16.mxu1 %vm885_vm4, %v9832_v0  ;;  %v1246_v11 = vrot.slane %v1244_v3, 4  ;;  %v7272_v5 = vrot.slane %v10082_v24, 9 }
  0x79   : > { %v2881_v54 = vrot.slane %v2880_v18, 4  ;;  %v10088_v60 = vsel %vm9501_vm3, %v7124_v43, %v1244_v3  ;;  %v10098_v18 = vsel %vm9501_vm3, %v7270_v4, %v3145_v56  ;;  %v10125_v4 = vld [vmem:[%s10006_s18 + $0x20] sm:$0x1] }
  0x7a   : > { %11521 = vst [vmem:[#allocation21_spill] sm:$0xff] %v10098_v18 }
  0x7b   : > { %v2886_v22 = vsel %vm9756_vm7, %v2881_v54, %v2885_v41  ;;  %v3147_v41 = vrot.slane %v3145_v56, 4  ;;  %v3155_v54 = vrot.slane %v10092_v30, 5 }
  0x7c   : > { %8181 = vmatmul.mubr.msk.bf16.gmra.mrb[4].mxu0 %vm885_vm4, %v9815_v38  ;;  %v10059_v52 = vcombine.low %v2876_v14, %v2886_v22  ;;  %v3152_v14 = vrot.slane %v10079_v1, 5  ;;  %v10112_v22 = vld [vmem:[%s10006_s18 + $0x28] sm:$0xf] }
  0x7d   : > { %8184 = vmatprep.mubr.msk.bf16.mxu0 %vm885_vm4, %v9832_v0 }
  0x7e   : > { %11520 = vst [vmem:[#allocation20_spill] sm:$0xff] %v10059_v52  ;;  %v3153_v3 = vsel %vm9501_vm3, %v7271_v29, %v3152_v14  ;;  %v7273_v29 = vrot.slane %v10109_v63, 9  ;;  %v10260_v52 = vld [vmem:[%s10238_s28 + $0x10] sm:$0xf] }
  0x7f   : > { %8035 = vmatmul.mubr.msk.bf16.gmra.mrb[12].mxu1 %vm885_vm4, %v9850_v40 }
  0x80   : > { %8038 = vmatprep.mubr.msk.bf16.mxu1 %vm885_vm4, %v9860_v50 }
  0x84   : > { %8185 = vmatmul.mubr.msk.bf16.gmra.mrb[8].mxu0 %vm885_vm4, %v9850_v40 }
  0x85   : > { %8188 = vmatprep.mubr.msk.bf16.mxu0 %vm885_vm4, %v9860_v50  ;;  %v10148_v50 = vld [vmem:[%s11457_s5 + $0x2] sm:$0x3] }
  0x87   : > { %8039 = vmatmul.mubr.msk.bf16.gmra.mrb[16].mxu1 %vm885_vm4, %v9872_v16 }
  0x88   : > { %8044 = vmatprep.mubr.msk.bf16.mxu1 %vm885_vm4, %v7104_v31  ;;  %v10070_v31 = vld [vmem:[%s10006_s18 + $0x8] sm:$0x1] }
  0x89   : > { %v3148_v2 = vrot.slane %v10070_v31, 5 }
  0x8b   : > { %v10120_v43 = vsel %vm9501_vm3, %v3147_v41, %v3148_v2  ;;  %v3159_v2 = vrot.slane %v10106_v13, 5  ;;  %v3166_v41 = vrot.slane %v10112_v22, 5 }
  0x8c   : > { %8189 = vmatmul.mubr.msk.bf16.gmra.mrb[12].mxu0 %vm885_vm4, %v9872_v16  ;;  %11522 = vst [vmem:[#allocation22_spill] sm:$0xff] %v10120_v43  ;;  %v2560_v16 = vsel %vm916_vm0, %v9977_v26, 0 }
  0x8d   : > { %8192 = vmatprep.mubr.msk.bf16.mxu0 %vm885_vm4, %v9919_v21  ;;  %v3160_v27 = vsel %vm9501_vm3, %v7272_v5, %v3159_v2  ;;  %v3167_v0 = vsel %vm9501_vm3, %v7273_v29, %v3166_v41  ;;  %v3168_v38 = vrot.slane %v3166_v41, 4  ;;  %v10161_v5 = vld [vmem:[%s10006_s18 + $0x3c] sm:$0xf] }
  0x8f   : > { %8045 = vmatmul.mubr.msk.bf16.vlgmr.msra.gmra.mrb[0].mxu1 %vm885_vm4, %v10054_v23 }
  0x90   : > { %8048 = vmatprep.mubr.msk.bf16.mxu1 %vm885_vm4, %v9665_v25  ;;  %8065 = vmatpush3.bf16.msra.mxu1 %v1375_v35  ;;  %v10128_v35 = vld [vmem:[%s10006_s18 + $0x2c] sm:$0x1] }
  0x91   : > { %v3169_v21 = vrot.slane %v10128_v35, 5 }
  0x93   : > { %v3170_v29 = vsel %vm9501_vm3, %v3168_v38, %v3169_v21 }
  0x94   : > { %8193 = vmatmul.mubr.msk.bf16.gmra.mrb[16].mxu0 %vm885_vm4, %v7205_v7  ;;  %v10116_v7 = vsel %vm9501_vm3, %v1246_v11, %v1247_v28  ;;  %v3154_v28 = vrot.slane %v3152_v14, 4  ;;  %v3162_v11 = vrot.slane %v10125_v4, 5  ;;  %v3161_v14 = vrot.slane %v3159_v2, 4 }
  0x95   : > { %8198 = vmatprep.mubr.msk.bf16.mxu0 %vm885_vm4, %v9570_v36 }
  0x96   : > { %v3156_v56 = vsel %vm9501_vm3, %v3154_v28, %v3155_v54  ;;  %v10155_v54 = vld [vmem:[%s10006_s18 + $0x30] sm:$0xf]  ;;  %v10158_v28 = vld [vmem:[%s10006_s18 + $0x34] sm:$0xf]  ;;  %v3163_v26 = vsel %vm9501_vm3, %v3161_v14, %v3162_v11  ;;  %v10186_v11 = vld [vmem:[%s10006_s18 + $0x44] sm:$0x1]  ;;  %v10188_v14 = vcombine.low %v3167_v0, %v3170_v29 }
  0x97   : > { %v10150_v40 = vcombine.low %v3153_v3, %v3156_v56  ;;  %8049 = vmatmul.mubr.msk.bf16.gmra.mrb[4].mxu1 %vm885_vm4, %v9724_v37  ;;  %v10170_v3 = vld [vmem:[%s10006_s18 + $0x40] sm:$0xf]  ;;  %v10175_v56 = vld [vmem:[%s10006_s18 + $0x38] sm:$0x1]  ;;  %v10177_v2 = vcombine.low %v3160_v27, %v3163_v26  ;;  %v7274_v41 = vrot.slane %v10155_v54, 9  ;;  %v7275_v26 = vrot.slane %v10161_v5, 9 }
  0x98   : > { %8052 = vmatprep.mubr.msk.bf16.mxu1 %vm885_vm4, %v9732_v46  ;;  %11525 = vst [vmem:[#allocation25_spill] sm:$0xff] %v10188_v14  ;;  %v3176_v27 = vrot.slane %v10175_v56, 5  ;;  %v3180_v38 = vrot.slane %v10170_v3, 5 }
  0x99   : > { %11523 = vst [vmem:[#allocation23_spill] sm:$0xff] %v10150_v40  ;;  %11524 = vst [vmem:[#allocation24_spill] sm:$0xff] %v10177_v2  ;;  %v3173_v40 = vrot.slane %v10158_v28, 5  ;;  %v3183_v2 = vrot.slane %v10186_v11, 5 }
  0x9a   : > { %v3181_v0 = vsel %vm9501_vm3, %v7275_v26, %v3180_v38  ;;  %v3182_v29 = vrot.slane %v3180_v38, 4  ;;  %v3194_v26 = vrot.slane %v10013_v20, 5  ;;  %v3197_v38 = vrot.slane %v10024_v61, 5 }
  0x9b   : > { %v3175_v21 = vrot.slane %v3173_v40, 4 }
  0x9c   : > { %8199 = vmatmul.mubr.msk.bf16.vlgmr.msra.gmra.mrb[0].mxu0 %vm885_vm4, %v9628_v62  ;;  %v3184_v43 = vsel %vm9501_vm3, %v3182_v29, %v3183_v2  ;;  %v7276_v2 = vrot.slane %v10209_v58, 9  ;;  %v3196_v61 = vrot.slane %v3194_v26, 4 }
  0x9d   : > { %8219 = vmatpush3.bf16.msra.mxu0 %v2560_v16  ;;  %8202 = vmatprep.mubr.msk.bf16.mxu0 %vm885_vm4, %v9640_v8  ;;  %v3174_v16 = vsel %vm9501_vm3, %v7274_v41, %v3173_v40  ;;  %v3177_v14 = vsel %vm9501_vm3, %v3175_v21, %v3176_v27  ;;  %v10206_v18 = vcombine.low %v3181_v0, %v3184_v43  ;;  %v10212_v40 = vld [vmem:[%s10006_s18 + $0x4c] sm:$0xf]  ;;  %v10217_v41 = vld [vmem:[%s10006_s18 + $0x50] sm:$0x1]  ;;  %v7277_v27 = vrot.slane %v10009_v12, 9 }
  0x9e   : > { %9182 = vmatprep.subr.msk.bf16.mxu0 %vm916_vm0, %v10148_v50  ;;  %v10202_v57 = vcombine.low %v3174_v16, %v3177_v14  ;;  %v3187_v43 = vrot.slane %v10212_v40, 5  ;;  %v3190_v14 = vrot.slane %v10217_v41, 5 }
  0x9f   : > { %11527 = vst [vmem:[#allocation27_spill] sm:$0xff] %v10206_v18  ;;  %8053 = vmatmul.mubr.msk.bf16.gmra.mrb[8].mxu1 %vm885_vm4, %v9736_v42  ;;  %v3195_v0 = vsel %vm9501_vm3, %v7277_v27, %v3194_v26  ;;  %v10249_v18 = vld [vmem:[%s10238_s28] sm:$0xf]  ;;  %v10265_v27 = vld [vmem:[%s10238_s28 + $0x8] sm:$0x1] }
  0xa0   : > { %11526 = vst [vmem:[#allocation26_spill] sm:$0xff] %v10202_v57  ;;  %8056 = vmatprep.mubr.msk.bf16.mxu1 %vm885_vm4, %v9742_v49  ;;  %v3188_v16 = vsel %vm9501_vm3, %v7276_v2, %v3187_v43  ;;  %v3189_v21 = vrot.slane %v3187_v43, 4  ;;  %v3198_v43 = vsel %vm9501_vm3, %v3196_v61, %v3197_v38  ;;  %v10252_v57 = vld [vmem:[%s10238_s28 + $0x4] sm:$0xf]  ;;  %11530 = vst [vmem:[#allocation30_spill] sm:$0xff] %v10265_v27  ;;  %v7278_v38 = vrot.slane %v10249_v18, 9 }
  0xa1   : > { %v10254_v9 = vcombine.low %v3195_v0, %v3198_v43  ;;  %v10272_v26 = vld [vmem:[%s10238_s28 + $0x14] sm:$0x1]  ;;  %v7279_v0 = vrot.slane %v10257_v19, 9  ;;  %v3208_v61 = vrot.slane %v10260_v52, 5 }
  0xa2   : > { %v3191_v29 = vsel %vm9501_vm3, %v3189_v21, %v3190_v14  ;;  %v11531_v14 = vld [vmem:[#allocation5_spill] sm:$0xff]  ;;  %v3204_v21 = vrot.slane %v10265_v27, 5 }
  0xa3   : > { %v10244_v2 = vcombine.low %v3188_v16, %v3191_v29  ;;  %11529 = vst [vmem:[#allocation29_spill] sm:$0xff] %v10254_v9  ;;  %v3201_v16 = vrot.slane %v10252_v57, 5  ;;  %v3211_v29 = vrot.slane %v10272_v26, 5  ;;  %v3210_v15 = vrot.slane %v3208_v61, 4 }
  0xa4   : > { %8203 = vmatmul.mubr.msk.bf16.gmra.mrb[4].mxu0 %vm885_vm4, %v9654_v17 }
  0xa5   : > { %8206 = vmatprep.mubr.msk.bf16.mxu0 %vm885_vm4, %v9714_v33  ;;  %11528 = vst [vmem:[#allocation28_spill] sm:$0xff] %v10244_v2  ;;  %v3202_v43 = vsel %vm9501_vm3, %v7278_v38, %v3201_v16  ;;  %v3203_v9 = vrot.slane %v3201_v16, 4  ;;  %v3209_v2 = vsel %vm9501_vm3, %v7279_v0, %v3208_v61  ;;  %v11532_v38 = vcombine.low %v10088_v60, %v10116_v7 }
  0xa6   : > { %v11534_v60 = vcombine.low %v9905_v51, %v9923_v39  ;;  %v10326_v7 = vcombine.low %v10082_v24, %v10106_v13  ;;  %v10333_v51 = vld [vmem:[%s11457_s5 + $0x4] sm:$0x3]  ;;  %v2709_v39 = vshrl.u32 %v10062_v55, 16  ;;  %v2705_v16 = vshll.u32 %v10062_v55, 16 }
  0xa7   : > { %8057 = vmatmul.mubr.msk.bf16.gmra.mrb[12].mxu1 %vm885_vm4, %v9882_v53  ;;  %v3212_v53 = vsel %vm9501_vm3, %v3210_v15, %v3211_v29  ;;  %v11533_v15 = vld [vmem:[#allocation4_spill] sm:$0xff]  ;;  %v2723_v0 = vshll.u32 %v10065_v34, 16 }
  0xa8   : > { %8060 = vmatprep.mubr.msk.bf16.mxu1 %vm885_vm4, %v9892_v45  ;;  %v3205_v45 = vsel %vm9501_vm3, %v3203_v9, %v3204_v21  ;;  %v10292_v49 = vcombine.low %v3209_v2, %v3212_v53  ;;  %v7155_v9 = vld [vmem:[%s11456_s4 + $0x6] sm:$0x3]  ;;  %v7229_v53 = vcombine.low %v10057_v47, %v10062_v55  ;;  %v2998_v2 = vsel %vm916_vm0, %v10148_v50, 0 }
  0xa9   : > { %v10288_v27 = vcombine.low %v3202_v43, %v3205_v45  ;;  %9175 = vmatprep.subr.msk.bf16.mxu1 %vm916_vm0, %v7155_v9  ;;  %v1521_v45 = vsel %vm916_vm0, %v7155_v9, 0  ;;  %v2699_v50 = vshll.u32 %v10057_v47, 16  ;;  %v2720_v21 = vshrl.u32 %v10065_v34, 16 }
  0xaa   : > { %v10375_v43 = vrot.slane %v2705_v16, 5  ;;  %v2744_v55 = vshrl.u32 %v10082_v24, 16  ;;  %v2747_v9 = vshll.u32 %v10082_v24, 16  ;;  %v2725_v24 = vrot.slane %v2723_v0, 5 }
  0xab   : > { %v2701_v29 = vrot.slane %v2699_v50, 5  ;;  %v2771_v0 = vshll.u32 %v10109_v63, 16 }
  0xac   : > { %8207 = vmatmul.mubr.msk.bf16.gmra.mrb[8].mxu0 %vm885_vm4, %v11531_v14  ;;  %v2746_v50 = vrot.slane %v2744_v55, 4 }
  0xad   : > { %8210 = vmatprep.mubr.msk.bf16.mxu0 %vm885_vm4, %v9720_v32 }
  0xaf   : > { %8061 = vmatmul.mubr.msk.bf16.gmra.mrb[16].mxu1 %vm885_vm4, %v9936_v10 }
  0xb0   : > { %8066 = vmatprep.mubr.msk.bf16.mxu1 %vm885_vm4, %v11532_v38  ;;  %v2733_v38 = vshrl.u32 %v10079_v1, 16 }
  0xb4   : > { %8211 = vmatmul.mubr.msk.bf16.gmra.mrb[12].mxu0 %vm885_vm4, %v9726_v44 }
  0xb5   : > { %8214 = vmatprep.mubr.msk.bf16.mxu0 %vm885_vm4, %v9738_v48  ;;  %v10322_v48 = vcombine.low %v10065_v34, %v10079_v1  ;;  %v2757_v34 = vshrl.u32 %v10106_v13, 16 }
  0xb7   : > { %8067 = vmatmul.mubr.msk.bf16.vlgmr.msra.gmra.mrb[0].mxu1 %vm885_vm4, %v11533_v15  ;;  %v2722_v15 = vrot.slane %v2720_v21, 4  ;;  %v2759_v21 = vrot.slane %v2757_v34, 4  ;;  %v2763_v34 = vshll.u32 %v10125_v4, 16  ;;  %v7167_v4 = vld [vmem:[%s11456_s4 + $0x8] sm:$0x3] }
  0xb8   : > { %8070 = vmatprep.mubr.msk.bf16.mxu1 %vm885_vm4, %v9570_v36  ;;  %8087 = vmatpush3.bf16.msra.mxu1 %v1521_v45  ;;  %v10347_v36 = vcombine.low %v10109_v63, %v10112_v22  ;;  %v2753_v45 = vshll.u32 %v10106_v13, 16  ;;  %v2768_v13 = vshrl.u32 %v10109_v63, 16  ;;  %v2795_v63 = vshll.u32 %v10155_v54, 16 }
  0xb9   : > { %9176 = vmatprep.subr.msk.bf16.mxu1 %vm916_vm0, %v7167_v4 }
  0xba   : > { %v10400_v16 = vrot.slane %v2753_v45, 5  ;;  %v2805_v45 = vshrl.u32 %v10158_v28, 16 }
  0xbc   : > { %8215 = vmatmul.mubr.msk.bf16.gmra.mrb[16].mxu0 %vm885_vm4, %v11534_v60 }
  0xbd   : > { %8220 = vmatprep.mubr.msk.bf16.mxu0 %vm885_vm4, %v7229_v53  ;;  %v2729_v53 = vshll.u32 %v10079_v1, 16 }
  0xbf   : > { %8071 = vmatmul.mubr.msk.bf16.gmra.mrb[4].mxu1 %vm885_vm4, %v9628_v62  ;;  %v10351_v62 = vcombine.low %v10155_v54, %v10158_v28 }
  0xc0   : > { %8074 = vmatprep.mubr.msk.bf16.mxu1 %vm885_vm4, %v9640_v8  ;;  %v2696_v8 = vshrl.u32 %v10057_v47, 16  ;;  %v2711_v47 = vrot.slane %v2709_v39, 4  ;;  %v2749_v39 = vrot.slane %v2747_v9, 5 }
  0xc2   : > { %v2698_v61 = vrot.slane %v2696_v8, 4  ;;  %v2712_v1 = vor.u32 %v2711_v47, %v10375_v43  ;;  %v2735_v8 = vrot.slane %v2733_v38, 4  ;;  %v2781_v47 = vshrl.u32 %v10112_v22, 16 }
  0xc4   : > { %8221 = vmatmul.mubr.msk.bf16.vlgmr.msra.gmra.mrb[0].mxu0 %vm885_vm4, %v10322_v48  ;;  %v2702_v60 = vor.u32 %v2701_v29, %v2698_v61  ;;  %v10405_v61 = vcombine.low %v10249_v18, %v10252_v57  ;;  %v2739_v29 = vshll.u32 %v10092_v30, 16  ;;  %v2713_v55 = vrot.slane %v2712_v1, 4 }
  0xc5   : > { %8241 = vmatpush3.bf16.msra.mxu0 %v2998_v2  ;;  %8224 = vmatprep.mubr.msk.bf16.mxu0 %vm885_vm4, %v10326_v7  ;;  %v10393_v2 = vrot.slane %v2729_v53, 5  ;;  %v2750_v53 = vor.u32 %v2749_v39, %v2746_v50  ;;  %v2760_v30 = vor.u32 %v2759_v21, %v10400_v16  ;;  %v2770_v1 = vrot.slane %v2768_v13, 4 }
  0xc6   : > { %9183 = vmatprep.subr.msk.bf16.mxu0 %vm916_vm0, %v10333_v51  ;;  %11537 = vst [vmem:[#allocation31_spill] sm:$0xff] %v10405_v61  ;;  %v2703_v38 = vrot.slane %v2702_v60, 4  ;;  %v2801_v60 = vshll.u32 %v10158_v28, 16  ;;  %v2765_v39 = vrot.slane %v2763_v34, 5  ;;  %v2783_v21 = vrot.slane %v2781_v47, 4 }
  0xc7   : > { %8075 = vmatmul.mubr.msk.bf16.gmra.mrb[8].mxu1 %vm885_vm4, %v9654_v17  ;;  %v10367_v17 = vcombine.low %v10161_v5, %v10170_v3  ;;  %v2751_v50 = vrot.slane %v2750_v53, 4  ;;  %v2761_v6 = vrot.slane %v2760_v30, 4  ;;  %v2797_v28 = vrot.slane %v2795_v63, 5 }
  0xc8   : > { %8078 = vmatprep.mubr.msk.bf16.mxu1 %vm885_vm4, %v9714_v33  ;;  %v10373_v33 = vcombine.low %v10209_v58, %v10212_v40  ;;  %v2829_v13 = vshrl.u32 %v10170_v3, 16  ;;  %v2811_v34 = vshll.u32 %v10175_v56, 16  ;;  %v2825_v63 = vshll.u32 %v10170_v3, 16 }
  0xc9   : > { %v2849_v56 = vshll.u32 %v10212_v40, 16 }
  0xca   : > { %11535 = vst [vmem:[#allocation5_spill] sm:$0xff] %v10373_v33 }
  0xcc   : > { %8225 = vmatmul.mubr.msk.bf16.gmra.mrb[4].mxu0 %vm885_vm4, %v10347_v36 }
  0xcd   : > { %8228 = vmatprep.mubr.msk.bf16.mxu0 %vm885_vm4, %v10351_v62 }
  0xcf   : > { %8079 = vmatmul.mubr.msk.bf16.gmra.mrb[12].mxu1 %vm885_vm4, %v11531_v14  ;;  %v2715_v14 = vshll.u32 %v10070_v31, 16  ;;  %v2726_v31 = vor.u32 %v2725_v24, %v2722_v15  ;;  %v2777_v15 = vshll.u32 %v10112_v22, 16  ;;  %v2741_v24 = vrot.slane %v2739_v29, 5 }
  0xd0   : > { %8082 = vmatprep.mubr.msk.bf16.mxu1 %vm885_vm4, %v9720_v32  ;;  %v10398_v32 = vcombine.low %v10009_v12, %v10013_v20  ;;  %v2792_v12 = vshrl.u32 %v10155_v54, 16  ;;  %v2736_v20 = vor.u32 %v2735_v8, %v10393_v2 }
  0xd1   : > { %v2717_v9 = vrot.slane %v2715_v14, 5  ;;  %v2727_v54 = vrot.slane %v2726_v31, 4  ;;  %v2773_v14 = vrot.slane %v2771_v0, 5  ;;  %v10438_v31 = vrot.slane %v2777_v15, 5 }
  0xd2   : > { %11536 = vst [vmem:[#allocation4_spill] sm:$0xff] %v10398_v32  ;;  %v2737_v8 = vrot.slane %v2736_v20, 4  ;;  %v2794_v29 = vrot.slane %v2792_v12, 4  ;;  %v2756_v12 = vsel %vm9756_vm7, %v2751_v50, %v10400_v16  ;;  %v2787_v20 = vshll.u32 %v10128_v35, 16 }
  0xd3   : > { %v2718_v22 = vsel %vm9756_vm7, %v2713_v55, %v2717_v9  ;;  %v2774_v0 = vor.u32 %v2773_v14, %v2770_v1  ;;  %v1689_v55 = vsel %vm916_vm0, %v7167_v4, 0  ;;  %v2732_v47 = vsel %vm9756_vm7, %v2727_v54, %v10393_v2 }
  0xd4   : > { %8229 = vmatmul.mubr.msk.bf16.gmra.mrb[8].mxu0 %vm885_vm4, %v10367_v17  ;;  %v2742_v9 = vsel %vm9756_vm7, %v2737_v8, %v2741_v24  ;;  %v2784_v2 = vor.u32 %v2783_v21, %v10438_v31  ;;  %v2798_v53 = vor.u32 %v2797_v28, %v2794_v29  ;;  %v2840_v16 = vshrl.u32 %v10209_v58, 16 }
  0xd5   : > { %8232 = vmatprep.mubr.msk.bf16.mxu0 %vm885_vm4, %v10373_v33  ;;  %v10441_v33 = vrot.slane %v2801_v60, 5  ;;  %v2843_v35 = vshll.u32 %v10209_v58, 16  ;;  %v2775_v30 = vrot.slane %v2774_v0, 4  ;;  %v2831_v60 = vrot.slane %v2829_v13, 4 }
  0xd6   : > { %v2785_v58 = vrot.slane %v2784_v2, 4  ;;  %v2799_v24 = vrot.slane %v2798_v53, 4  ;;  %v2842_v3 = vrot.slane %v2840_v16, 4  ;;  %v3276_v14 = vsel %vm916_vm0, %v10333_v51, 0  ;;  %v11538_v16 = vld [vmem:[#allocation6_spill] sm:$0xff] }
  0xd7   : > { %8083 = vmatmul.mubr.msk.bf16.gmra.mrb[16].mxu1 %vm885_vm4, %v9726_v44  ;;  %v10429_v44 = vcombine.low %v10257_v19, %v10260_v52  ;;  %v2845_v1 = vrot.slane %v2843_v35, 5  ;;  %v2851_v8 = vrot.slane %v2849_v56, 5  ;;  %v2891_v13 = vshll.u32 %v10249_v18, 16 }
  0xd8   : > { %8088 = vmatprep.mubr.msk.bf16.mxu1 %vm885_vm4, %v10054_v23  ;;  %v2708_v23 = vsel %vm9756_vm7, %v2703_v38, %v10375_v43  ;;  %v2807_v43 = vrot.slane %v2805_v45, 4  ;;  %v2819_v38 = vshll.u32 %v10161_v5, 16  ;;  %v10471_v45 = vcombine.low %v2732_v47, %v2742_v9 }
  0xd9   : > { %v2804_v21 = vsel %vm9756_vm7, %v2799_v24, %v10441_v33  ;;  %v2915_v35 = vshll.u32 %v10257_v19, 16  ;;  %v2921_v56 = vshll.u32 %v10260_v52, 16 }
  0xda   : > { %v2821_v54 = vrot.slane %v2819_v38, 5  ;;  %v2859_v38 = vshll.u32 %v10217_v41, 16 }
  0xdc   : > { %8233 = vmatmul.mubr.msk.bf16.gmra.mrb[12].mxu0 %vm885_vm4, %v10398_v32  ;;  %v7250_v32 = vcombine.low %v2708_v23, %v2718_v22  ;;  %v2827_v22 = vrot.slane %v2825_v63, 5  ;;  %v11539_v63 = vld [vmem:[#allocation15_spill] sm:$0xff] }
  0xdd   : > { %8236 = vmatprep.mubr.msk.bf16.mxu0 %vm885_vm4, %v10405_v61  ;;  %v2816_v61 = vshrl.u32 %v10161_v5, 16  ;;  %v2766_v5 = vsel %vm9756_vm7, %v2761_v6, %v2765_v39  ;;  %v2853_v6 = vshrl.u32 %v10212_v40, 16  ;;  %v2888_v40 = vshrl.u32 %v10249_v18, 16  ;;  %v10485_v39 = vld [vmem:[%s11457_s5 + $0x6] sm:$0x3] }
  0xde   : > { %v10474_v15 = vcombine.low %v2756_v12, %v2766_v5  ;;  %v2832_v28 = vor.u32 %v2831_v60, %v2827_v22  ;;  %v2861_v5 = vrot.slane %v2859_v38, 5  ;;  %v2893_v18 = vrot.slane %v2891_v13, 5  ;;  %v11542_v38 = vld [vmem:[#allocation18_spill] sm:$0xff]  ;;  %v11544_v13 = vld [vmem:[#allocation19_spill] sm:$0xff] }
  0xdf   : > { %8089 = vmatmul.mubr.msk.bf16.vlgmr.msra.gmra.mrb[0].mxu1 %vm885_vm4, %v9665_v25  ;;  %v2808_v25 = vor.u32 %v2807_v43, %v10441_v33  ;;  %v2818_v4 = vrot.slane %v2816_v61, 4  ;;  %v2855_v50 = vrot.slane %v2853_v6, 4  ;;  %v2780_v61 = vsel %vm9756_vm7, %v2775_v30, %v10438_v31 }
  0xe0   : > { %8092 = vmatprep.mubr.msk.bf16.mxu1 %vm885_vm4, %v9724_v37  ;;  %8109 = vmatpush3.bf16.msra.mxu1 %v1689_v55  ;;  %v2789_v37 = vrot.slane %v2787_v20, 5  ;;  %v2835_v31 = vshll.u32 %v10186_v11, 16  ;;  %v2846_v43 = vor.u32 %v2845_v1, %v2842_v3  ;;  %v2901_v33 = vshrl.u32 %v10252_v57, 16 }
  0xe1   : > { %v2809_v23 = vrot.slane %v2808_v25, 4  ;;  %v2822_v29 = vor.u32 %v2821_v54, %v2818_v4  ;;  %v2856_v0 = vor.u32 %v2855_v50, %v2851_v8  ;;  %v2897_v11 = vshll.u32 %v10252_v57, 16 }
  0xe2   : > { %v2790_v51 = vsel %vm9756_vm7, %v2785_v58, %v2789_v37  ;;  %v2837_v9 = vrot.slane %v2835_v31, 5  ;;  %v2833_v12 = vrot.slane %v2832_v28, 4  ;;  %v2847_v20 = vrot.slane %v2846_v43, 4  ;;  %v11540_v58 = vld [vmem:[#allocation30_spill] sm:$0xff] }
  0xe3   : > { %v2823_v47 = vrot.slane %v2822_v29, 4  ;;  %v2890_v41 = vrot.slane %v2888_v40, 4  ;;  %v2857_v2 = vrot.slane %v2856_v0, 4  ;;  %v2899_v53 = vrot.slane %v2897_v11, 5  ;;  %v11541_v40 = vld [vmem:[#allocation16_spill] sm:$0xff] }
  0xe4   : > { %8237 = vmatmul.mubr.msk.bf16.gmra.mrb[16].mxu0 %vm885_vm4, %v10429_v44  ;;  %v2912_v57 = vshrl.u32 %v10257_v19, 16  ;;  %v2925_v25 = vshrl.u32 %v10260_v52, 16  ;;  %v2838_v30 = vsel %vm9756_vm7, %v2833_v12, %v2837_v9  ;;  %v2852_v19 = vsel %vm9756_vm7, %v2847_v20, %v2851_v8  ;;  %v11545_v11 = vld [vmem:[#allocation8_spill] sm:$0xff]  ;;  %v11547_v9 = vld [vmem:[#allocation21_spill] sm:$0xff]  ;;  %v11548_v12 = vld [vmem:[#allocation22_spill] sm:$0xff] }
  0xe5   : > { %8242 = vmatprep.mubr.msk.bf16.mxu0 %vm885_vm4, %v7250_v32  ;;  %v2813_v32 = vrot.slane %v2811_v34, 5  ;;  %v2903_v34 = vrot.slane %v2901_v33, 4  ;;  %v2828_v6 = vsel %vm9756_vm7, %v2823_v47, %v2827_v22  ;;  %v2862_v37 = vsel %vm9756_vm7, %v2857_v2, %v2861_v5  ;;  %v11546_v47 = vld [vmem:[#allocation7_spill] sm:$0xff]  ;;  %v11550_v2 = vld [vmem:[#allocation9_spill] sm:$0xff] }
  0xe6   : > { %v2894_v4 = vor.u32 %v2893_v18, %v2890_v41  ;;  %v2907_v24 = vshll.u32 %v11540_v58, 16  ;;  %v2914_v60 = vrot.slane %v2912_v57, 4  ;;  %v2917_v22 = vrot.slane %v2915_v35, 5  ;;  %v7313_v41 = vld [vmem:[%s11457_s5 + $0x8] sm:$0x3]  ;;  %v11551_v18 = vld [vmem:[#allocation23_spill] sm:$0xff] }
  0xe7   : > { %8093 = vmatmul.mubr.msk.bf16.gmra.mrb[4].mxu1 %vm885_vm4, %v9732_v46  ;;  %v2814_v46 = vsel %vm9756_vm7, %v2809_v23, %v2813_v32  ;;  %v2904_v54 = vor.u32 %v2903_v34, %v2899_v53  ;;  %v10534_v32 = vcombine.low %v2828_v6, %v2838_v30  ;;  %v10536_v23 = vcombine.low %v2852_v19, %v2862_v37  ;;  %v11553_v34 = vld [vmem:[#allocation24_spill] sm:$0xff]  ;;  %v11557_v35 = vld [vmem:[#allocation26_spill] sm:$0xff]  ;;  %v11562_v19 = vld [vmem:[#allocation17_spill] sm:$0xff] }
  0xe8   : > { %8096 = vmatprep.mubr.msk.bf16.mxu1 %vm885_vm4, %v9736_v42  ;;  %v10509_v42 = vcombine.low %v2780_v61, %v2790_v51  ;;  %v10511_v55 = vcombine.low %v2804_v21, %v2814_v46  ;;  %v2923_v3 = vrot.slane %v2921_v56, 5  ;;  %v2927_v1 = vrot.slane %v2925_v25, 4  ;;  %v11556_v57 = vld [vmem:[#allocation12_spill] sm:$0xff]  ;;  %v11558_v25 = vld [vmem:[#allocation13_spill] sm:$0xff]  ;;  %v11560_v6 = vld [vmem:[#allocation14_spill] sm:$0xff] }
  0xe9   : > { %v2905_v50 = vrot.slane %v2904_v54, 4  ;;  %v2909_v8 = vrot.slane %v2907_v24, 5  ;;  %v2918_v52 = vor.u32 %v2917_v22, %v2914_v60  ;;  %v2931_v51 = vshll.u32 %v10272_v26, 16  ;;  %v11561_v30 = vld [vmem:[#allocation28_spill] sm:$0xff]  ;;  %v11563_v56 = vld [vmem:[#allocation29_spill] sm:$0xff]  ;;  %v11566_v58 = vld [vmem:[#allocation31_spill] sm:$0xff] }
  0xea   : > { %v2928_v61 = vor.u32 %v2927_v1, %v2923_v3  ;;  %v11549_v20 = vcombine.low %v11547_v9, %v11548_v12  ;;  %v3422_v5 = vsel %vm916_vm0, %v10485_v39, 0  ;;  %v3590_v37 = vsel %vm916_vm0, %v7313_v41, 0  ;;  %v11565_v54 = vld [vmem:[#allocation4_spill] sm:$0xff]  ;;  %v7338_v1 = vld [vmem:[%s11457_s5 + $0xc] sm:$0x3] }
  0xeb   : > { %v2910_v29 = vsel %vm9756_vm7, %v2905_v50, %v2909_v8  ;;  %v2919_v46 = vrot.slane %v2918_v52, 4  ;;  %v2933_v43 = vrot.slane %v2931_v51, 5  ;;  %v2472_v24 = vld [vmem:[%s10238_s28 + $0x18] sm:$0xf]  ;;  %v2473_v60 = vld [vmem:[%s10238_s28 + $0x1c] sm:$0xf] }
  0xec   : > { %8243 = vmatmul.mubr.msk.bf16.vlgmr.msra.gmra.mrb[0].mxu0 %vm885_vm4, %v10471_v45  ;;  %v2929_v28 = vrot.slane %v2928_v61, 4  ;;  %v10640_v22 = vcombine.low %v2472_v24, %v2473_v60  ;;  %v3571_v50 = vshrl.u32 %v2473_v60, 16  ;;  %v3567_v8 = vshll.u32 %v2473_v60, 16  ;;  %v7350_v9 = vld [vmem:[%s11457_s5 + $0xe] sm:$0x3] }
  0xed   : > { %8263 = vmatpush3.bf16.msra.mxu0 %v3276_v14  ;;  %8246 = vmatprep.mubr.msk.bf16.mxu0 %vm885_vm4, %v10474_v15  ;;  %v2895_v14 = vrot.slane %v2894_v4, 4  ;;  %v2924_v26 = vsel %vm9756_vm7, %v2919_v46, %v2923_v3  ;;  %v7326_v4 = vld [vmem:[%s11457_s5 + $0xa] sm:$0x3]  ;;  %v3728_v12 = vrot.slane %v2473_v60, 5 }
  0xee   : > { %9184 = vmatprep.subr.msk.bf16.mxu0 %vm916_vm0, %v10485_v39  ;;  %v2934_v33 = vsel %vm9756_vm7, %v2929_v28, %v2933_v43  ;;  %v11554_v39 = vld [vmem:[#allocation11_spill] sm:$0xff]  ;;  %v3742_v3 = vsel %vm916_vm0, %v7326_v4, 0  ;;  %v3569_v61 = vrot.slane %v3567_v8, 5  ;;  %v3573_v51 = vrot.slane %v3571_v50, 4 }
  0xef   : > { %8097 = vmatmul.mubr.msk.bf16.gmra.mrb[8].mxu1 %vm885_vm4, %v11538_v16  ;;  %v2900_v21 = vsel %vm9756_vm7, %v2895_v14, %v2899_v53  ;;  %v10565_v0 = vcombine.low %v2924_v26, %v2934_v33  ;;  %v11552_v53 = vld [vmem:[#allocation10_spill] sm:$0xff]  ;;  %v11555_v16 = vld [vmem:[#allocation25_spill] sm:$0xff]  ;;  %v3561_v14 = vshll.u32 %v2472_v24, 16 }
  0xf0   : > { %8100 = vmatprep.mubr.msk.bf16.mxu1 %vm885_vm4, %v11539_v63  ;;  %v10551_v31 = vcombine.low %v2900_v21, %v2910_v29  ;;  %v11559_v63 = vld [vmem:[#allocation27_spill] sm:$0xff]  ;;  %v2474_v21 = vld [vmem:[%s10238_s28 + $0x20] sm:$0x1]  ;;  %v3574_v46 = vor.u32 %v3573_v51, %v3569_v61 }
  0xf1   : > { %v3563_v52 = vrot.slane %v3561_v14, 5  ;;  %v3577_v28 = vshll.u32 %v2474_v21, 16 }
  0xf4   : > { %8247 = vmatmul.mubr.msk.bf16.gmra.mrb[4].mxu0 %vm885_vm4, %v10509_v42 }
  0xf5   : > { %8250 = vmatprep.mubr.msk.bf16.mxu0 %vm885_vm4, %v10511_v55 }
  0xf7   : > { %8101 = vmatmul.mubr.msk.bf16.gmra.mrb[12].mxu1 %vm885_vm4, %v11541_v40 }
  0xf8   : > { %8104 = vmatprep.mubr.msk.bf16.mxu1 %vm885_vm4, %v9936_v10  ;;  %v11543_v10 = vld [vmem:[#allocation20_spill] sm:$0xff] }
  0xfc   : > { %8251 = vmatmul.mubr.msk.bf16.gmra.mrb[8].mxu0 %vm885_vm4, %v10534_v32 }
  0xfd   : > { %8254 = vmatprep.mubr.msk.bf16.mxu0 %vm885_vm4, %v10536_v23 }
  0xff   : > { %8105 = vmatmul.mubr.msk.bf16.gmra.mrb[16].mxu1 %vm885_vm4, %v11542_v38  ;;  %v3575_v38 = vrot.slane %v3574_v46, 4 }
 0x100   : > { %8110 = vmatprep.mubr.msk.bf16.mxu1 %vm885_vm4, %v11544_v13  ;;  %v3579_v13 = vrot.slane %v3577_v28, 5 }
 0x102   : > { %v3580_v33 = vsel %vm9756_vm7, %v3575_v38, %v3579_v13 }
 0x104   : > { %8255 = vmatmul.mubr.msk.bf16.gmra.mrb[12].mxu0 %vm885_vm4, %v11543_v10 }
 0x105   : > { %8258 = vmatprep.mubr.msk.bf16.mxu0 %vm885_vm4, %v10551_v31 }
 0x107   : > { %8111 = vmatmul.mubr.msk.bf16.vlgmr.msra.gmra.mrb[0].mxu1 %vm885_vm4, %v11545_v11 }
 0x108   : > { %8114 = vmatprep.mubr.msk.bf16.mxu1 %vm885_vm4, %v11546_v47  ;;  %v3888_v47 = vsel %vm916_vm0, %v7338_v1, 0 }
 0x10c   : > { %8259 = vmatmul.mubr.msk.bf16.gmra.mrb[16].mxu0 %vm885_vm4, %v10565_v0 }
 0x10d   : > { %8264 = vmatprep.mubr.msk.bf16.mxu0 %vm885_vm4, %v11549_v20  ;;  %v7325_v20 = vrot.slane %v2472_v24, 9 }
 0x10f   : > { %8115 = vmatmul.mubr.msk.bf16.gmra.mrb[4].mxu1 %vm885_vm4, %v11550_v2  ;;  %v4425_v2 = vld [vmem:[#allocation2 + $0x60] sm:$0x80] }
 0x110   : > { %8118 = vmatprep.mubr.msk.bf16.mxu1 %vm885_vm4, %v11552_v53 }
 0x114   : > { %8265 = vmatmul.mubr.msk.bf16.vlgmr.msra.gmra.mrb[0].mxu0 %vm885_vm4, %v11551_v18 }
 0x115   : > { %8285 = vmatpush3.bf16.msra.mxu0 %v3422_v5  ;;  %8268 = vmatprep.mubr.msk.bf16.mxu0 %vm885_vm4, %v11553_v34  ;;  %v3730_v5 = vrot.slane %v3728_v12, 4 }
 0x116   : > { %9185 = vmatprep.subr.msk.bf16.mxu0 %vm916_vm0, %v7313_v41  ;;  %v3731_v41 = vrot.slane %v2474_v21, 5 }
 0x117   : > { %8119 = vmatmul.mubr.msk.bf16.gmra.mrb[8].mxu1 %vm885_vm4, %v11554_v39 }
 0x118   : > { %8122 = vmatprep.mubr.msk.bf16.mxu1 %vm885_vm4, %v11556_v57  ;;  %v3732_v53 = vsel %vm9501_vm3, %v3730_v5, %v3731_v41  ;;  %v4056_v57 = vsel %vm916_vm0, %v7350_v9, 0 }
 0x11c   : > { %8269 = vmatmul.mubr.msk.bf16.gmra.mrb[4].mxu0 %vm885_vm4, %v11555_v16 }
 0x11d   : > { %8272 = vmatprep.mubr.msk.bf16.mxu0 %vm885_vm4, %v11557_v35 }
 0x11f   : > { %8123 = vmatmul.mubr.msk.bf16.gmra.mrb[12].mxu1 %vm885_vm4, %v11558_v25  ;;  %v7363_v25 = vld [vmem:[%s11457_s5 + $0x10] sm:$0x3] }
 0x120   : > { %8126 = vmatprep.mubr.msk.bf16.mxu1 %vm885_vm4, %v11560_v6 }
 0x124   : > { %8273 = vmatmul.mubr.msk.bf16.gmra.mrb[8].mxu0 %vm885_vm4, %v11559_v63 }
 0x125   : > { %8276 = vmatprep.mubr.msk.bf16.mxu0 %vm885_vm4, %v11561_v30 }
 0x127   : > { %8127 = vmatmul.mubr.msk.bf16.gmra.mrb[16].mxu1 %vm885_vm4, %v11562_v19 }
 0x12c   : > { %8277 = vmatmul.mubr.msk.bf16.gmra.mrb[12].mxu0 %vm885_vm4, %v11563_v56 }
 0x12d   : > { %8280 = vmatprep.mubr.msk.bf16.mxu0 %vm885_vm4, %v10288_v27 }
 0x134   : > { %8281 = vmatmul.mubr.msk.bf16.gmra.mrb[16].mxu0 %vm885_vm4, %v10292_v49 }
 0x135   : > { %8286 = vmatprep.mubr.msk.bf16.mxu0 %vm885_vm4, %v10322_v48  ;;  %v11564_v48 = vld [vmem:[#allocation5_spill] sm:$0xff] }
 0x13c   : > { %8287 = vmatmul.mubr.msk.bf16.vlgmr.msra.gmra.mrb[0].mxu0 %vm885_vm4, %v10326_v7 }
 0x13d   : > { %8307 = vmatpush3.bf16.msra.mxu0 %v3590_v37  ;;  %8290 = vmatprep.mubr.msk.bf16.mxu0 %vm885_vm4, %v10347_v36 }
 0x13e   : > { %9186 = vmatprep.subr.msk.bf16.mxu0 %vm916_vm0, %v7326_v4 }
 0x144   : > { %8291 = vmatmul.mubr.msk.bf16.gmra.mrb[4].mxu0 %vm885_vm4, %v10351_v62 }
 0x145   : > { %8294 = vmatprep.mubr.msk.bf16.mxu0 %vm885_vm4, %v10367_v17 }
 0x14c   : > { %8295 = vmatmul.mubr.msk.bf16.gmra.mrb[8].mxu0 %vm885_vm4, %v11564_v48 }
 0x14d   : > { %8298 = vmatprep.mubr.msk.bf16.mxu0 %vm885_vm4, %v11565_v54 }
 0x154   : > { %8299 = vmatmul.mubr.msk.bf16.gmra.mrb[12].mxu0 %vm885_vm4, %v11566_v58 }
 0x155   : > { %8302 = vmatprep.mubr.msk.bf16.mxu0 %vm885_vm4, %v10429_v44 }
 0x15c   : > { %8303 = vmatmul.mubr.msk.bf16.gmra.mrb[16].mxu0 %vm885_vm4, %v10640_v22 }
 0x15d   : > { %8308 = vmatprep.mubr.msk.bf16.mxu0 %vm885_vm4, %v10471_v45  ;;  %v3558_v45 = vshrl.u32 %v2472_v24, 16 }
 0x15f   : > { %v3560_v40 = vrot.slane %v3558_v45, 4 }
 0x161   : > { %v3564_v29 = vor.u32 %v3563_v52, %v3560_v40 }
 0x163   : > { %v3565_v43 = vrot.slane %v3564_v29, 4 }
 0x164   : > { %8309 = vmatmul.mubr.msk.bf16.vlgmr.msra.gmra.mrb[0].mxu0 %vm885_vm4, %v10474_v15 }
 0x165   : > { %8329 = vmatpush3.bf16.msra.mxu0 %v3742_v3  ;;  %8312 = vmatprep.mubr.msk.bf16.mxu0 %vm885_vm4, %v10509_v42  ;;  %v3570_v26 = vsel %vm9756_vm7, %v3565_v43, %v3569_v61 }
 0x166   : > { %9187 = vmatprep.subr.msk.bf16.mxu0 %vm916_vm0, %v7338_v1  ;;  %v10672_v11 = vcombine.low %v3570_v26, %v3580_v33  ;;  %v2477_v1 = vld [vmem:[%s10238_s28 + $0x2c] sm:$0x1] }
 0x167   : > { %v4043_v14 = vshll.u32 %v2477_v1, 16 }
 0x169   : > { %v4045_v51 = vrot.slane %v4043_v14, 5  ;;  %v4458_v14 = vld [vmem:[#allocation2 + $0x70] sm:$0x1] }
 0x16c   : > { %8313 = vmatmul.mubr.msk.bf16.gmra.mrb[4].mxu0 %vm885_vm4, %v10511_v55 }
 0x16d   : > { %8316 = vmatprep.mubr.msk.bf16.mxu0 %vm885_vm4, %v10534_v32 }
 0x174   : > { %8317 = vmatmul.mubr.msk.bf16.gmra.mrb[8].mxu0 %vm885_vm4, %v10536_v23 }
 0x175   : > { %8320 = vmatprep.mubr.msk.bf16.mxu0 %vm885_vm4, %v11543_v10 }
 0x17c   : > { %8321 = vmatmul.mubr.msk.bf16.gmra.mrb[12].mxu0 %vm885_vm4, %v10551_v31 }
 0x17d   : > { %8324 = vmatprep.mubr.msk.bf16.mxu0 %vm885_vm4, %v10565_v0 }
 0x184   : > { %8325 = vmatmul.mubr.msk.bf16.gmra.mrb[16].mxu0 %vm885_vm4, %v10672_v11 }
 0x185   : > { %8330 = vmatprep.mubr.msk.bf16.mxu0 %vm885_vm4, %v11551_v18  ;;  %v3729_v18 = vsel %vm9501_vm3, %v7325_v20, %v3728_v12  ;;  %v4419_v12 = vld [vmem:[#allocation2 + $0x30] sm:$0x80]  ;;  %v4422_v20 = vld [vmem:[#allocation2 + $0x48] sm:$0x80] }
 0x186   : > { %v10703_v39 = vcombine.low %v3729_v18, %v3732_v53  ;;  %v4420_v5 = vsel %vm10833_vm11, 0, %v4419_v12  ;;  %v4423_v41 = vsel %vm10833_vm11, 0, %v4422_v20  ;;  %v4428_v18 = vld [vmem:[#allocation2 + $0x78] sm:$0x80]  ;;  %v4426_v53 = vsel %vm10833_vm11, 0, %v4425_v2 }
 0x187   : > { %4421 = vst [vmem:[#allocation2 + $0x30] sm:$0x80] %v4420_v5  ;;  %4424 = vst [vmem:[#allocation2 + $0x48] sm:$0x80] %v4423_v41 }
 0x188   : > { %4427 = vst [vmem:[#allocation2 + $0x60] sm:$0x80] %v4426_v53 }
 0x18c   : > { %8331 = vmatmul.mubr.msk.bf16.vlgmr.msra.gmra.mrb[0].mxu0 %vm885_vm4, %v11553_v34 }
 0x18d   : > { %8351 = vmatpush3.bf16.msra.mxu0 %v3888_v47  ;;  %8334 = vmatprep.mubr.msk.bf16.mxu0 %vm885_vm4, %v11555_v16 }
 0x18e   : > { %9188 = vmatprep.subr.msk.bf16.mxu0 %vm916_vm0, %v7350_v9 }
 0x194   : > { %8335 = vmatmul.mubr.msk.bf16.gmra.mrb[4].mxu0 %vm885_vm4, %v11557_v35 }
 0x195   : > { %8338 = vmatprep.mubr.msk.bf16.mxu0 %vm885_vm4, %v11559_v63 }
 0x19c   : > { %8339 = vmatmul.mubr.msk.bf16.gmra.mrb[8].mxu0 %vm885_vm4, %v11561_v30 }
 0x19d   : > { %8342 = vmatprep.mubr.msk.bf16.mxu0 %vm885_vm4, %v11563_v56 }
 0x1a4   : > { %8343 = vmatmul.mubr.msk.bf16.gmra.mrb[12].mxu0 %vm885_vm4, %v10288_v27 }
 0x1a5   : > { %8346 = vmatprep.mubr.msk.bf16.mxu0 %vm885_vm4, %v10292_v49 }
 0x1ac   : > { %8347 = vmatmul.mubr.msk.bf16.gmra.mrb[16].mxu0 %vm885_vm4, %v10703_v39 }
 0x1ad   : > { %8352 = vmatprep.mubr.msk.bf16.mxu0 %vm885_vm4, %v10326_v7  ;;  %v10731_v7 = vld [vmem:[%s10238_s28 + $0x24] sm:$0xf] }
 0x1ae   : > { %v7362_v33 = vrot.slane %v10731_v7, 9 }
 0x1b4   : > { %8353 = vmatmul.mubr.msk.bf16.vlgmr.msra.gmra.mrb[0].mxu0 %vm885_vm4, %v10347_v36  ;;  %v10734_v36 = vld [vmem:[%s10238_s28 + $0x28] sm:$0xf] }
 0x1b5   : > { %8373 = vmatpush3.bf16.msra.mxu0 %v4056_v57  ;;  %8356 = vmatprep.mubr.msk.bf16.mxu0 %vm885_vm4, %v10351_v62  ;;  %v7339_v62 = vcombine.low %v10731_v7, %v10734_v36  ;;  %v4037_v4 = vshrl.u32 %v10734_v36, 16  ;;  %v4431_v57 = vld [vmem:[#allocation2 + $0x90] sm:$0x80] }
 0x1b6   : > { %9189 = vmatprep.subr.msk.bf16.mxu0 %vm916_vm0, %v7363_v25 }
 0x1bc   : > { %8357 = vmatmul.mubr.msk.bf16.gmra.mrb[4].mxu0 %vm885_vm4, %v10367_v17  ;;  %v4208_v17 = vsel %vm916_vm0, %v7363_v25, 0  ;;  %v4434_v25 = vld [vmem:[#allocation2 + $0xa8] sm:$0x80] }
 0x1bd   : > { %8360 = vmatprep.mubr.msk.bf16.mxu0 %vm885_vm4, %v11564_v48 }
 0x1c4   : > { %8361 = vmatmul.mubr.msk.bf16.gmra.mrb[8].mxu0 %vm885_vm4, %v11565_v54 }
 0x1c5   : > { %8364 = vmatprep.mubr.msk.bf16.mxu0 %vm885_vm4, %v11566_v58 }
 0x1cc   : > { %8365 = vmatmul.mubr.msk.bf16.gmra.mrb[12].mxu0 %vm885_vm4, %v10429_v44 }
 0x1cd   : > { %8368 = vmatprep.mubr.msk.bf16.mxu0 %vm885_vm4, %v10640_v22  ;;  %v4039_v22 = vrot.slane %v4037_v4, 4 }
 0x1d4   : > { %8369 = vmatmul.mubr.msk.bf16.gmra.mrb[16].mxu0 %vm885_vm4, %v7339_v62  ;;  %v4435_v62 = vsel %vm10833_vm11, 0, %v4434_v25 }
 0x1d5   : > { %8374 = vmatprep.mubr.msk.bf16.mxu0 %vm885_vm4, %v10474_v15  ;;  %v4024_v15 = vshrl.u32 %v10731_v7, 16  ;;  %4436 = vst [vmem:[#allocation2 + $0xa8] sm:$0x80] %v4435_v62 }
 0x1d7   : > { %v4026_v24 = vrot.slane %v4024_v15, 4  ;;  %v4440_v15 = vld [vmem:[#allocation2 + $0xd8] sm:$0x80] }
 0x1d8   : > { %v4441_v4 = vsel %vm10833_vm11, 0, %v4440_v15 }
 0x1d9   : > { %4442 = vst [vmem:[#allocation2 + $0xd8] sm:$0x80] %v4441_v4 }
 0x1da   : > { %v10746_v44 = vpop.f32.mrb[0].mxu1 }
 0x1db   : > { %v10748_v6 = vpop.f32.mrb[1].mxu1 }
 0x1dc   : > { %8375 = vmatmul.mubr.msk.bf16.vlgmr.msra.gmra.mrb[0].mxu0 %vm885_vm4, %v10509_v42  ;;  %v10750_v19 = vpop.f32.mrb[2].mxu1  ;;  %v4027_v42 = vshll.u32 %v10731_v7, 16 }
 0x1dd   : > { %8395 = vmatpush3.bf16.msra.mxu0 %v4208_v17  ;;  %8378 = vmatprep.mubr.msk.bf16.mxu0 %vm885_vm4, %v10511_v55  ;;  %v10752_v37 = vpop.f32.mrb[3].mxu1  ;;  %v4033_v55 = vshll.u32 %v10734_v36, 16  ;;  %v4437_v17 = vld [vmem:[#allocation2 + $0xc0] sm:$0x80] }
 0x1de   : > { %v4029_v60 = vrot.slane %v4027_v42, 5  ;;  %v4438_v42 = vsel %vm10833_vm11, 0, %v4437_v17 }
 0x1df   : > { %4439 = vst [vmem:[#allocation2 + $0xc0] sm:$0x80] %v4438_v42 }
 0x1e2   : > { %v10762_v48 = vpop.f32.mrb[4].mxu1 }
 0x1e3   : > { %v10764_v54 = vpop.f32.mrb[5].mxu1 }
 0x1e4   : > { %8379 = vmatmul.mubr.msk.bf16.gmra.mrb[4].mxu0 %vm885_vm4, %v10534_v32  ;;  %v10766_v58 = vpop.f32.mrb[6].mxu1  ;;  %v4035_v32 = vrot.slane %v4033_v55, 5  ;;  %v4446_v55 = vld [vmem:[#allocation2 + $0x10] sm:$0x1] }
 0x1e5   : > { %8382 = vmatprep.mubr.msk.bf16.mxu0 %vm885_vm4, %v10536_v23  ;;  %v10768_v3 = vpop.f32.mrb[7].mxu1  ;;  %v4030_v23 = vor.u32 %v4029_v60, %v4026_v24  ;;  %v4449_v24 = vld [vmem:[#allocation2 + $0x28] sm:$0x1]  ;;  %v4447_v60 = vsel %vm10851_vm13, 0, %v4446_v55 }
 0x1e6   : > { %v4040_v45 = vor.u32 %v4039_v22, %v4035_v32  ;;  %v4452_v22 = vld [vmem:[#allocation2 + $0x40] sm:$0x1]  ;;  %4448 = vst [vmem:[#allocation2 + $0x10] sm:$0x1] %v4447_v60 }
 0x1e7   : > { %v4031_v52 = vrot.slane %v4030_v23, 4  ;;  %v4453_v23 = vsel %vm10851_vm13, 0, %v4452_v22 }
 0x1e8   : > { %v4041_v61 = vrot.slane %v4040_v45, 4  ;;  %4454 = vst [vmem:[#allocation2 + $0x40] sm:$0x1] %v4453_v23 }
 0x1ea   : > { %v10775_v50 = vpop.f32.mrb[8].mxu1 }
 0x1eb   : > { %v10777_v8 = vpop.f32.mrb[9].mxu1 }
 0x1ec   : > { %8383 = vmatmul.mubr.msk.bf16.gmra.mrb[8].mxu0 %vm885_vm4, %v11543_v10  ;;  %v10779_v40 = vpop.f32.mrb[10].mxu1  ;;  %v4046_v10 = vsel %vm9756_vm7, %v4041_v61, %v4045_v51  ;;  %v4459_v61 = vsel %vm10851_vm13, 0, %v4458_v14 }
 0x1ed   : > { %8386 = vmatprep.mubr.msk.bf16.mxu0 %vm885_vm4, %v10551_v31  ;;  %v10781_v21 = vpop.f32.mrb[11].mxu1  ;;  %v4036_v31 = vsel %vm9756_vm7, %v4031_v52, %v4035_v32  ;;  %v4450_v32 = vsel %vm10851_vm13, 0, %v4449_v24  ;;  %v4461_v52 = vld [vmem:[#allocation2 + $0x88] sm:$0x1]  ;;  %4460 = vst [vmem:[#allocation2 + $0x70] sm:$0x1] %v4459_v61 }
 0x1ee   : > { %v7351_v28 = vcombine.low %v4036_v31, %v4046_v10  ;;  %4451 = vst [vmem:[#allocation2 + $0x28] sm:$0x1] %v4450_v32  ;;  %v4462_v51 = vsel %vm10851_vm13, 0, %v4461_v52  ;;  %v4464_v31 = vld [vmem:[#allocation2 + $0xa0] sm:$0x1] }
 0x1ef   : > { %v4467_v10 = vld [vmem:[#allocation2 + $0xb8] sm:$0x1]  ;;  %4463 = vst [vmem:[#allocation2 + $0x88] sm:$0x1] %v4462_v51 }
 0x1f2   : > { %v10791_v29 = vpop.f32.mrb[12].mxu1 }
 0x1f3   : > { %v10793_v46 = vpop.f32.mrb[13].mxu1 }
 0x1f4   : > { %8387 = vmatmul.mubr.msk.bf16.gmra.mrb[12].mxu0 %vm885_vm4, %v10565_v0  ;;  %v10795_v43 = vpop.f32.mrb[14].mxu1 }
 0x1f5   : > { %8390 = vmatprep.mubr.msk.bf16.mxu0 %vm885_vm4, %v10672_v11  ;;  %v10797_v38 = vpop.f32.mrb[15].mxu1  ;;  %v4197_v11 = vrot.slane %v2477_v1, 5  ;;  %v4455_v1 = vld [vmem:[#allocation2 + $0x58] sm:$0x1] }
 0x1f6   : > { %v4456_v45 = vsel %vm10851_vm13, 0, %v4455_v1 }
 0x1f7   : > { %4457 = vst [vmem:[#allocation2 + $0x58] sm:$0x1] %v4456_v45 }
 0x1fa   : > { %v10802_v0 = vpop.f32.mrb[16].mxu1 }
 0x1fb   : > { %v10804_v13 = vpop.f32.mrb[17].mxu1 }
 0x1fc   : > { %8391 = vmatmul.mubr.msk.bf16.gmra.mrb[16].mxu0 %vm885_vm4, %v7351_v28  ;;  %v10806_v59 = vpop.f32.mrb[18].mxu1  ;;  %v4465_v28 = vsel %vm10851_vm13, 0, %v4464_v31 }
 0x1fd   : > { %8396 = vmatprep.mubr.msk.bf16.mxu0 %vm885_vm4, %v11553_v34  ;;  %v10808_v26 = vpop.f32.mrb[19].mxu1  ;;  %v4194_v34 = vrot.slane %v10734_v36, 5  ;;  %v4432_v36 = vsel %vm10833_vm11, 0, %v4431_v57  ;;  %4466 = vst [vmem:[#allocation2 + $0xa0] sm:$0x1] %v4465_v28 }
 0x1fe   : > { %4433 = vst [vmem:[#allocation2 + $0x90] sm:$0x80] %v4432_v36 }
 0x204   : > { %8397 = vmatmul.mubr.msk.bf16.vlgmr.msra.gmra.mrb[0].mxu0 %vm885_vm4, %v11555_v16  ;;  %v4196_v16 = vrot.slane %v4194_v34, 4 }
 0x205   : > { %8400 = vmatprep.mubr.msk.bf16.mxu0 %vm885_vm4, %v11557_v35  ;;  %v4195_v35 = vsel %vm9501_vm3, %v7362_v33, %v4194_v34  ;;  %v4468_v34 = vsel %vm10851_vm13, 0, %v4467_v10  ;;  %v4470_v33 = vld [vmem:[#allocation2 + $0xd0] sm:$0x1] }
 0x206   : > { %4469 = vst [vmem:[#allocation2 + $0xb8] sm:$0x1] %v4468_v34 }
 0x20c   : > { %8401 = vmatmul.mubr.msk.bf16.gmra.mrb[4].mxu0 %vm885_vm4, %v11559_v63  ;;  %v4198_v63 = vsel %vm9501_vm3, %v4196_v16, %v4197_v11  ;;  %v4473_v16 = vld [vmem:[#allocation2 + $0xe8] sm:$0x1]  ;;  %v4471_v11 = vsel %vm10851_vm13, 0, %v4470_v33 }
 0x20d   : > { %8404 = vmatprep.mubr.msk.bf16.mxu0 %vm885_vm4, %v11561_v30  ;;  %v7364_v30 = vcombine.low %v4195_v35, %v4198_v63  ;;  %v4474_v35 = vsel %vm10851_vm13, 0, %v4473_v16  ;;  %4472 = vst [vmem:[#allocation2 + $0xd0] sm:$0x1] %v4471_v11 }
 0x20e   : > { %4475 = vst [vmem:[#allocation2 + $0xe8] sm:$0x1] %v4474_v35 }
 0x214   : > { %8405 = vmatmul.mubr.msk.bf16.gmra.mrb[8].mxu0 %vm885_vm4, %v11563_v56  ;;  %v4416_v56 = vld [vmem:[#allocation2 + $0x18] sm:$0x80] }
 0x215   : > { %8408 = vmatprep.mubr.msk.bf16.mxu0 %vm885_vm4, %v10288_v27  ;;  %v4417_v9 = vsel %vm10833_vm11, 0, %v4416_v56 }
 0x216   : > { %4418 = vst [vmem:[#allocation2 + $0x18] sm:$0x80] %v4417_v9 }
 0x21c   : > { %8409 = vmatmul.mubr.msk.bf16.gmra.mrb[12].mxu0 %vm885_vm4, %v10292_v49  ;;  %v4413_v49 = vld [vmem:[#allocation2] sm:$0x80] }
 0x21d   : > { %8412 = vmatprep.mubr.msk.bf16.mxu0 %vm885_vm4, %v10703_v39  ;;  %v4414_v47 = vsel %vm10833_vm11, 0, %v4413_v49  ;;  %v4429_v39 = vsel %vm10833_vm11, 0, %v4428_v18 }
 0x21e   : > { %4415 = vst [vmem:[#allocation2] sm:$0x80] %v4414_v47  ;;  %4430 = vst [vmem:[#allocation2 + $0x78] sm:$0x80] %v4429_v39 }
 0x224   : > { %8413 = vmatmul.mubr.msk.bf16.gmra.mrb[16].mxu0 %vm885_vm4, %v7364_v30  ;;  %v10886_v30 = vld [vmem:[%s11458_s6] ss:$0 sm:$0xff] }
 0x2d7   : > { %v8398_v63 = vpop.f32.mrb[0].mxu0 }
 0x2d8   : > { %v8704_v27 = vadd.f32 %v8398_v63, %v10746_v44  ;;  %v4244_v49 = vpop.f32.mrb[1].mxu0 }
 0x2d9   : > { %v8705_v56 = vadd.f32 %v4244_v49, %v10748_v6  ;;  %v8399_v47 = vpop.f32.mrb[2].mxu0 }
 0x2da   : > { %v4352_v9 = vadd.f32 %v8704_v27, %v10886_v30  ;;  %v8706_v12 = vadd.f32 %v8399_v47, %v10750_v19  ;;  %v4247_v20 = vpop.f32.mrb[3].mxu0 }
 0x2db   : > { %v4350_v5 = vadd.f32 %v8705_v56, %v10886_v30  ;;  %v8707_v41 = vadd.f32 %v4247_v20, %v10752_v37 }
 0x2dc   : > { %v4353_v2 = vadd.f32 %v8706_v12, %v10886_v30  ;;  %v4372_v53 = vmax.f32 %v4352_v9, 0.0 }
 0x2dd   : > { %v4351_v18 = vadd.f32 %v8707_v41, %v10886_v30  ;;  %v4370_v44 = vmax.f32 %v4350_v5, 0.0 }
 0x2de   : > { %v4373_v39 = vmax.f32 %v4353_v2, 0.0 }
 0x2df   : > { %v4371_v57 = vmax.f32 %v4351_v18, 0.0  ;;  %v8402_v25 = vpop.f32.mrb[4].mxu0 }
 0x2e0   : > { %v4391_v6 = vpack.c.bf16 %v4373_v39, %v4372_v53  ;;  %v8708_v7 = vadd.f32 %v8402_v25, %v10762_v48  ;;  %v4260_v36 = vpop.f32.mrb[5].mxu0 }
 0x2e1   : > { %v4390_v62 = vpack.c.bf16 %v4371_v57, %v4370_v44  ;;  %v8709_v19 = vadd.f32 %v4260_v36, %v10764_v54  ;;  %v8403_v17 = vpop.f32.mrb[6].mxu0 }
 0x2e2   : > { %4401 = vst [vmem:[#allocation2 + $0x20] sm:$0xff] %v4391_v6  ;;  %v4356_v37 = vadd.f32 %v8708_v7, %v10886_v30  ;;  %v8710_v15 = vadd.f32 %v8403_v17, %v10766_v58  ;;  %v4263_v42 = vpop.f32.mrb[7].mxu0 }
 0x2e3   : > { %4400 = vst [vmem:[#allocation2 + $0x8] sm:$0xff] %v4390_v62  ;;  %v4354_v4 = vadd.f32 %v8709_v19, %v10886_v30  ;;  %v8711_v55 = vadd.f32 %v4263_v42, %v10768_v3 }
 0x2e4   : > { %v4357_v24 = vadd.f32 %v8710_v15, %v10886_v30  ;;  %v4376_v60 = vmax.f32 %v4356_v37, 0.0 }
 0x2e5   : > { %v4355_v48 = vadd.f32 %v8711_v55, %v10886_v30  ;;  %v4374_v22 = vmax.f32 %v4354_v4, 0.0 }
 0x2e6   : > { %v4377_v32 = vmax.f32 %v4357_v24, 0.0 }
 0x2e7   : > { %v4375_v54 = vmax.f32 %v4355_v48, 0.0  ;;  %v8406_v1 = vpop.f32.mrb[8].mxu0 }
 0x2e8   : > { %v4393_v23 = vpack.c.bf16 %v4377_v32, %v4376_v60  ;;  %v8712_v45 = vadd.f32 %v8406_v1, %v10775_v50  ;;  %v4276_v14 = vpop.f32.mrb[9].mxu0 }
 0x2e9   : > { %v4392_v58 = vpack.c.bf16 %v4375_v54, %v4374_v22  ;;  %v8713_v52 = vadd.f32 %v4276_v14, %v10777_v8  ;;  %v8407_v61 = vpop.f32.mrb[10].mxu0 }
 0x2ea   : > { %4403 = vst [vmem:[#allocation2 + $0x50] sm:$0xff] %v4393_v23  ;;  %v4360_v3 = vadd.f32 %v8712_v45, %v10886_v30  ;;  %v8714_v51 = vadd.f32 %v8407_v61, %v10779_v40  ;;  %v4279_v31 = vpop.f32.mrb[11].mxu0 }
 0x2eb   : > { %4402 = vst [vmem:[#allocation2 + $0x38] sm:$0xff] %v4392_v58  ;;  %v4358_v10 = vadd.f32 %v8713_v52, %v10886_v30  ;;  %v8715_v28 = vadd.f32 %v4279_v31, %v10781_v21 }
 0x2ec   : > { %v4361_v34 = vadd.f32 %v8714_v51, %v10886_v30  ;;  %v4380_v33 = vmax.f32 %v4360_v3, 0.0 }
 0x2ed   : > { %v4359_v50 = vadd.f32 %v8715_v28, %v10886_v30  ;;  %v4378_v11 = vmax.f32 %v4358_v10, 0.0 }
 0x2ee   : > { %v4381_v16 = vmax.f32 %v4361_v34, 0.0 }
 0x2ef   : > { %v4379_v8 = vmax.f32 %v4359_v50, 0.0  ;;  %v8410_v35 = vpop.f32.mrb[12].mxu0 }
 0x2f0   : > { %v4395_v63 = vpack.c.bf16 %v4381_v16, %v4380_v33  ;;  %v8716_v27 = vadd.f32 %v8410_v35, %v10791_v29  ;;  %v4292_v49 = vpop.f32.mrb[13].mxu0 }
 0x2f1   : > { %v4394_v40 = vpack.c.bf16 %v4379_v8, %v4378_v11  ;;  %v8717_v56 = vadd.f32 %v4292_v49, %v10793_v46  ;;  %v8411_v47 = vpop.f32.mrb[14].mxu0 }
 0x2f2   : > { %4405 = vst [vmem:[#allocation2 + $0x80] sm:$0xff] %v4395_v63  ;;  %v4364_v21 = vadd.f32 %v8716_v27, %v10886_v30  ;;  %v8718_v9 = vadd.f32 %v8411_v47, %v10795_v43  ;;  %v4295_v12 = vpop.f32.mrb[15].mxu0 }
 0x2f3   : > { %4404 = vst [vmem:[#allocation2 + $0x68] sm:$0xff] %v4394_v40  ;;  %v4362_v20 = vadd.f32 %v8717_v56, %v10886_v30  ;;  %v8719_v5 = vadd.f32 %v4295_v12, %v10797_v38 }
 0x2f4   : > { %v4365_v41 = vadd.f32 %v8718_v9, %v10886_v30  ;;  %v4384_v2 = vmax.f32 %v4364_v21, 0.0 }
 0x2f5   : > { %v4363_v29 = vadd.f32 %v8719_v5, %v10886_v30  ;;  %v4382_v53 = vmax.f32 %v4362_v20, 0.0 }
 0x2f6   : > { %v4385_v18 = vmax.f32 %v4365_v41, 0.0 }
 0x2f7   : > { %v4383_v46 = vmax.f32 %v4363_v29, 0.0  ;;  %v8414_v39 = vpop.f32.mrb[16].mxu0 }
 0x2f8   : > { %v4397_v44 = vpack.c.bf16 %v4385_v18, %v4384_v2  ;;  %v8720_v57 = vadd.f32 %v8414_v39, %v10802_v0  ;;  %v4308_v25 = vpop.f32.mrb[17].mxu0 }
 0x2f9   : > { %v4396_v43 = vpack.c.bf16 %v4383_v46, %v4382_v53  ;;  %v8721_v6 = vadd.f32 %v4308_v25, %v10804_v13  ;;  %v8415_v7 = vpop.f32.mrb[18].mxu0 }
 0x2fa   : > { %4407 = vst [vmem:[#allocation2 + $0xb0] sm:$0xff] %v4397_v44  ;;  %v4368_v38 = vadd.f32 %v8720_v57, %v10886_v30  ;;  %v8722_v36 = vadd.f32 %v8415_v7, %v10806_v59  ;;  %v4311_v62 = vpop.f32.mrb[19].mxu0  ;;  %v9371_v59 = vmov (!%p7376_p9), 0  }
 0x2fb   : > { %4406 = vst [vmem:[#allocation2 + $0x98] sm:$0xff] %v4396_v43  ;;  %v4366_v19 = vadd.f32 %v8721_v6, %v10886_v30  ;;  %v8723_v17 = vadd.f32 %v4311_v62, %v10808_v26  ;;  %4480 = vst [vmem:[#allocation2 + $0x8] sm:$0xff] (!%p7376_p9), %v9371_v59 }
 0x2fc   : > { %v4369_v37 = vadd.f32 %v8722_v36, %v10886_v30  ;;  %v4388_v15 = vmax.f32 %v4368_v38, 0.0 }
 0x2fd   : > { %v4367_v0 = vadd.f32 %v8723_v17, %v10886_v30  ;;  %v4386_v4 = vmax.f32 %v4366_v19, 0.0  ;;  %4479 = sbr.rel (%p7376_p9) target bundleno = 772 (0x304), region = 60 }
 0x2fe   : > { %v4389_v42 = vmax.f32 %v4369_v37, 0.0 }
 0x2ff   : > { %v4387_v13 = vmax.f32 %v4367_v0, 0.0 }
 0x300   : > { %v4399_v55 = vpack.c.bf16 %v4389_v42, %v4388_v15 }
 0x301   : > { %v4398_v24 = vpack.c.bf16 %v4387_v13, %v4386_v4 }
 0x302   : > { %4409 = vst [vmem:[#allocation2 + $0xe0] sm:$0xff] %v4399_v55 }
 0x303   : > { %4408 = vst [vmem:[#allocation2 + $0xc8] sm:$0xff] %v4398_v24 }
 0x304 PF: > { %p7377_p10 = scmp.ne.s32.totalorder %s9353_s30, 1 }
 0x305   : > { %v9372_v26 = vmov (!%p7377_p10), 0  }
 0x306   : > { %4484 = sbr.rel (%p7377_p10) target bundleno = 781 (0x30d), region = 64  ;;  %4486 = vst [vmem:[#allocation2 + $0xe0] sm:$0xff] (!%p7377_p10), %v9372_v26 }
 0x30d PF: > { %v9259_v30 = vld [vmem:[%s11459_s7 + $0x40] sm:$0xff]   ;;  %v9260_v48 = vld [vmem:[%s11459_s7 + $0x48] sm:$0xff]   ;;  %v9261_v60 = vld [vmem:[%s11459_s7 + $0x50] sm:$0xff]   ;;  %vm4946_vm14 = vsmask.f32 7424 }
 0x30e   : > { %8416 = vmatprep.subr.bf16.mxu1 %v9259_v30  ;;  %v9262_v32 = vld [vmem:[%s11459_s7 + $0x58] sm:$0xff]   ;;  %v10942_v22 = vld [vmem:[#allocation2 + $0x8] sm:$0xff]  ;;  %v9263_v54 = vld [vmem:[%s11459_s7 + $0x60] sm:$0xff]  }
 0x30f   : > { %8417 = vmatpush3.bf16.msra.mxu1 %v9259_v30  ;;  %8432 = vmatprep.mubr.bf16.mxu1 %v10942_v22  ;;  %v9264_v1 = vld [vmem:[%s11459_s7 + $0x68] sm:$0xff]   ;;  %v9265_v23 = vld [vmem:[%s11459_s7 + $0x70] sm:$0xff]   ;;  %v9266_v45 = vld [vmem:[%s11459_s7 + $0x78] sm:$0xff]   ;;  %v4508_v28 = vshrl.u32 %v10942_v22, 16  ;;  %v4511_v33 = vshll.u32 %v10942_v22, 16 }
 0x310   : > { %8418 = vmatprep.subr.bf16.mxu1 %v9260_v48  ;;  %v9267_v14 = vld [vmem:[%s11459_s7] sm:$0xff]   ;;  %v9268_v52 = vld [vmem:[%s11459_s7 + $0x8] sm:$0xff]   ;;  %v10965_v61 = vld [vmem:[#allocation2 + $0x38] sm:$0xff] }
 0x311   : > { %v10960_v58 = vld [vmem:[#allocation2 + $0x20] sm:$0xff]  ;;  %v9269_v3 = vld [vmem:[%s11459_s7 + $0x10] sm:$0xff]   ;;  %v9270_v31 = vld [vmem:[%s11459_s7 + $0x18] sm:$0xff]   ;;  %v4510_v11 = vrot.slane %v4508_v28, 7  ;;  %v4532_v40 = vshrl.u32 %v10965_v61, 16  ;;  %v4535_v41 = vshll.u32 %v10965_v61, 16 }
 0x312   : > { %v10972_v51 = vld [vmem:[#allocation2 + $0x50] sm:$0xff]  ;;  %v10977_v10 = vld [vmem:[#allocation2 + $0x68] sm:$0xff]  ;;  %v9271_v34 = vld [vmem:[%s11459_s7 + $0x20] sm:$0xff]   ;;  %v4520_v49 = vshrl.u32 %v10960_v58, 16  ;;  %v4523_v5 = vshll.u32 %v10960_v58, 16 }
 0x313   : > { %8419 = vmatpush3.bf16.msra.mxu1 %v9260_v48  ;;  %v4487_v50 = vld [vmem:[#allocation2] sm:$0x80]  ;;  %v9272_v8 = vld [vmem:[%s11459_s7 + $0x28] sm:$0xff]   ;;  %v10993_v35 = vld [vmem:[#allocation2 + $0x98] sm:$0xff]  ;;  %v4513_v21 = vor.u32 %v4511_v33, %v4510_v11  ;;  %v4534_v2 = vrot.slane %v4532_v40, 7  ;;  %v4544_v18 = vshrl.u32 %v10972_v51, 16 }
 0x314   : > { %8420 = vmatprep.subr.bf16.mxu1 %v9261_v60  ;;  %v10986_v16 = vld [vmem:[#allocation2 + $0x80] sm:$0xff]  ;;  %v4504_v63 = vshrl.u32 %v4487_v50, 16  ;;  %v4489_v27 = vld [vmem:[#allocation2 + $0x18] sm:$0x80]  ;;  %v9273_v56 = vld [vmem:[%s11459_s7 + $0x30] sm:$0xff]   ;;  %v4522_v20 = vrot.slane %v4520_v49, 7 }
 0x315   : > { %v4516_v9 = vshrl.u32 %v4489_v27, 16  ;;  %v4491_v12 = vld [vmem:[#allocation2 + $0x30] sm:$0x80]  ;;  %v9274_v53 = vld [vmem:[%s11459_s7 + $0x38] sm:$0xff]   ;;  %v4556_v44 = vshrl.u32 %v10977_v10, 16  ;;  %v9275_v25 = vld [vmem:[%s11459_s7 + $0x80] sm:$0xff]   ;;  %v11020_v36 = vor.u32 %v4535_v41, %v4534_v2 }
 0x316   : > { %v4506_v47 = vrot.slane %v4504_v63, 7  ;;  %v11006_v29 = vld [vmem:[#allocation2 + $0xb0] sm:$0xff]  ;;  %v4528_v39 = vshrl.u32 %v4491_v12, 16  ;;  %v4493_v43 = vld [vmem:[#allocation2 + $0x48] sm:$0x80]  ;;  %v11018_v6 = vor.u32 %v4523_v5, %v4522_v20  ;;  %v5727_v62 = vrot.slane %v4523_v5, 1 }
 0x317   : > { %8421 = vmatpush3.bf16.msra.mxu1 %v9261_v60  ;;  %v4518_v57 = vrot.slane %v4516_v9, 7  ;;  %v4495_v7 = vld [vmem:[#allocation2 + $0x60] sm:$0x80]  ;;  %v4547_v19 = vshll.u32 %v10972_v51, 16  ;;  %v5739_v17 = vrot.slane %v4535_v41, 1  ;;  %v4546_v37 = vrot.slane %v4544_v18, 7 }
 0x318   : > { %8422 = vmatprep.subr.bf16.mxu1 %v9262_v32  ;;  %v4514_v46 = vsel %vm4444_vm12, %v4506_v47, %v4513_v21  ;;  %v4530_v38 = vrot.slane %v4528_v39, 7  ;;  %v4540_v0 = vshrl.u32 %v4493_v43, 16  ;;  %v11023_v15 = vor.u32 %v5727_v62, %v4520_v49  ;;  %v9276_v24 = vld [vmem:[%s11459_s7 + $0x88] sm:$0xff]   ;;  %v9279_v20 = vld [vmem:[%s11459_s7 + $0xa0] sm:$0xff]  }
 0x319   : > { %v4558_v42 = vrot.slane %v4556_v44, 7  ;;  %v4559_v4 = vshll.u32 %v10977_v10, 16  ;;  %v4526_v13 = vsel %vm4444_vm12, %v4518_v57, %v11018_v6  ;;  %v11028_v55 = vor.u32 %v5739_v17, %v4532_v40  ;;  %v9278_v40 = vld [vmem:[%s11459_s7 + $0x98] sm:$0xff]   ;;  %v4501_v5 = vld [vmem:[#allocation2 + $0xa8] sm:$0x80] }
 0x31a   : > { %v4538_v59 = vsel %vm4444_vm12, %v4530_v38, %v11020_v36  ;;  %v4552_v26 = vshrl.u32 %v4495_v7, 16  ;;  %v4568_v30 = vshrl.u32 %v10986_v16, 16  ;;  %v4580_v48 = vshrl.u32 %v10993_v35, 16  ;;  %v9280_v62 = vld [vmem:[%s11459_s7 + $0xa8] sm:$0xff]  }
 0x31b   : > { %8423 = vmatpush3.bf16.msra.mxu1 %v9262_v32  ;;  %v4542_v60 = vrot.slane %v4540_v0, 7  ;;  %v9277_v32 = vld [vmem:[%s11459_s7 + $0x90] sm:$0xff]   ;;  %v4583_v50 = vshll.u32 %v10993_v35, 16  ;;  %v4592_v21 = vshrl.u32 %v11006_v29, 16  ;;  %v4595_v39 = vshll.u32 %v11006_v29, 16 }
 0x31c   : > { %8424 = vmatprep.subr.bf16.mxu1 %v9263_v54  ;;  %v4588_v7 = vshrl.u32 %v4501_v5, 16  ;;  %v9281_v0 = vld [vmem:[%s11459_s7 + $0xb0] sm:$0xff]  }
 0x31e   : > { %v4590_v17 = vrot.slane %v4588_v7, 7 }
 0x31f   : > { %8425 = vmatpush3.bf16.msra.mxu1 %v9263_v54  ;;  %v11040_v54 = vor.u32 %v4547_v19, %v4546_v37 }
 0x320   : > { %8426 = vmatprep.subr.bf16.mxu1 %v9264_v1 }
 0x321   : > { %v4550_v63 = vsel %vm4444_vm12, %v4542_v60, %v11040_v54 }
 0x323   : > { %8427 = vmatpush3.bf16.msra.mxu1 %v9264_v1  ;;  %v4497_v1 = vld [vmem:[#allocation2 + $0x78] sm:$0x80] }
 0x324   : > { %8428 = vmatprep.subr.bf16.mxu1 %v9265_v23  ;;  %v4564_v27 = vshrl.u32 %v4497_v1, 16  ;;  %v4937_v1 = vld [vmem:[#allocation2 + $0x58] sm:$0x1] }
 0x326   : > { %v4566_v9 = vrot.slane %v4564_v27, 7  ;;  %v4941_v27 = vld [vmem:[#allocation2 + $0x88] sm:$0x1] }
 0x327   : > { %8429 = vmatpush3.bf16.msra.mxu1 %v9265_v23  ;;  %v4554_v23 = vrot.slane %v4552_v26, 7 }
 0x328   : > { %8430 = vmatprep.subr.bf16.mxu1 %v9266_v45 }
 0x32b   : > { %8431 = vmatpush3.bf16.msra.mxu1 %v9266_v45  ;;  %v11042_v45 = vor.u32 %v4559_v4, %v4558_v42 }
 0x32c   : > { %8448 = vmatprep.subr.bf16.mxu1 %v9267_v14 }
 0x32e   : > { %8433 = vmatmul.mubr.bf16.vlgmr.msra.gmra.mrb[20].mxu1 %v10960_v58 }
 0x32f   : > { %8449 = vmatpush3.bf16.msra.mxu1 %v9267_v14  ;;  %8436 = vmatprep.mubr.bf16.mxu1 %v10965_v61  ;;  %v5751_v14 = vrot.slane %v4547_v19, 1 }
 0x330   : > { %8450 = vmatprep.subr.bf16.mxu1 %v9268_v52 }
 0x331   : > { %v11046_v11 = vor.u32 %v5751_v14, %v4544_v18  ;;  %v4931_v18 = vld [vmem:[#allocation2 + $0x10] sm:$0x1] }
 0x332   : > { %v4955_v19 = vshll.u32 %v4931_v18, 16  ;;  %v9287_v18 = vld [vmem:[%s11459_s7 + $0xe0] sm:$0xff]  }
 0x333   : > { %8451 = vmatpush3.bf16.msra.mxu1 %v9268_v52  ;;  %v4499_v52 = vld [vmem:[#allocation2 + $0x90] sm:$0x80] }
 0x334   : > { %8452 = vmatprep.subr.bf16.mxu1 %v9269_v3  ;;  %v4576_v47 = vshrl.u32 %v4499_v52, 16  ;;  %v4991_v52 = vshll.u32 %v4937_v1, 16 }
 0x336   : > { %8437 = vmatmul.mubr.bf16.gmra.mrb[24].mxu1 %v10972_v51  ;;  %v4578_v41 = vrot.slane %v4576_v47, 7  ;;  %v5015_v47 = vshll.u32 %v4941_v27, 16 }
 0x337   : > { %8453 = vmatpush3.bf16.msra.mxu1 %v9269_v3  ;;  %8440 = vmatprep.mubr.bf16.mxu1 %v10977_v10  ;;  %v5763_v3 = vrot.slane %v4559_v4, 1  ;;  %v4957_v4 = vrot.slane %v4955_v19, 1 }
 0x338   : > { %8454 = vmatprep.subr.bf16.mxu1 %v9270_v31 }
 0x339   : > { %v11050_v49 = vor.u32 %v5763_v3, %v4556_v44  ;;  %v4952_v44 = vrot.slane %v4511_v33, 1  ;;  %v9284_v3 = vld [vmem:[%s11459_s7 + $0xc8] sm:$0xff]  }
 0x33b   : > { %8455 = vmatpush3.bf16.msra.mxu1 %v9270_v31  ;;  %v4570_v31 = vrot.slane %v4568_v30, 7  ;;  %v4953_v42 = vor.u32 %v4952_v44, %v4508_v28  ;;  %v9283_v28 = vld [vmem:[%s11459_s7 + $0xc0] sm:$0xff]   ;;  %v5230_v44 = vld [vmem:[#allocation2 + $0x18] sm:$0x80] }
 0x33c   : > { %8456 = vmatprep.subr.bf16.mxu1 %v9271_v34  ;;  %v5247_v19 = vshrl.u32 %v5230_v44, 16 }
 0x33e   : > { %8441 = vmatmul.mubr.bf16.gmra.mrb[28].mxu1 %v10986_v16 }
 0x33f   : > { %8457 = vmatpush3.bf16.msra.mxu1 %v9271_v34  ;;  %8444 = vmatprep.mubr.bf16.mxu1 %v10993_v35  ;;  %v4571_v34 = vshll.u32 %v10986_v16, 16 }
 0x340   : > { %8458 = vmatprep.subr.bf16.mxu1 %v9272_v8 }
 0x341   : > { %v11058_v12 = vor.u32 %v4571_v34, %v4570_v31 }
 0x343   : > { %8459 = vmatpush3.bf16.msra.mxu1 %v9272_v8  ;;  %v4582_v8 = vrot.slane %v4580_v48, 7  ;;  %v4574_v43 = vsel %vm4444_vm12, %v4566_v9, %v11058_v12  ;;  %v9286_v9 = vld [vmem:[%s11459_s7 + $0xd8] sm:$0xff]  }
 0x344   : > { %8460 = vmatprep.subr.bf16.mxu1 %v9273_v56 }
 0x345   : > { %v11063_v2 = vor.u32 %v4583_v50, %v4582_v8  ;;  %v9285_v8 = vld [vmem:[%s11459_s7 + $0xd0] sm:$0xff]  }
 0x346   : > { %8445 = vmatmul.mubr.bf16.gmra.mrb[32].mxu1 %v11006_v29 }
 0x347   : > { %8461 = vmatpush3.bf16.msra.mxu1 %v9273_v56  ;;  %8464 = vmatprep.mubr.bf16.mxu1 %v4514_v46  ;;  %v4562_v56 = vsel %vm4444_vm12, %v4554_v23, %v11042_v45  ;;  %v5787_v46 = vrot.slane %v4583_v50, 1  ;;  %v4586_v33 = vsel %vm4444_vm12, %v4578_v41, %v11063_v2  ;;  %v4939_v23 = vld [vmem:[#allocation2 + $0x70] sm:$0x1]  ;;  %v4993_v50 = vrot.slane %v4991_v52, 1 }
 0x348   : > { %8462 = vmatprep.subr.bf16.mxu1 %v9274_v53  ;;  %v5017_v41 = vrot.slane %v5015_v47, 1 }
 0x349   : > { %v11074_v38 = vor.u32 %v5787_v46, %v4580_v48  ;;  %v4958_v48 = vsel %vm4946_vm14, %v4953_v42, %v4957_v4  ;;  %v4945_v46 = vld [vmem:[#allocation2 + $0xb8] sm:$0x1]  ;;  %v5249_v42 = vrot.slane %v5247_v19, 7  ;;  %v5232_v4 = vld [vmem:[#allocation2 + $0x30] sm:$0x80] }
 0x34a   : > { %v5039_v7 = vshll.u32 %v4945_v46, 16  ;;  %v9296_v46 = vld [vmem:[%s11459_s7 + $0x128] sm:$0xff]   ;;  %v9302_v19 = vld [vmem:[%s11459_s7 + $0x158] sm:$0xff]  }
 0x34b   : > { %8463 = vmatpush3.bf16.msra.mxu1 %v9274_v53  ;;  %v5775_v53 = vrot.slane %v4571_v34, 1  ;;  %v5003_v34 = vshll.u32 %v4939_v23, 16 }
 0x34c   : > { %8480 = vmatprep.subr.bf16.mxu1 %v9275_v25 }
 0x34d   : > { %v11068_v57 = vor.u32 %v5775_v53, %v4568_v30  ;;  %v9282_v30 = vld [vmem:[%s11459_s7 + $0xb8] sm:$0xff]  }
 0x34e   : > { %8465 = vmatmul.mubr.bf16.vlgmr.msra.gmra.mrb[20].mxu1 %v4526_v13  ;;  %v4933_v13 = vld [vmem:[#allocation2 + $0x28] sm:$0x1] }
 0x34f   : > { %8481 = vmatpush3.bf16.msra.mxu1 %v9275_v25  ;;  %8468 = vmatprep.mubr.bf16.mxu1 %v4538_v59  ;;  %v4594_v25 = vrot.slane %v4592_v21, 7  ;;  %v4967_v26 = vshll.u32 %v4933_v13, 16  ;;  %v5234_v13 = vld [vmem:[#allocation2 + $0x48] sm:$0x80] }
 0x350   : > { %8482 = vmatprep.subr.bf16.mxu1 %v9276_v24 }
 0x351   : > { %v11083_v37 = vor.u32 %v4595_v39, %v4594_v25  ;;  %v4969_v22 = vrot.slane %v4967_v26, 1  ;;  %v5018_v25 = vsel %vm4946_vm14, %v11068_v57, %v5017_v41  ;;  %v5257_v26 = vsel %vm4444_vm12, %v5249_v42, %v11018_v6  ;;  %v9292_v6 = vld [vmem:[%s11459_s7 + $0x108] sm:$0xff]   ;;  %v5709_v42 = vld [vmem:[#allocation2 + $0x40] sm:$0x1] }
 0x353   : > { %8483 = vmatpush3.bf16.msra.mxu1 %v9276_v24  ;;  %v4935_v24 = vld [vmem:[#allocation2 + $0x40] sm:$0x1]  ;;  %v4598_v59 = vsel %vm4444_vm12, %v4590_v17, %v11083_v37  ;;  %v4970_v14 = vsel %vm4946_vm14, %v11023_v15, %v4969_v22 }
 0x354   : > { %8484 = vmatprep.subr.bf16.mxu1 %v9277_v32  ;;  %v4979_v60 = vshll.u32 %v4935_v24, 16 }
 0x356   : > { %8469 = vmatmul.mubr.bf16.gmra.mrb[24].mxu1 %v4550_v63  ;;  %v5005_v63 = vrot.slane %v5003_v34, 1  ;;  %v5240_v34 = vld [vmem:[#allocation2 + $0x90] sm:$0x80] }
 0x357   : > { %8485 = vmatpush3.bf16.msra.mxu1 %v9277_v32  ;;  %8472 = vmatprep.mubr.bf16.mxu1 %v4562_v56  ;;  %v4981_v32 = vrot.slane %v4979_v60, 1  ;;  %v4994_v56 = vsel %vm4946_vm14, %v11046_v11, %v4993_v50  ;;  %v9291_v60 = vld [vmem:[%s11459_s7 + $0x100] sm:$0xff]   ;;  %v5242_v50 = vld [vmem:[#allocation2 + $0xa8] sm:$0x80] }
 0x358   : > { %8486 = vmatprep.subr.bf16.mxu1 %v9278_v40 }
 0x359   : > { %v4982_v31 = vsel %vm4946_vm14, %v11028_v55, %v4981_v32  ;;  %v5238_v32 = vld [vmem:[#allocation2 + $0x78] sm:$0x80] }
 0x35a   : > { %v5295_v52 = vshrl.u32 %v5238_v32, 16 }
 0x35b   : > { %8487 = vmatpush3.bf16.msra.mxu1 %v9278_v40  ;;  %v4943_v40 = vld [vmem:[#allocation2 + $0xa0] sm:$0x1] }
 0x35c   : > { %8488 = vmatprep.subr.bf16.mxu1 %v9279_v20  ;;  %v5027_v5 = vshll.u32 %v4943_v40, 16  ;;  %v5319_v40 = vshrl.u32 %v5242_v50, 16 }
 0x35e   : > { %8473 = vmatmul.mubr.bf16.gmra.mrb[28].mxu1 %v4574_v43  ;;  %v5029_v53 = vrot.slane %v5027_v5, 1  ;;  %v5036_v43 = vrot.slane %v4595_v39, 1  ;;  %v9289_v39 = vld [vmem:[%s11459_s7 + $0xf0] sm:$0xff]   ;;  %v5244_v5 = vld [vmem:[#allocation2 + $0xc0] sm:$0x80] }
 0x35f   : > { %8489 = vmatpush3.bf16.msra.mxu1 %v9279_v20  ;;  %8476 = vmatprep.mubr.bf16.mxu1 %v4586_v33  ;;  %v5006_v20 = vsel %vm4946_vm14, %v11050_v49, %v5005_v63  ;;  %v5307_v63 = vshrl.u32 %v5240_v34, 16  ;;  %v5331_v41 = vshrl.u32 %v5244_v5, 16  ;;  %v11244_v34 = vld [vmem:[#allocation2 + $0x38] sm:$0xff] }
 0x360   : > { %8490 = vmatprep.subr.bf16.mxu1 %v9280_v62  ;;  %v5030_v33 = vsel %vm4946_vm14, %v11074_v38, %v5029_v53  ;;  %v11130_v17 = vor.u32 %v5036_v43, %v4592_v21  ;;  %v9290_v21 = vld [vmem:[%s11459_s7 + $0xf8] sm:$0xff]   ;;  %v9297_v43 = vld [vmem:[%s11459_s7 + $0x130] sm:$0xff]  }
 0x361   : > { %v5309_v47 = vrot.slane %v5307_v63, 7  ;;  %v5721_v63 = vld [vmem:[#allocation2 + $0xd0] sm:$0x1] }
 0x363   : > { %8491 = vmatpush3.bf16.msra.mxu1 %v9280_v62  ;;  %v9288_v62 = vld [vmem:[%s11459_s7 + $0xe8] sm:$0xff]  }
 0x364   : > { %8492 = vmatprep.subr.bf16.mxu1 %v9281_v0 }
 0x366   : > { %8477 = vmatmul.mubr.bf16.gmra.mrb[32].mxu1 %v4598_v59  ;;  %v5259_v59 = vshrl.u32 %v5232_v4, 16  ;;  %v5711_v4 = vld [vmem:[#allocation2 + $0x58] sm:$0x1] }
 0x367   : > { %8493 = vmatpush3.bf16.msra.mxu1 %v9281_v0  ;;  %8496 = vmatprep.mubr.bf16.mxu1 %v4958_v48  ;;  %v5041_v0 = vrot.slane %v5039_v7, 1 }
 0x368   : > { %8494 = vmatprep.subr.bf16.mxu1 %v9282_v30  ;;  %v5261_v48 = vrot.slane %v5259_v59, 7  ;;  %v5754_v59 = vshll.u32 %v5711_v4, 16 }
 0x369   : > { %v5042_v24 = vsel %vm4946_vm14, %v11130_v17, %v5041_v0  ;;  %v9304_v0 = vld [vmem:[%s11459_s7 + $0x168] sm:$0xff]  }
 0x36a   : > { %v5269_v1 = vsel %vm4444_vm12, %v5261_v48, %v11020_v36  ;;  %v5297_v36 = vrot.slane %v5295_v52, 7  ;;  %v5715_v48 = vld [vmem:[#allocation2 + $0x88] sm:$0x1] }
 0x36b   : > { %8495 = vmatpush3.bf16.msra.mxu1 %v9282_v30  ;;  %v5271_v30 = vshrl.u32 %v5234_v13, 16  ;;  %v5742_v13 = vshll.u32 %v5709_v42, 16  ;;  %v5778_v32 = vshll.u32 %v5715_v48, 16  ;;  %v11291_v42 = vld [vmem:[#allocation2 + $0x98] sm:$0xff] }
 0x36c   : > { %8512 = vmatprep.subr.bf16.mxu1 %v9283_v28  ;;  %v5305_v27 = vsel %vm4444_vm12, %v5297_v36, %v11058_v12  ;;  %v5317_v12 = vsel %vm4444_vm12, %v5309_v47, %v11063_v2  ;;  %v5814_v47 = vshll.u32 %v5721_v63, 16 }
 0x36d   : > { %v5273_v22 = vrot.slane %v5271_v30, 7  ;;  %v5713_v30 = vld [vmem:[#allocation2 + $0x70] sm:$0x1] }
 0x36e   : > { %8497 = vmatmul.mubr.bf16.vlgmr.msra.gmra.mrb[20].mxu1 %v4970_v14 }
 0x36f   : > { %8513 = vmatpush3.bf16.msra.mxu1 %v9283_v28  ;;  %8500 = vmatprep.mubr.bf16.mxu1 %v4982_v31  ;;  %v5236_v28 = vld [vmem:[#allocation2 + $0x60] sm:$0x80]  ;;  %v5281_v14 = vsel %vm4444_vm12, %v5273_v22, %v11040_v54  ;;  %v9293_v31 = vld [vmem:[%s11459_s7 + $0x110] sm:$0xff]   ;;  %v9294_v54 = vld [vmem:[%s11459_s7 + $0x118] sm:$0xff]   ;;  %v5766_v22 = vshll.u32 %v5713_v30, 16 }
 0x370   : > { %8514 = vmatprep.subr.bf16.mxu1 %v9284_v3  ;;  %v5283_v23 = vshrl.u32 %v5236_v28, 16  ;;  %v6013_v30 = vld [vmem:[#allocation2 + $0x90] sm:$0x80] }
 0x373   : > { %8515 = vmatpush3.bf16.msra.mxu1 %v9284_v3  ;;  %v5285_v3 = vrot.slane %v5283_v23, 7  ;;  %v9309_v23 = vld [vmem:[%s11459_s7 + $0x190] sm:$0xff]  }
 0x374   : > { %8516 = vmatprep.subr.bf16.mxu1 %v9285_v8 }
 0x376   : > { %8501 = vmatmul.mubr.bf16.gmra.mrb[24].mxu1 %v4994_v56  ;;  %v11162_v56 = vld [vmem:[#allocation2 + $0xc8] sm:$0xff] }
 0x377   : > { %8517 = vmatpush3.bf16.msra.mxu1 %v9285_v8  ;;  %8504 = vmatprep.mubr.bf16.mxu1 %v5006_v20  ;;  %v5293_v8 = vsel %vm4444_vm12, %v5285_v3, %v11042_v45  ;;  %v9295_v45 = vld [vmem:[%s11459_s7 + $0x120] sm:$0xff]   ;;  %v5321_v20 = vrot.slane %v5319_v40, 7  ;;  %v5338_v53 = vshll.u32 %v11162_v56, 16 }
 0x378   : > { %8518 = vmatprep.subr.bf16.mxu1 %v9286_v9 }
 0x379   : > { %v5329_v44 = vsel %vm4444_vm12, %v5321_v20, %v11083_v37  ;;  %v9298_v37 = vld [vmem:[%s11459_s7 + $0x138] sm:$0xff]   ;;  %v5811_v40 = vrot.slane %v5338_v53, 1 }
 0x37b   : > { %8519 = vmatpush3.bf16.msra.mxu1 %v9286_v9  ;;  %v5335_v9 = vshrl.u32 %v11162_v56, 16 }
 0x37c   : > { %8520 = vmatprep.subr.bf16.mxu1 %v9287_v18 }
 0x37e   : > { %8505 = vmatmul.mubr.bf16.gmra.mrb[28].mxu1 %v5018_v25  ;;  %v5333_v25 = vrot.slane %v5331_v41, 7  ;;  %v6029_v41 = vshll.u32 %v11244_v34, 16 }
 0x37f   : > { %8521 = vmatpush3.bf16.msra.mxu1 %v9287_v18  ;;  %8508 = vmatprep.mubr.bf16.mxu1 %v5030_v33  ;;  %v5337_v18 = vrot.slane %v5335_v9, 7  ;;  %v9300_v33 = vld [vmem:[%s11459_s7 + $0x148] sm:$0xff]  }
 0x380   : > { %8522 = vmatprep.subr.bf16.mxu1 %v9288_v62 }
 0x381   : > { %v11180_v2 = vor.u32 %v5338_v53, %v5337_v18  ;;  %v11262_v18 = vld [vmem:[#allocation2 + $0x50] sm:$0xff]  ;;  %v11268_v53 = vor.u32 %v5811_v40, %v5335_v9  ;;  %v9318_v40 = vld [vmem:[%s11459_s7 + $0x1d8] sm:$0xff]  }
 0x383   : > { %8523 = vmatpush3.bf16.msra.mxu1 %v9288_v62  ;;  %v5341_v7 = vsel %vm4444_vm12, %v5333_v25, %v11180_v2  ;;  %v9299_v62 = vld [vmem:[%s11459_s7 + $0x140] sm:$0xff]  }
 0x384   : > { %8524 = vmatprep.subr.bf16.mxu1 %v9289_v39 }
 0x386   : > { %8509 = vmatmul.mubr.bf16.gmra.mrb[32].mxu1 %v5042_v24  ;;  %v9306_v24 = vld [vmem:[%s11459_s7 + $0x178] sm:$0xff]  }
 0x387   : > { %8525 = vmatpush3.bf16.msra.mxu1 %v9289_v39  ;;  %8528 = vmatprep.mubr.bf16.mxu1 %v5257_v26  ;;  %v5756_v26 = vrot.slane %v5754_v59, 1 }
 0x388   : > { %8526 = vmatprep.subr.bf16.mxu1 %v9290_v21 }
 0x389   : > { %v5757_v28 = vsel %vm4946_vm14, %v11046_v11, %v5756_v26  ;;  %v9310_v11 = vld [vmem:[%s11459_s7 + $0x198] sm:$0xff]   ;;  %v6074_v26 = vshrl.u32 %v11291_v42, 16 }
 0x38b   : > { %8527 = vmatpush3.bf16.msra.mxu1 %v9290_v21  ;;  %v9307_v21 = vld [vmem:[%s11459_s7 + $0x180] sm:$0xff]  }
 0x38c   : > { %8544 = vmatprep.subr.bf16.mxu1 %v9291_v60 }
 0x38e   : > { %8529 = vmatmul.mubr.bf16.vlgmr.msra.gmra.mrb[20].mxu1 %v5269_v1  ;;  %v5768_v1 = vrot.slane %v5766_v22, 1 }
 0x38f   : > { %8545 = vmatpush3.bf16.msra.mxu1 %v9291_v60  ;;  %8532 = vmatprep.mubr.bf16.mxu1 %v5281_v14  ;;  %v5719_v14 = vld [vmem:[#allocation2 + $0xb8] sm:$0x1] }
 0x390   : > { %8546 = vmatprep.subr.bf16.mxu1 %v9292_v6  ;;  %v5769_v52 = vsel %vm4946_vm14, %v11050_v49, %v5768_v1  ;;  %v5802_v36 = vshll.u32 %v5719_v14, 16  ;;  %v9311_v49 = vld [vmem:[%s11459_s7 + $0x1a0] sm:$0xff]   ;;  %v6070_v1 = vshrl.u32 %v6013_v30, 16 }
 0x391   : > { %v6482_v30 = vld [vmem:[#allocation2 + $0x40] sm:$0x1] }
 0x393   : > { %8547 = vmatpush3.bf16.msra.mxu1 %v9292_v6  ;;  %v5717_v6 = vld [vmem:[#allocation2 + $0xa0] sm:$0x1] }
 0x394   : > { %8548 = vmatprep.subr.bf16.mxu1 %v9293_v31  ;;  %v5790_v3 = vshll.u32 %v5717_v6, 16  ;;  %v11313_v6 = vld [vmem:[#allocation2 + $0xb0] sm:$0xff] }
 0x396   : > { %8533 = vmatmul.mubr.bf16.gmra.mrb[24].mxu1 %v5293_v8  ;;  %v5792_v50 = vrot.slane %v5790_v3, 1  ;;  %v5804_v8 = vrot.slane %v5802_v36, 1  ;;  %v6086_v3 = vshrl.u32 %v11313_v6, 16 }
 0x397   : > { %8549 = vmatpush3.bf16.msra.mxu1 %v9293_v31  ;;  %8536 = vmatprep.mubr.bf16.mxu1 %v5305_v27  ;;  %v6005_v27 = vld [vmem:[#allocation2 + $0x30] sm:$0x80] }
 0x398   : > { %8550 = vmatprep.subr.bf16.mxu1 %v9294_v54  ;;  %v5805_v20 = vsel %vm4946_vm14, %v11130_v17, %v5804_v8  ;;  %v6022_v5 = vshrl.u32 %v6005_v27, 16  ;;  %v6038_v17 = vshrl.u32 %v11262_v18, 16  ;;  %v6088_v27 = vrot.slane %v6086_v3, 7 }
 0x39a   : > { %v6024_v25 = vrot.slane %v6022_v5, 7 }
 0x39b   : > { %8551 = vmatpush3.bf16.msra.mxu1 %v9294_v54  ;;  %v6026_v54 = vshrl.u32 %v11244_v34, 16 }
 0x39c   : > { %8552 = vmatprep.subr.bf16.mxu1 %v9295_v45 }
 0x39e   : > { %8537 = vmatmul.mubr.bf16.gmra.mrb[28].mxu1 %v5317_v12  ;;  %v6028_v12 = vrot.slane %v6026_v54, 7 }
 0x39f   : > { %8553 = vmatpush3.bf16.msra.mxu1 %v9295_v45  ;;  %8540 = vmatprep.mubr.bf16.mxu1 %v5329_v44  ;;  %v9312_v45 = vld [vmem:[%s11459_s7 + $0x1a8] sm:$0xff]   ;;  %v9313_v44 = vld [vmem:[%s11459_s7 + $0x1b0] sm:$0xff]  }
 0x3a0   : > { %8554 = vmatprep.subr.bf16.mxu1 %v9296_v46 }
 0x3a3   : > { %8555 = vmatpush3.bf16.msra.mxu1 %v9296_v46  ;;  %v5816_v46 = vrot.slane %v5814_v47, 1 }
 0x3a4   : > { %8556 = vmatprep.subr.bf16.mxu1 %v9297_v43 }
 0x3a5   : > { %v5817_v9 = vsel %vm4946_vm14, %v11268_v53, %v5816_v46 }
 0x3a6   : > { %8541 = vmatmul.mubr.bf16.gmra.mrb[32].mxu1 %v5341_v7  ;;  %v6007_v7 = vld [vmem:[#allocation2 + $0x48] sm:$0x80] }
 0x3a7   : > { %8557 = vmatpush3.bf16.msra.mxu1 %v9297_v43  ;;  %8560 = vmatprep.mubr.bf16.mxu1 %v10960_v58  ;;  %v9301_v58 = vld [vmem:[%s11459_s7 + $0x150] sm:$0xff]   ;;  %v6031_v43 = vor.u32 %v6029_v41, %v6028_v12 }
 0x3a8   : > { %8558 = vmatprep.subr.bf16.mxu1 %v9298_v37 }
 0x3ab   : > { %8559 = vmatpush3.bf16.msra.mxu1 %v9298_v37 }
 0x3ac   : > { %8576 = vmatprep.subr.bf16.mxu1 %v9299_v62 }
 0x3ae   : > { %8561 = vmatmul.mubr.bf16.vlgmr.msra.gmra.mrb[20].mxu1 %v10965_v61  ;;  %v9303_v61 = vld [vmem:[%s11459_s7 + $0x160] sm:$0xff]  }
 0x3af   : > { %8577 = vmatpush3.bf16.msra.mxu1 %v9299_v62  ;;  %8564 = vmatprep.mubr.bf16.mxu1 %v10972_v51  ;;  %v5707_v51 = vld [vmem:[#allocation2 + $0x28] sm:$0x1]  ;;  %v6009_v62 = vld [vmem:[#allocation2 + $0x60] sm:$0x80] }
 0x3b0   : > { %8578 = vmatprep.subr.bf16.mxu1 %v9300_v33  ;;  %v5730_v39 = vshll.u32 %v5707_v51, 16  ;;  %v6032_v51 = vsel %vm4444_vm12, %v6024_v25, %v6031_v43  ;;  %v6019_v43 = vld [vmem:[#allocation2 + $0xd8] sm:$0x80] }
 0x3b3   : > { %8579 = vmatpush3.bf16.msra.mxu1 %v9300_v33  ;;  %v6034_v33 = vshrl.u32 %v6007_v7, 16 }
 0x3b4   : > { %8580 = vmatprep.subr.bf16.mxu1 %v9301_v58 }
 0x3b5   : > { %v6036_v4 = vrot.slane %v6034_v33, 7 }
 0x3b6   : > { %8565 = vmatmul.mubr.bf16.gmra.mrb[24].mxu1 %v10977_v10  ;;  %v9305_v10 = vld [vmem:[%s11459_s7 + $0x170] sm:$0xff]  }
 0x3b7   : > { %8581 = vmatpush3.bf16.msra.mxu1 %v9301_v58  ;;  %8568 = vmatprep.mubr.bf16.mxu1 %v10986_v16  ;;  %v5732_v16 = vrot.slane %v5730_v39, 1  ;;  %v6040_v58 = vrot.slane %v6038_v17, 7 }
 0x3b8   : > { %8582 = vmatprep.subr.bf16.mxu1 %v9302_v19 }
 0x3bb   : > { %8583 = vmatpush3.bf16.msra.mxu1 %v9302_v19  ;;  %v6041_v19 = vshll.u32 %v11262_v18, 16 }
 0x3bc   : > { %8584 = vmatprep.subr.bf16.mxu1 %v9303_v61 }
 0x3be   : > { %8569 = vmatmul.mubr.bf16.gmra.mrb[28].mxu1 %v10993_v35  ;;  %v5733_v35 = vsel %vm4946_vm14, %v11023_v15, %v5732_v16  ;;  %v9308_v15 = vld [vmem:[%s11459_s7 + $0x188] sm:$0xff]   ;;  %v11289_v16 = vld [vmem:[#allocation2 + $0x80] sm:$0xff] }
 0x3bf   : > { %8585 = vmatpush3.bf16.msra.mxu1 %v9303_v61  ;;  %8572 = vmatprep.mubr.bf16.mxu1 %v11006_v29  ;;  %v5744_v29 = vrot.slane %v5742_v13, 1  ;;  %v9314_v61 = vld [vmem:[%s11459_s7 + $0x1b8] sm:$0xff]   ;;  %v6043_v13 = vor.u32 %v6041_v19, %v6040_v58  ;;  %v9320_v58 = vld [vmem:[%s11459_s7 + $0x1e8] sm:$0xff]  }
 0x3c0   : > { %8586 = vmatprep.subr.bf16.mxu1 %v9304_v0 }
 0x3c1   : > { %v5745_v60 = vsel %vm4946_vm14, %v11028_v55, %v5744_v29  ;;  %v5780_v55 = vrot.slane %v5778_v32, 1  ;;  %v6044_v48 = vsel %vm4444_vm12, %v6036_v4, %v6043_v13  ;;  %v9323_v13 = vld [vmem:[%s11459_s7 + $0x200] sm:$0xff]  }
 0x3c3   : > { %8587 = vmatpush3.bf16.msra.mxu1 %v9304_v0  ;;  %v5781_v31 = vsel %vm4946_vm14, %v11068_v57, %v5780_v55  ;;  %v5793_v57 = vsel %vm4946_vm14, %v11074_v38, %v5792_v50  ;;  %v11264_v38 = vld [vmem:[#allocation2 + $0x68] sm:$0xff]  ;;  %v6046_v0 = vshrl.u32 %v6009_v62, 16  ;;  %v6077_v55 = vshll.u32 %v11291_v42, 16 }
 0x3c4   : > { %8588 = vmatprep.subr.bf16.mxu1 %v9305_v10  ;;  %v6050_v37 = vshrl.u32 %v11264_v38, 16  ;;  %v6015_v50 = vld [vmem:[#allocation2 + $0xa8] sm:$0x80]  ;;  %v6106_v62 = vshrl.u32 %v6019_v43, 16 }
 0x3c5   : > { %v6048_v59 = vrot.slane %v6046_v0, 7  ;;  %v6082_v63 = vshrl.u32 %v6015_v50, 16 }
 0x3c6   : > { %8573 = vmatmul.mubr.bf16.gmra.mrb[32].mxu1 %v11162_v56  ;;  %v6052_v39 = vrot.slane %v6050_v37, 7 }
 0x3c7   : > { %8589 = vmatpush3.bf16.msra.mxu1 %v9305_v10  ;;  %8592 = vmatprep.mubr.bf16.mxu1 %v5733_v35  ;;  %v6053_v10 = vshll.u32 %v11264_v38, 16  ;;  %v9315_v35 = vld [vmem:[%s11459_s7 + $0x1c0] sm:$0xff]   ;;  %v6084_v5 = vrot.slane %v6082_v63, 7 }
 0x3c8   : > { %8590 = vmatprep.subr.bf16.mxu1 %v9306_v24 }
 0x3c9   : > { %v6055_v29 = vor.u32 %v6053_v10, %v6052_v39  ;;  %v9321_v39 = vld [vmem:[%s11459_s7 + $0x1f0] sm:$0xff]  }
 0x3cb   : > { %8591 = vmatpush3.bf16.msra.mxu1 %v9306_v24  ;;  %v6062_v24 = vshrl.u32 %v11289_v16, 16  ;;  %v6056_v32 = vsel %vm4444_vm12, %v6048_v59, %v6055_v29  ;;  %v9325_v59 = vld [vmem:[%s11459_s7 + $0x210] sm:$0xff]   ;;  %v9326_v29 = vld [vmem:[%s11459_s7 + $0x218] sm:$0xff]  }
 0x3cc   : > { %8608 = vmatprep.subr.bf16.mxu1 %v9307_v21 }
 0x3cd   : > { %v6064_v22 = vrot.slane %v6062_v24, 7 }
 0x3ce   : > { %8593 = vmatmul.mubr.bf16.vlgmr.msra.gmra.mrb[20].mxu1 %v5745_v60 }
 0x3cf   : > { %8609 = vmatpush3.bf16.msra.mxu1 %v9307_v21  ;;  %8596 = vmatprep.mubr.bf16.mxu1 %v5757_v28  ;;  %v6011_v21 = vld [vmem:[#allocation2 + $0x78] sm:$0x80]  ;;  %v9316_v28 = vld [vmem:[%s11459_s7 + $0x1c8] sm:$0xff]  }
 0x3d0   : > { %8610 = vmatprep.subr.bf16.mxu1 %v9308_v15  ;;  %v6058_v60 = vshrl.u32 %v6011_v21, 16  ;;  %v9327_v21 = vld [vmem:[%s11459_s7 + $0x220] sm:$0xff]  }
 0x3d2   : > { %v6060_v14 = vrot.slane %v6058_v60, 7  ;;  %v6502_v60 = vrot.slane %v6029_v41, 1  ;;  %v6514_v41 = vrot.slane %v6041_v19, 1 }
 0x3d3   : > { %8611 = vmatpush3.bf16.msra.mxu1 %v9308_v15  ;;  %v6065_v15 = vshll.u32 %v11289_v16, 16 }
 0x3d4   : > { %8612 = vmatprep.subr.bf16.mxu1 %v9309_v23 }
 0x3d6   : > { %8597 = vmatmul.mubr.bf16.gmra.mrb[24].mxu1 %v5769_v52  ;;  %v6067_v52 = vor.u32 %v6065_v15, %v6064_v22  ;;  %v6505_v22 = vshll.u32 %v6482_v30, 16 }
 0x3d7   : > { %8613 = vmatpush3.bf16.msra.mxu1 %v9309_v23  ;;  %8600 = vmatprep.mubr.bf16.mxu1 %v5781_v31  ;;  %v6076_v23 = vrot.slane %v6074_v26, 7  ;;  %v6072_v31 = vrot.slane %v6070_v1, 7 }
 0x3d8   : > { %8614 = vmatprep.subr.bf16.mxu1 %v9310_v11  ;;  %v6068_v8 = vsel %vm4444_vm12, %v6060_v14, %v6067_v52  ;;  %v6507_v1 = vrot.slane %v6505_v22, 1  ;;  %v6486_v14 = vld [vmem:[#allocation2 + $0x70] sm:$0x1] }
 0x3d9   : > { %v6079_v36 = vor.u32 %v6077_v55, %v6076_v23  ;;  %v6484_v23 = vld [vmem:[#allocation2 + $0x58] sm:$0x1] }
 0x3da   : > { %v6517_v52 = vshll.u32 %v6484_v23, 16 }
 0x3db   : > { %8615 = vmatpush3.bf16.msra.mxu1 %v9310_v11  ;;  %v9317_v11 = vld [vmem:[%s11459_s7 + $0x1d0] sm:$0xff]   ;;  %v6080_v47 = vsel %vm4444_vm12, %v6072_v31, %v6079_v36  ;;  %v6526_v31 = vrot.slane %v6053_v10, 1  ;;  %v6538_v10 = vrot.slane %v6065_v15, 1 }
 0x3dc   : > { %8616 = vmatprep.subr.bf16.mxu1 %v9311_v49  ;;  %v6519_v19 = vrot.slane %v6517_v52, 1 }
 0x3dd   : > { %v6527_v36 = vor.u32 %v6526_v31, %v6050_v37 }
 0x3de   : > { %8601 = vmatmul.mubr.bf16.gmra.mrb[28].mxu1 %v5793_v57  ;;  %v6089_v57 = vshll.u32 %v11313_v6, 16 }
 0x3df   : > { %8617 = vmatpush3.bf16.msra.mxu1 %v9311_v49  ;;  %8604 = vmatprep.mubr.bf16.mxu1 %v5805_v20  ;;  %v6017_v49 = vld [vmem:[#allocation2 + $0xc0] sm:$0x80] }
 0x3e0   : > { %8618 = vmatprep.subr.bf16.mxu1 %v9312_v45  ;;  %v11331_v20 = vld [vmem:[#allocation2 + $0xe0] sm:$0xff]  ;;  %v6091_v12 = vor.u32 %v6089_v57, %v6088_v27 }
 0x3e1   : > { %v6110_v46 = vshrl.u32 %v11331_v20, 16  ;;  %v6113_v33 = vshll.u32 %v11331_v20, 16 }
 0x3e2   : > { %v6092_v7 = vsel %vm4444_vm12, %v6084_v5, %v6091_v12  ;;  %v6492_v5 = vld [vmem:[#allocation2 + $0xb8] sm:$0x1]  ;;  %v6494_v12 = vld [vmem:[#allocation2 + $0xd0] sm:$0x1] }
 0x3e3   : > { %8619 = vmatpush3.bf16.msra.mxu1 %v9312_v45  ;;  %v6094_v45 = vshrl.u32 %v6017_v49, 16  ;;  %v6488_v49 = vld [vmem:[#allocation2 + $0x88] sm:$0x1]  ;;  %v6577_v43 = vshll.u32 %v6494_v12, 16 }
 0x3e4   : > { %8620 = vmatprep.subr.bf16.mxu1 %v9313_v44  ;;  %v6541_v27 = vshll.u32 %v6488_v49, 16 }
 0x3e5   : > { %v6096_v25 = vrot.slane %v6094_v45, 7 }
 0x3e6   : > { %8605 = vmatmul.mubr.bf16.gmra.mrb[32].mxu1 %v5817_v9  ;;  %v6112_v9 = vrot.slane %v6110_v46, 7  ;;  %v6543_v37 = vrot.slane %v6541_v27, 1 }
 0x3e7   : > { %8621 = vmatpush3.bf16.msra.mxu1 %v9313_v44  ;;  %8624 = vmatprep.mubr.bf16.mxu1 %v6032_v51  ;;  %v9319_v44 = vld [vmem:[%s11459_s7 + $0x1e0] sm:$0xff]   ;;  %v6108_v51 = vrot.slane %v6106_v62, 7  ;;  %v6586_v62 = vrot.slane %v6113_v33, 1 }
 0x3e8   : > { %8622 = vmatprep.subr.bf16.mxu1 %v9314_v61  ;;  %v6115_v0 = vor.u32 %v6113_v33, %v6112_v9 }
 0x3ea   : > { %v6116_v4 = vsel %vm4444_vm12, %v6108_v51, %v6115_v0 }
 0x3eb   : > { %8623 = vmatpush3.bf16.msra.mxu1 %v9314_v61  ;;  %v6104_v61 = vsel %vm4444_vm12, %v6096_v25, %v11180_v2  ;;  %v9322_v2 = vld [vmem:[%s11459_s7 + $0x1f8] sm:$0xff]   ;;  %v6565_v25 = vshll.u32 %v6492_v5, 16 }
 0x3ec   : > { %8640 = vmatprep.subr.bf16.mxu1 %v9315_v35 }
 0x3ee   : > { %8625 = vmatmul.mubr.bf16.vlgmr.msra.gmra.mrb[20].mxu1 %v6044_v48  ;;  %v9328_v48 = vld [vmem:[%s11459_s7 + $0x228] sm:$0xff]  }
 0x3ef   : > { %8641 = vmatpush3.bf16.msra.mxu1 %v9315_v35  ;;  %8628 = vmatprep.mubr.bf16.mxu1 %v6056_v32  ;;  %v9324_v35 = vld [vmem:[%s11459_s7 + $0x208] sm:$0xff]   ;;  %v6503_v32 = vor.u32 %v6502_v60, %v6026_v54  ;;  %v6515_v54 = vor.u32 %v6514_v41, %v6038_v17 }
 0x3f0   : > { %8642 = vmatprep.subr.bf16.mxu1 %v9316_v28 }
 0x3f1   : > { %v6520_v63 = vsel %vm4946_vm14, %v6515_v54, %v6519_v19 }
 0x3f3   : > { %8643 = vmatpush3.bf16.msra.mxu1 %v9316_v28  ;;  %v9329_v28 = vld [vmem:[%s11459_s7 + $0x230] sm:$0xff]  }
 0x3f4   : > { %8644 = vmatprep.subr.bf16.mxu1 %v9317_v11 }
 0x3f6   : > { %8629 = vmatmul.mubr.bf16.gmra.mrb[24].mxu1 %v6068_v8  ;;  %v6490_v8 = vld [vmem:[#allocation2 + $0xa0] sm:$0x1] }
 0x3f7   : > { %8645 = vmatpush3.bf16.msra.mxu1 %v9317_v11  ;;  %8632 = vmatprep.mubr.bf16.mxu1 %v6080_v47  ;;  %v6508_v11 = vsel %vm4946_vm14, %v6503_v32, %v6507_v1  ;;  %v6553_v17 = vshll.u32 %v6490_v8, 16 }
 0x3f8   : > { %8646 = vmatprep.subr.bf16.mxu1 %v9318_v40 }
 0x3f9   : > { %v6555_v45 = vrot.slane %v6553_v17, 1 }
 0x3fb   : > { %8647 = vmatpush3.bf16.msra.mxu1 %v9318_v40 }
 0x3fc   : > { %8648 = vmatprep.subr.bf16.mxu1 %v9319_v44 }
 0x3fe   : > { %8633 = vmatmul.mubr.bf16.gmra.mrb[28].mxu1 %v6092_v7 }
 0x3ff   : > { %8649 = vmatpush3.bf16.msra.mxu1 %v9319_v44  ;;  %8636 = vmatprep.mubr.bf16.mxu1 %v6104_v61  ;;  %v6562_v44 = vrot.slane %v6089_v57, 1 }
 0x400   : > { %8650 = vmatprep.subr.bf16.mxu1 %v9320_v58 }
 0x403   : > { %8651 = vmatpush3.bf16.msra.mxu1 %v9320_v58  ;;  %v6587_v58 = vor.u32 %v6586_v62, %v6110_v46 }
 0x404   : > { %8652 = vmatprep.subr.bf16.mxu1 %v9321_v39 }
 0x406   : > { %8637 = vmatmul.mubr.bf16.gmra.mrb[32].mxu1 %v6116_v4 }
 0x407   : > { %8653 = vmatpush3.bf16.msra.mxu1 %v9321_v39  ;;  %8656 = vmatprep.mubr.bf16.mxu1 %v11244_v34  ;;  %v6529_v34 = vshll.u32 %v6486_v14, 16 }
 0x408   : > { %8654 = vmatprep.subr.bf16.mxu1 %v9322_v2 }
 0x409   : > { %v6531_v50 = vrot.slane %v6529_v34, 1 }
 0x40b   : > { %8655 = vmatpush3.bf16.msra.mxu1 %v9322_v2  ;;  %v6532_v40 = vsel %vm4946_vm14, %v6527_v36, %v6531_v50 }
 0x40c   : > { %8672 = vmatprep.subr.bf16.mxu1 %v9323_v13 }
 0x40e   : > { %8657 = vmatmul.mubr.bf16.vlgmr.msra.gmra.mrb[20].mxu1 %v11262_v18  ;;  %v6550_v18 = vrot.slane %v6077_v55, 1 }
 0x40f   : > { %8673 = vmatpush3.bf16.msra.mxu1 %v9323_v13  ;;  %8660 = vmatprep.mubr.bf16.mxu1 %v11264_v38  ;;  %v6539_v38 = vor.u32 %v6538_v10, %v6062_v24  ;;  %v6567_v24 = vrot.slane %v6565_v25, 1 }
 0x410   : > { %8674 = vmatprep.subr.bf16.mxu1 %v9324_v35  ;;  %v6551_v47 = vor.u32 %v6550_v18, %v6074_v26  ;;  %v6496_v26 = vld [vmem:[#allocation2 + $0xe8] sm:$0x1] }
 0x411   : > { %v6544_v15 = vsel %vm4946_vm14, %v6539_v38, %v6543_v37  ;;  %v6589_v9 = vshll.u32 %v6496_v26, 16 }
 0x412   : > { %v6556_v55 = vsel %vm4946_vm14, %v6551_v47, %v6555_v45 }
 0x413   : > { %8675 = vmatpush3.bf16.msra.mxu1 %v9324_v35  ;;  %v6591_v61 = vrot.slane %v6589_v9, 1 }
 0x414   : > { %8676 = vmatprep.subr.bf16.mxu1 %v9325_v59 }
 0x416   : > { %8661 = vmatmul.mubr.bf16.gmra.mrb[24].mxu1 %v11289_v16  ;;  %v6563_v16 = vor.u32 %v6562_v44, %v6086_v3  ;;  %v7578_v3 = vld [vmem:[%s11460_s8] ss:$0 sm:$0xff] }
 0x417   : > { %8677 = vmatpush3.bf16.msra.mxu1 %v9325_v59  ;;  %8664 = vmatprep.mubr.bf16.mxu1 %v11291_v42  ;;  %v6579_v42 = vrot.slane %v6577_v43, 1 }
 0x418   : > { %8678 = vmatprep.subr.bf16.mxu1 %v9326_v29  ;;  %v6568_v7 = vsel %vm4946_vm14, %v6563_v16, %v6567_v24 }
 0x419   : > { %v6580_v57 = vsel %vm4946_vm14, %v11268_v53, %v6579_v42 }
 0x41b   : > { %8679 = vmatpush3.bf16.msra.mxu1 %v9326_v29 }
 0x41c   : > { %8680 = vmatprep.subr.bf16.mxu1 %v9327_v21 }
 0x41e   : > { %8665 = vmatmul.mubr.bf16.gmra.mrb[28].mxu1 %v11313_v6  ;;  %v6592_v6 = vsel %vm4946_vm14, %v6587_v58, %v6591_v61 }
 0x41f   : > { %8681 = vmatpush3.bf16.msra.mxu1 %v9327_v21  ;;  %8668 = vmatprep.mubr.bf16.mxu1 %v11162_v56  ;;  %v9330_v56 = vld [vmem:[%s11459_s7 + $0x238] sm:$0xff]  }
 0x420   : > { %8682 = vmatprep.subr.bf16.mxu1 %v9328_v48 }
 0x423   : > { %8683 = vmatpush3.bf16.msra.mxu1 %v9328_v48 }
 0x424   : > { %8684 = vmatprep.subr.bf16.mxu1 %v9329_v28 }
 0x426   : > { %8669 = vmatmul.mubr.bf16.gmra.mrb[32].mxu1 %v11331_v20 }
 0x427   : > { %8685 = vmatpush3.bf16.msra.mxu1 %v9329_v28  ;;  %8688 = vmatprep.mubr.bf16.mxu1 %v6508_v11 }
 0x428   : > { %8686 = vmatprep.subr.bf16.mxu1 %v9330_v56 }
 0x42b   : > { %8687 = vmatpush3.bf16.msra.mxu1 %v9330_v56 }
 0x42e   : > { %8689 = vmatmul.mubr.bf16.vlgmr.msra.gmra.mrb[20].mxu1 %v6520_v63 }
 0x42f   : > { %8692 = vmatprep.mubr.bf16.mxu1 %v6532_v40 }
 0x436   : > { %8693 = vmatmul.mubr.bf16.gmra.mrb[24].mxu1 %v6544_v15 }
 0x437   : > { %8696 = vmatprep.mubr.bf16.mxu1 %v6556_v55 }
 0x43e   : > { %8697 = vmatmul.mubr.bf16.gmra.mrb[28].mxu1 %v6568_v7 }
 0x43f   : > { %8700 = vmatprep.mubr.bf16.mxu1 %v6580_v57 }
 0x446   : > { %8701 = vmatmul.mubr.bf16.gmra.mrb[32].mxu1 %v6592_v6 }
 0x501   : > { %v8690_v51 = vpop.f32.mrb[20].mxu1 }
 0x502   : > { %v6788_v33 = vadd.f32 %v8690_v51, %v7578_v3  ;;  %v6700_v0 = vpop.f32.mrb[21].mxu1 }
 0x503   : > { %v6786_v39 = vadd.f32 %v7578_v3, %v6700_v0  ;;  %v8691_v53 = vpop.f32.mrb[22].mxu1 }
 0x504   : > { %v6789_v4 = vadd.f32 %v8691_v53, %v7578_v3  ;;  %v6703_v2 = vpop.f32.mrb[23].mxu1  ;;  %v6804_v20 = vmax.f32 %v6788_v33, 0.0 }
 0x505   : > { %v6787_v13 = vadd.f32 %v7578_v3, %v6703_v2  ;;  %v6802_v35 = vmax.f32 %v6786_v39, 0.0 }
 0x506   : > { %v6805_v46 = vmax.f32 %v6789_v4, 0.0 }
 0x507   : > { %v6803_v59 = vmax.f32 %v6787_v13, 0.0 }
 0x508   : > { %v7635_v29 = vpack.c.bf16 %v6805_v46, %v6804_v20 }
 0x509   : > { %v7630_v21 = vpack.c.bf16 %v6803_v59, %v6802_v35  ;;  %v8694_v30 = vpop.f32.mrb[24].mxu1 }
 0x50a   : > { %7671 = vst [vmem:[%s9508_s29 + $0x8] sm:$0xff] %v7635_v29   ;;  %v6792_v48 = vadd.f32 %v8694_v30, %v7578_v3  ;;  %v6716_v60 = vpop.f32.mrb[25].mxu1 }
 0x50b   : > { %7631 = vst [vmem:[%s9508_s29] sm:$0xff] %v7630_v21   ;;  %v6790_v22 = vadd.f32 %v7578_v3, %v6716_v60  ;;  %v8695_v28 = vpop.f32.mrb[26].mxu1 }
 0x50c   : > { %v6793_v32 = vadd.f32 %v8695_v28, %v7578_v3  ;;  %v6719_v1 = vpop.f32.mrb[27].mxu1  ;;  %v6808_v14 = vmax.f32 %v6792_v48, 0.0 }
 0x50d   : > { %v6791_v23 = vadd.f32 %v7578_v3, %v6719_v1  ;;  %v6806_v52 = vmax.f32 %v6790_v22, 0.0 }
 0x50e   : > { %v6809_v41 = vmax.f32 %v6793_v32, 0.0 }
 0x50f   : > { %v6807_v56 = vmax.f32 %v6791_v23, 0.0 }
 0x510   : > { %v7645_v11 = vpack.c.bf16 %v6809_v41, %v6808_v14 }
 0x511   : > { %v7640_v31 = vpack.c.bf16 %v6807_v56, %v6806_v52  ;;  %v8698_v34 = vpop.f32.mrb[28].mxu1 }
 0x512   : > { %7673 = vst [vmem:[%s9508_s29 + $0x18] sm:$0xff] %v7645_v11   ;;  %v6796_v54 = vadd.f32 %v8698_v34, %v7578_v3  ;;  %v6732_v19 = vpop.f32.mrb[29].mxu1 }
 0x513   : > { %7672 = vst [vmem:[%s9508_s29 + $0x10] sm:$0xff] %v7640_v31   ;;  %v6794_v36 = vadd.f32 %v7578_v3, %v6732_v19  ;;  %v8699_v50 = vpop.f32.mrb[30].mxu1 }
 0x514   : > { %v6797_v49 = vadd.f32 %v8699_v50, %v7578_v3  ;;  %v6735_v8 = vpop.f32.mrb[31].mxu1  ;;  %v6812_v10 = vmax.f32 %v6796_v54, 0.0 }
 0x515   : > { %v6795_v63 = vadd.f32 %v7578_v3, %v6735_v8  ;;  %v6810_v40 = vmax.f32 %v6794_v36, 0.0 }
 0x516   : > { %v6813_v27 = vmax.f32 %v6797_v49, 0.0 }
 0x517   : > { %v6811_v18 = vmax.f32 %v6795_v63, 0.0 }
 0x518   : > { %v7655_v17 = vpack.c.bf16 %v6813_v27, %v6812_v10 }
 0x519   : > { %v7650_v38 = vpack.c.bf16 %v6811_v18, %v6810_v40  ;;  %v8702_v37 = vpop.f32.mrb[32].mxu1 }
 0x51a   : > { %7675 = vst [vmem:[%s9508_s29 + $0x28] sm:$0xff] %v7655_v17   ;;  %v6800_v47 = vadd.f32 %v8702_v37, %v7578_v3  ;;  %v6748_v45 = vpop.f32.mrb[33].mxu1 }
 0x51b   : > { %7674 = vst [vmem:[%s9508_s29 + $0x20] sm:$0xff] %v7650_v38   ;;  %v6798_v5 = vadd.f32 %v7578_v3, %v6748_v45  ;;  %v8703_v12 = vpop.f32.mrb[34].mxu1 }
 0x51c   : > { %v6801_v15 = vadd.f32 %v8703_v12, %v7578_v3  ;;  %v6751_v44 = vpop.f32.mrb[35].mxu1  ;;  %v6816_v55 = vmax.f32 %v6800_v47, 0.0 }
 0x51d   : > { %v6799_v25 = vadd.f32 %v7578_v3, %v6751_v44  ;;  %v6814_v16 = vmax.f32 %v6798_v5, 0.0 }
 0x51e   : > { %v6817_v43 = vmax.f32 %v6801_v15, 0.0 }
 0x51f   : > { %v6815_v24 = vmax.f32 %v6799_v25, 0.0 }
 0x520   : > { %v7665_v42 = vpack.c.bf16 %v6817_v43, %v6816_v55 }
 0x521   : > { %v7660_v26 = vpack.c.bf16 %v6815_v24, %v6814_v16 }
 0x522   : > { %7677 = vst [vmem:[%s9508_s29 + $0x38] sm:$0xff] %v7665_v42  }
 0x523   : > { %7676 = vst [vmem:[%s9508_s29 + $0x30] sm:$0xff] %v7660_v26  }
 0x524 PF: > { %s19_s13 = sadd.s32 1, %s9369_s13   ;;  %s11572_s30 = smov %s9361_s11 }
 0x525   : > { %p16_p11 = scmp.ge.s32.totalorder %s19_s13, 6   ;;  %s11573_s10 = smov %s9365_s12 }
 0x526   : > { %s11574_s11 = smov %s11577_s14  ;;  %s11575_s12 = smov %s11581_s15 }
 0x527   :  { %18 = sbr.rel (!%p16_p11) target bundleno = 3 (0x3), region = 130 }

</bundles_post_ra>
